<compile_context>
chip_gen: v7x
topology: tpu7x:2x2x1
jax: 0.10.0
libtpu: 0.0.40
codegen_flags: <defaults>
</compile_context>

<pallas_src>
import functools

import jax
import jax.numpy as jnp
from jax.experimental import pallas as pl
from jax.experimental.pallas import tpu as pltpu


# ----------------------------- in-kernel helpers -----------------------------

def _layer_norm(x, w, b, eps=1e-5):
    # x: (L, D); w, b: (1, D)
    mu = jnp.mean(x, axis=-1, keepdims=True)
    var = jnp.mean((x - mu) ** 2, axis=-1, keepdims=True)
    return (x - mu) * jax.lax.rsqrt(var + eps) * w + b


def _attn(q, k, v, wo_t, nhead):
    """Multi-head attention core.

    q: (Lq, D) already scaled by 1/sqrt(head_dim); k, v: (Lk, D);
    wo_t: (D, D) pre-transposed output projection (rows = concat-head dim).
    The output projection is folded into the static head loop and accumulated,
    so there is no lane-axis concatenate and only one (Lq, D) accumulator live.
    """
    Lq, D = q.shape
    hd = D // nhead
    out = jnp.zeros((Lq, D), jnp.float32)
    for h in range(nhead):  # static unroll
        sl = slice(h * hd, (h + 1) * hd)
        # scores = q_h @ k_h^T without materializing a transpose
        s = jax.lax.dot_general(q[:, sl], k[:, sl], (((1,), (1,)), ((), ())),
                                preferred_element_type=jnp.float32)      # (Lq, Lk)
        s = s - jnp.max(s, axis=-1, keepdims=True)
        p = jnp.exp(s)
        p = p * pl.reciprocal(jnp.sum(p, axis=-1, keepdims=True), approx=True)
        oh = jnp.dot(p, v[:, sl], preferred_element_type=jnp.float32)    # (Lq, hd)
        out = out + jnp.dot(oh, wo_t[sl, :], preferred_element_type=jnp.float32)
    return out


# --------------------------------- kernel ------------------------------------

def decoder_stack_kernel(tgt_ref, memk_ref, mem_ref, qpos_ref,
                         sa_wqk_ref, sa_bqk_ref, sa_wv_ref, sa_bv_ref,
                         sa_wo_ref, sa_bo_ref,
                         ca_wq_ref, ca_bq_ref, ca_wk_ref, ca_bk_ref,
                         ca_wv_ref, ca_bv_ref, ca_wo_ref, ca_bo_ref,
                         l1w_ref, l1b_ref, l2w_ref, l2b_ref,
                         n1w_ref, n1b_ref, n2w_ref, n2b_ref, n3w_ref, n3b_ref,
                         fnw_ref, fnb_ref,
                         out_ref, *, nhead, num_layers):
    # one batch element per grid step; all layers + final norm fused
    x = tgt_ref[0].astype(jnp.float32)       # (T, D)
    memk = memk_ref[0].astype(jnp.float32)   # (M, D) = memory + pos (hoisted)
    mem = mem_ref[0].astype(jnp.float32)     # (M, D)
    qpos = qpos_ref[0].astype(jnp.float32)   # (T, D)
    D = x.shape[-1]

    for l in range(num_layers):  # static unroll; per-layer weights indexed statically
        # --- self attention: q = k = x + qpos (one fused (D,2D) projection), v = x ---
        qk_in = x + qpos
        qk = jnp.dot(qk_in, sa_wqk_ref[l],
                     preferred_element_type=jnp.float32) + sa_bqk_ref[l]     # (T, 2D)
        v = jnp.dot(x, sa_wv_ref[l],
                    preferred_element_type=jnp.float32) + sa_bv_ref[l]       # (T, D)
        sa = _attn(qk[:, :D], qk[:, D:], v, sa_wo_ref[l], nhead) + sa_bo_ref[l]
        x = _layer_norm(x + sa, n1w_ref[l], n1b_ref[l])

        # --- cross attention: q = x + qpos, k = memory + pos, v = memory ---
        q = jnp.dot(x + qpos, ca_wq_ref[l],
                    preferred_element_type=jnp.float32) + ca_bq_ref[l]
        k = jnp.dot(memk, ca_wk_ref[l],
                    preferred_element_type=jnp.float32) + ca_bk_ref[l]
        v = jnp.dot(mem, ca_wv_ref[l],
                    preferred_element_type=jnp.float32) + ca_bv_ref[l]
        ca = _attn(q, k, v, ca_wo_ref[l], nhead) + ca_bo_ref[l]
        x = _layer_norm(x + ca, n2w_ref[l], n2b_ref[l])

        # --- feed-forward (ReLU, dropout = identity in eval) ---
        h = jnp.dot(x, l1w_ref[l], preferred_element_type=jnp.float32) + l1b_ref[l]
        h = jnp.maximum(h, 0.0)
        f = jnp.dot(h, l2w_ref[l], preferred_element_type=jnp.float32) + l2b_ref[l]
        x = _layer_norm(x + f, n3w_ref[l], n3b_ref[l])

    # final decoder norm fused into the same kernel
    x = _layer_norm(x, fnw_ref[...], fnb_ref[...])
    out_ref[0] = x.astype(out_ref.dtype)


# ------------------------------ weight prep -----------------------------------

_WEIGHT_ORDER = ('sa_wqk', 'sa_bqk', 'sa_wv', 'sa_bv', 'sa_wo', 'sa_bo',
                 'ca_wq', 'ca_bq', 'ca_wk', 'ca_bk', 'ca_wv', 'ca_bv', 'ca_wo', 'ca_bo',
                 'l1w', 'l1b', 'l2w', 'l2b',
                 'n1w', 'n1b', 'n2w', 'n2b', 'n3w', 'n3b')


def _prep_layer(p, nhead):
    """PyTorch-layout layer params -> kernel layout (pre-transposed, scale folded)."""
    D = p['sa_out_w'].shape[0]
    hd = D // nhead
    scale = 1.0 / (hd ** 0.5)

    def split_in_proj(w, b):
        # w: (3D, D), b: (1, 3D)  (PyTorch in_proj); return x@W-layout blocks
        wq = w[0:D].T * scale          # fold 1/sqrt(hd) into Q projection
        wk = w[D:2 * D].T
        wv = w[2 * D:3 * D].T
        bq = b[:, 0:D] * scale
        bk = b[:, D:2 * D]
        bv = b[:, 2 * D:3 * D]
        return wq, wk, wv, bq, bk, bv

    swq, swk, swv, sbq, sbk, sbv = split_in_proj(p['sa_in_w'], p['sa_in_b'])
    cwq, cwk, cwv, cbq, cbk, cbv = split_in_proj(p['ca_in_w'], p['ca_in_b'])

    return dict(
        sa_wqk=jnp.concatenate([swq, swk], axis=1),   # (D, 2D)
        sa_bqk=jnp.concatenate([sbq, sbk], axis=1),   # (1, 2D)
        sa_wv=swv, sa_bv=sbv,
        sa_wo=p['sa_out_w'].T, sa_bo=p['sa_out_b'],
        ca_wq=cwq, ca_bq=cbq, ca_wk=cwk, ca_bk=cbk, ca_wv=cwv, ca_bv=cbv,
        ca_wo=p['ca_out_w'].T, ca_bo=p['ca_out_b'],
        l1w=p['lin1_w'].T, l1b=p['lin1_b'],
        l2w=p['lin2_w'].T, l2b=p['lin2_b'],
        n1w=p['n1_w'], n1b=p['n1_b'],
        n2w=p['n2_w'], n2b=p['n2_b'],
        n3w=p['n3_w'], n3b=p['n3_b'],
    )


def _stack_layers(layer_params, nhead):
    prepped = [_prep_layer(p, nhead) for p in layer_params]
    return [jnp.stack([pp[k] for pp in prepped]) for k in _WEIGHT_ORDER]


def _replicated_spec(a):
    nd = a.ndim
    return pl.BlockSpec(a.shape, lambda b, _n=nd: (0,) * _n)


# -------------------------------- wrapper --------------------------------------

def transformer_decoder_forward(tgt, memory, layer_params, norm_params,
                                pos, query_pos, nhead):
    """Inputs follow PyTorch (seq, batch, d_model); returns (1, T, B, D)
    mirroring `output.unsqueeze(0)` (return_intermediate=False)."""
    tgt_b = jnp.transpose(tgt, (1, 0, 2))          # (B, T, D)
    mem_b = jnp.transpose(memory, (1, 0, 2))       # (B, M, D)
    qp_b = jnp.transpose(query_pos, (1, 0, 2))     # (B, T, D)
    pos_b = jnp.transpose(pos, (1, 0, 2))          # (B, M, D)
    memk_b = mem_b + pos_b                         # hoisted: constant across layers

    B, T, D = tgt_b.shape
    M = mem_b.shape[1]
    num_layers = len(layer_params)

    weights = _stack_layers(layer_params, nhead) + [norm_params['w'], norm_params['b']]

    # Size the scoped VMEM limit against the (double-buffered) resident weights.
    weight_bytes = sum(int(a.size) * a.dtype.itemsize for a in weights)
    act_bytes = 4 * (2 * T * D + 2 * M * D)
    vmem_limit = int(min(48 * 2**20, max(16 * 2**20, 4 * (weight_bytes + act_bytes))))

    in_specs = [
        pl.BlockSpec((1, T, D), lambda b: (b, 0, 0)),   # tgt
        pl.BlockSpec((1, M, D), lambda b: (b, 0, 0)),   # memory + pos
        pl.BlockSpec((1, M, D), lambda b: (b, 0, 0)),   # memory
        pl.BlockSpec((1, T, D), lambda b: (b, 0, 0)),   # query_pos
    ] + [_replicated_spec(a) for a in weights]

    out = pl.pallas_call(
        functools.partial(decoder_stack_kernel, nhead=nhead, num_layers=num_layers),
        out_shape=jax.ShapeDtypeStruct((B, T, D), tgt_b.dtype),
        grid=(B,),
        in_specs=in_specs,
        out_specs=pl.BlockSpec((1, T, D), lambda b: (b, 0, 0)),
        compiler_params=pltpu.CompilerParams(
            dimension_semantics=("parallel",),      # v7x: 2 TCs split the batch
            vmem_limit_bytes=vmem_limit),
    )(tgt_b, memk_b, mem_b, qp_b, *weights)

    out = jnp.transpose(out, (1, 0, 2))              # back to (T, B, D)
    return out[None]                                 # (1, T, B, D)


# ---------------------------- deterministic init ------------------------------

def init_layer_params(key, D, FF):
    ks = jax.random.split(key, 6)
    s = 0.02
    f32 = jnp.float32
    return dict(
        sa_in_w=jax.random.normal(ks[0], (3 * D, D), f32) * s,
        sa_in_b=jnp.zeros((1, 3 * D), f32),
        sa_out_w=jax.random.normal(ks[1], (D, D), f32) * s,
        sa_out_b=jnp.zeros((1, D), f32),
        ca_in_w=jax.random.normal(ks[2], (3 * D, D), f32) * s,
        ca_in_b=jnp.zeros((1, 3 * D), f32),
        ca_out_w=jax.random.normal(ks[3], (D, D), f32) * s,
        ca_out_b=jnp.zeros((1, D), f32),
        lin1_w=jax.random.normal(ks[4], (FF, D), f32) * s,
        lin1_b=jnp.zeros((1, FF), f32),
        lin2_w=jax.random.normal(ks[5], (D, FF), f32) * s,
        lin2_b=jnp.zeros((1, D), f32),
        n1_w=jnp.ones((1, D), f32), n1_b=jnp.zeros((1, D), f32),
        n2_w=jnp.ones((1, D), f32), n2_b=jnp.zeros((1, D), f32),
        n3_w=jnp.ones((1, D), f32), n3_b=jnp.zeros((1, D), f32),
    )


if __name__ == "__main__":
    B, T, M, D, H, FF, NUM_LAYERS = 2, 8, 16, 32, 4, 64, 2

    key = jax.random.PRNGKey(0)
    k_tgt, k_mem, k_pos, k_qpos, k_par = jax.random.split(key, 5)

    # PyTorch (seq, batch, d_model) convention at the wrapper boundary.
    tgt = jax.random.normal(k_tgt, (T, B, D), jnp.float32)
    memory = jax.random.normal(k_mem, (M, B, D), jnp.float32)
    pos = jax.random.normal(k_pos, (M, B, D), jnp.float32)
    query_pos = jax.random.normal(k_qpos, (T, B, D), jnp.float32)

    layer_keys = jax.random.split(k_par, NUM_LAYERS + 1)
    layer_params = [init_layer_params(layer_keys[i], D, FF) for i in range(NUM_LAYERS)]
    norm_params = dict(w=jnp.ones((1, D), jnp.float32), b=jnp.zeros((1, D), jnp.float32))

    out = transformer_decoder_forward(tgt, memory, layer_params, norm_params,
                                      pos, query_pos, nhead=H)
    out = jax.block_until_ready(out)
    assert out.shape == (1, T, B, D), out.shape
    assert bool(jnp.all(jnp.isfinite(out)))
    print("KERNEL_OK")
</pallas_src>

<mosaic_0001>
module attributes {stable_mosaic.version = 11 : i64} {
  func.func @decoder_stack_kernel(%arg0: i32, %arg1: memref<1x8x32xf32, #tpu.memory_space<vmem>>, %arg2: memref<1x16x32xf32, #tpu.memory_space<vmem>>, %arg3: memref<1x16x32xf32, #tpu.memory_space<vmem>>, %arg4: memref<1x8x32xf32, #tpu.memory_space<vmem>>, %arg5: memref<2x32x64xf32, #tpu.memory_space<vmem>>, %arg6: memref<2x1x64xf32, #tpu.memory_space<vmem>>, %arg7: memref<2x32x32xf32, #tpu.memory_space<vmem>>, %arg8: memref<2x1x32xf32, #tpu.memory_space<vmem>>, %arg9: memref<2x32x32xf32, #tpu.memory_space<vmem>>, %arg10: memref<2x1x32xf32, #tpu.memory_space<vmem>>, %arg11: memref<2x32x32xf32, #tpu.memory_space<vmem>>, %arg12: memref<2x1x32xf32, #tpu.memory_space<vmem>>, %arg13: memref<2x32x32xf32, #tpu.memory_space<vmem>>, %arg14: memref<2x1x32xf32, #tpu.memory_space<vmem>>, %arg15: memref<2x32x32xf32, #tpu.memory_space<vmem>>, %arg16: memref<2x1x32xf32, #tpu.memory_space<vmem>>, %arg17: memref<2x32x32xf32, #tpu.memory_space<vmem>>, %arg18: memref<2x1x32xf32, #tpu.memory_space<vmem>>, %arg19: memref<2x32x64xf32, #tpu.memory_space<vmem>>, %arg20: memref<2x1x64xf32, #tpu.memory_space<vmem>>, %arg21: memref<2x64x32xf32, #tpu.memory_space<vmem>>, %arg22: memref<2x1x32xf32, #tpu.memory_space<vmem>>, %arg23: memref<2x1x32xf32, #tpu.memory_space<vmem>>, %arg24: memref<2x1x32xf32, #tpu.memory_space<vmem>>, %arg25: memref<2x1x32xf32, #tpu.memory_space<vmem>>, %arg26: memref<2x1x32xf32, #tpu.memory_space<vmem>>, %arg27: memref<2x1x32xf32, #tpu.memory_space<vmem>>, %arg28: memref<2x1x32xf32, #tpu.memory_space<vmem>>, %arg29: memref<1x32xf32, #tpu.memory_space<vmem>>, %arg30: memref<1x32xf32, #tpu.memory_space<vmem>>, %arg31: memref<1x8x32xf32, #tpu.memory_space<vmem>>) attributes {dimension_semantics = [#tpu.dimension_semantics<parallel>], iteration_bounds = array<i64: 2>, scalar_prefetch = 0 : i64, scratch_operands = 0 : i64, tpu.core_type = #tpu.core_type<tc>, window_params = [{transform_indices = @transform_0, window_bounds = array<i64: 1, 8, 32>}, {transform_indices = @transform_1, window_bounds = array<i64: 1, 16, 32>}, {transform_indices = @transform_2, window_bounds = array<i64: 1, 16, 32>}, {transform_indices = @transform_3, window_bounds = array<i64: 1, 8, 32>}, {pipeline_mode = #tpu.pipeline_mode<synchronous>, transform_indices = @transform_4, window_bounds = array<i64: 2, 32, 64>}, {pipeline_mode = #tpu.pipeline_mode<synchronous>, transform_indices = @transform_5, window_bounds = array<i64: 2, 1, 64>}, {pipeline_mode = #tpu.pipeline_mode<synchronous>, transform_indices = @transform_6, window_bounds = array<i64: 2, 32, 32>}, {pipeline_mode = #tpu.pipeline_mode<synchronous>, transform_indices = @transform_7, window_bounds = array<i64: 2, 1, 32>}, {pipeline_mode = #tpu.pipeline_mode<synchronous>, transform_indices = @transform_8, window_bounds = array<i64: 2, 32, 32>}, {pipeline_mode = #tpu.pipeline_mode<synchronous>, transform_indices = @transform_9, window_bounds = array<i64: 2, 1, 32>}, {pipeline_mode = #tpu.pipeline_mode<synchronous>, transform_indices = @transform_10, window_bounds = array<i64: 2, 32, 32>}, {pipeline_mode = #tpu.pipeline_mode<synchronous>, transform_indices = @transform_11, window_bounds = array<i64: 2, 1, 32>}, {pipeline_mode = #tpu.pipeline_mode<synchronous>, transform_indices = @transform_12, window_bounds = array<i64: 2, 32, 32>}, {pipeline_mode = #tpu.pipeline_mode<synchronous>, transform_indices = @transform_13, window_bounds = array<i64: 2, 1, 32>}, {pipeline_mode = #tpu.pipeline_mode<synchronous>, transform_indices = @transform_14, window_bounds = array<i64: 2, 32, 32>}, {pipeline_mode = #tpu.pipeline_mode<synchronous>, transform_indices = @transform_15, window_bounds = array<i64: 2, 1, 32>}, {pipeline_mode = #tpu.pipeline_mode<synchronous>, transform_indices = @transform_16, window_bounds = array<i64: 2, 32, 32>}, {pipeline_mode = #tpu.pipeline_mode<synchronous>, transform_indices = @transform_17, window_bounds = array<i64: 2, 1, 32>}, {pipeline_mode = #tpu.pipeline_mode<synchronous>, transform_indices = @transform_18, window_bounds = array<i64: 2, 32, 64>}, {pipeline_mode = #tpu.pipeline_mode<synchronous>, transform_indices = @transform_19, window_bounds = array<i64: 2, 1, 64>}, {pipeline_mode = #tpu.pipeline_mode<synchronous>, transform_indices = @transform_20, window_bounds = array<i64: 2, 64, 32>}, {pipeline_mode = #tpu.pipeline_mode<synchronous>, transform_indices = @transform_21, window_bounds = array<i64: 2, 1, 32>}, {pipeline_mode = #tpu.pipeline_mode<synchronous>, transform_indices = @transform_22, window_bounds = array<i64: 2, 1, 32>}, {pipeline_mode = #tpu.pipeline_mode<synchronous>, transform_indices = @transform_23, window_bounds = array<i64: 2, 1, 32>}, {pipeline_mode = #tpu.pipeline_mode<synchronous>, transform_indices = @transform_24, window_bounds = array<i64: 2, 1, 32>}, {pipeline_mode = #tpu.pipeline_mode<synchronous>, transform_indices = @transform_25, window_bounds = array<i64: 2, 1, 32>}, {pipeline_mode = #tpu.pipeline_mode<synchronous>, transform_indices = @transform_26, window_bounds = array<i64: 2, 1, 32>}, {pipeline_mode = #tpu.pipeline_mode<synchronous>, transform_indices = @transform_27, window_bounds = array<i64: 2, 1, 32>}, {pipeline_mode = #tpu.pipeline_mode<synchronous>, transform_indices = @transform_28, window_bounds = array<i64: 1, 32>}, {pipeline_mode = #tpu.pipeline_mode<synchronous>, transform_indices = @transform_29, window_bounds = array<i64: 1, 32>}, {transform_indices = @transform_30, window_bounds = array<i64: 1, 8, 32>}]} {
    %c0 = arith.constant 0 : index
    %c0_0 = arith.constant 0 : index
    %c0_1 = arith.constant 0 : index
    %0 = vector.load %arg1[%c0, %c0_0, %c0_1] : memref<1x8x32xf32, #tpu.memory_space<vmem>>, vector<1x8x32xf32>
    %1 = vector.shape_cast %0 : vector<1x8x32xf32> to vector<8x32xf32>
    %c0_2 = arith.constant 0 : index
    %c0_3 = arith.constant 0 : index
    %c0_4 = arith.constant 0 : index
    %2 = vector.load %arg2[%c0_2, %c0_3, %c0_4] : memref<1x16x32xf32, #tpu.memory_space<vmem>>, vector<1x16x32xf32>
    %3 = vector.shape_cast %2 : vector<1x16x32xf32> to vector<16x32xf32>
    %c0_5 = arith.constant 0 : index
    %c0_6 = arith.constant 0 : index
    %c0_7 = arith.constant 0 : index
    %4 = vector.load %arg3[%c0_5, %c0_6, %c0_7] : memref<1x16x32xf32, #tpu.memory_space<vmem>>, vector<1x16x32xf32>
    %5 = vector.shape_cast %4 : vector<1x16x32xf32> to vector<16x32xf32>
    %c0_8 = arith.constant 0 : index
    %c0_9 = arith.constant 0 : index
    %c0_10 = arith.constant 0 : index
    %6 = vector.load %arg4[%c0_8, %c0_9, %c0_10] : memref<1x8x32xf32, #tpu.memory_space<vmem>>, vector<1x8x32xf32>
    %7 = vector.shape_cast %6 : vector<1x8x32xf32> to vector<8x32xf32>
    %8 = arith.addf %1, %7 : vector<8x32xf32>
    %c0_11 = arith.constant 0 : index
    %c0_12 = arith.constant 0 : index
    %c0_13 = arith.constant 0 : index
    %9 = vector.load %arg5[%c0_11, %c0_12, %c0_13] : memref<2x32x64xf32, #tpu.memory_space<vmem>>, vector<1x32x64xf32>
    %10 = vector.shape_cast %9 : vector<1x32x64xf32> to vector<32x64xf32>
    %cst = arith.constant dense<0.000000e+00> : vector<8x64xf32>
    %11 = tpu.matmul %8, %10, %cst {dimension_numbers = #tpu.dot_dimension_numbers<[1], [0], [0], [1], [0, 0, 1, 1], [], []>} : vector<8x32xf32>, vector<32x64xf32>, vector<8x64xf32> -> vector<8x64xf32>
    %c0_14 = arith.constant 0 : index
    %c0_15 = arith.constant 0 : index
    %c0_16 = arith.constant 0 : index
    %12 = vector.load %arg6[%c0_14, %c0_15, %c0_16] : memref<2x1x64xf32, #tpu.memory_space<vmem>>, vector<1x1x64xf32>
    %13 = vector.shape_cast %12 : vector<1x1x64xf32> to vector<1x64xf32>
    %14 = vector.broadcast %13 : vector<1x64xf32> to vector<8x64xf32>
    %15 = arith.addf %11, %14 : vector<8x64xf32>
    %c0_17 = arith.constant 0 : index
    %c0_18 = arith.constant 0 : index
    %c0_19 = arith.constant 0 : index
    %16 = vector.load %arg7[%c0_17, %c0_18, %c0_19] : memref<2x32x32xf32, #tpu.memory_space<vmem>>, vector<1x32x32xf32>
    %17 = vector.shape_cast %16 : vector<1x32x32xf32> to vector<32x32xf32>
    %cst_20 = arith.constant dense<0.000000e+00> : vector<8x32xf32>
    %18 = tpu.matmul %1, %17, %cst_20 {dimension_numbers = #tpu.dot_dimension_numbers<[1], [0], [0], [1], [0, 0, 1, 1], [], []>} : vector<8x32xf32>, vector<32x32xf32>, vector<8x32xf32> -> vector<8x32xf32>
    %c0_21 = arith.constant 0 : index
    %c0_22 = arith.constant 0 : index
    %c0_23 = arith.constant 0 : index
    %19 = vector.load %arg8[%c0_21, %c0_22, %c0_23] : memref<2x1x32xf32, #tpu.memory_space<vmem>>, vector<1x1x32xf32>
    %20 = vector.shape_cast %19 : vector<1x1x32xf32> to vector<1x32xf32>
    %21 = vector.broadcast %20 : vector<1x32xf32> to vector<8x32xf32>
    %22 = arith.addf %18, %21 : vector<8x32xf32>
    %23 = vector.extract_strided_slice %15 {offsets = [0, 0], sizes = [8, 32], strides = [1, 1]} : vector<8x64xf32> to vector<8x32xf32>
    %24 = vector.extract_strided_slice %15 {offsets = [0, 32], sizes = [8, 32], strides = [1, 1]} : vector<8x64xf32> to vector<8x32xf32>
    %c0_24 = arith.constant 0 : index
    %c0_25 = arith.constant 0 : index
    %c0_26 = arith.constant 0 : index
    %25 = vector.load %arg9[%c0_24, %c0_25, %c0_26] : memref<2x32x32xf32, #tpu.memory_space<vmem>>, vector<1x32x32xf32>
    %26 = vector.shape_cast %25 : vector<1x32x32xf32> to vector<32x32xf32>
    %cst_27 = arith.constant 0.000000e+00 : f32
    %27 = vector.broadcast %cst_27 : f32 to vector<8x32xf32>
    %28 = vector.extract_strided_slice %23 {offsets = [0, 0], sizes = [8, 8], strides = [1, 1]} : vector<8x32xf32> to vector<8x8xf32>
    %29 = vector.extract_strided_slice %24 {offsets = [0, 0], sizes = [8, 8], strides = [1, 1]} : vector<8x32xf32> to vector<8x8xf32>
    %cst_28 = arith.constant dense<0.000000e+00> : vector<8x8xf32>
    %30 = tpu.matmul %28, %29, %cst_28 {dimension_numbers = #tpu.dot_dimension_numbers<[1], [1], [0], [0], [0, 0, 1, 0], [], []>} : vector<8x8xf32>, vector<8x8xf32>, vector<8x8xf32> -> vector<8x8xf32>
    %cst_29 = arith.constant dense<0xFF800000> : vector<8xf32>
    %31 = vector.multi_reduction <maximumf>, %30, %cst_29 [1] : vector<8x8xf32> to vector<8xf32>
    %32 = vector.shape_cast %31 : vector<8xf32> to vector<8x1xf32>
    %33 = vector.broadcast %32 : vector<8x1xf32> to vector<8x8xf32>
    %34 = arith.subf %30, %33 : vector<8x8xf32>
    %35 = math.exp %34 : vector<8x8xf32>
    %cst_30 = arith.constant dense<0.000000e+00> : vector<8xf32>
    %36 = vector.multi_reduction <add>, %35, %cst_30 [1] : vector<8x8xf32> to vector<8xf32>
    %37 = vector.shape_cast %36 : vector<8xf32> to vector<8x1xf32>
    %38 = tpu.reciprocal %37 {approx = true} : vector<8x1xf32> -> vector<8x1xf32>
    %39 = vector.broadcast %38 : vector<8x1xf32> to vector<8x8xf32>
    %40 = arith.mulf %35, %39 : vector<8x8xf32>
    %41 = vector.extract_strided_slice %22 {offsets = [0, 0], sizes = [8, 8], strides = [1, 1]} : vector<8x32xf32> to vector<8x8xf32>
    %cst_31 = arith.constant dense<0.000000e+00> : vector<8x8xf32>
    %42 = tpu.matmul %40, %41, %cst_31 {dimension_numbers = #tpu.dot_dimension_numbers<[1], [0], [0], [1], [0, 0, 1, 1], [], []>} : vector<8x8xf32>, vector<8x8xf32>, vector<8x8xf32> -> vector<8x8xf32>
    %43 = vector.extract_strided_slice %26 {offsets = [0, 0], sizes = [8, 32], strides = [1, 1]} : vector<32x32xf32> to vector<8x32xf32>
    %cst_32 = arith.constant dense<0.000000e+00> : vector<8x32xf32>
    %44 = tpu.matmul %42, %43, %cst_32 {dimension_numbers = #tpu.dot_dimension_numbers<[1], [0], [0], [1], [0, 0, 1, 1], [], []>} : vector<8x8xf32>, vector<8x32xf32>, vector<8x32xf32> -> vector<8x32xf32>
    %45 = arith.addf %27, %44 : vector<8x32xf32>
    %46 = vector.extract_strided_slice %23 {offsets = [0, 8], sizes = [8, 8], strides = [1, 1]} : vector<8x32xf32> to vector<8x8xf32>
    %47 = vector.extract_strided_slice %24 {offsets = [0, 8], sizes = [8, 8], strides = [1, 1]} : vector<8x32xf32> to vector<8x8xf32>
    %cst_33 = arith.constant dense<0.000000e+00> : vector<8x8xf32>
    %48 = tpu.matmul %46, %47, %cst_33 {dimension_numbers = #tpu.dot_dimension_numbers<[1], [1], [0], [0], [0, 0, 1, 0], [], []>} : vector<8x8xf32>, vector<8x8xf32>, vector<8x8xf32> -> vector<8x8xf32>
    %cst_34 = arith.constant dense<0xFF800000> : vector<8xf32>
    %49 = vector.multi_reduction <maximumf>, %48, %cst_34 [1] : vector<8x8xf32> to vector<8xf32>
    %50 = vector.shape_cast %49 : vector<8xf32> to vector<8x1xf32>
    %51 = vector.broadcast %50 : vector<8x1xf32> to vector<8x8xf32>
    %52 = arith.subf %48, %51 : vector<8x8xf32>
    %53 = math.exp %52 : vector<8x8xf32>
    %cst_35 = arith.constant dense<0.000000e+00> : vector<8xf32>
    %54 = vector.multi_reduction <add>, %53, %cst_35 [1] : vector<8x8xf32> to vector<8xf32>
    %55 = vector.shape_cast %54 : vector<8xf32> to vector<8x1xf32>
    %56 = tpu.reciprocal %55 {approx = true} : vector<8x1xf32> -> vector<8x1xf32>
    %57 = vector.broadcast %56 : vector<8x1xf32> to vector<8x8xf32>
    %58 = arith.mulf %53, %57 : vector<8x8xf32>
    %59 = vector.extract_strided_slice %22 {offsets = [0, 8], sizes = [8, 8], strides = [1, 1]} : vector<8x32xf32> to vector<8x8xf32>
    %cst_36 = arith.constant dense<0.000000e+00> : vector<8x8xf32>
    %60 = tpu.matmul %58, %59, %cst_36 {dimension_numbers = #tpu.dot_dimension_numbers<[1], [0], [0], [1], [0, 0, 1, 1], [], []>} : vector<8x8xf32>, vector<8x8xf32>, vector<8x8xf32> -> vector<8x8xf32>
    %61 = vector.extract_strided_slice %26 {offsets = [8, 0], sizes = [8, 32], strides = [1, 1]} : vector<32x32xf32> to vector<8x32xf32>
    %cst_37 = arith.constant dense<0.000000e+00> : vector<8x32xf32>
    %62 = tpu.matmul %60, %61, %cst_37 {dimension_numbers = #tpu.dot_dimension_numbers<[1], [0], [0], [1], [0, 0, 1, 1], [], []>} : vector<8x8xf32>, vector<8x32xf32>, vector<8x32xf32> -> vector<8x32xf32>
    %63 = arith.addf %45, %62 : vector<8x32xf32>
    %64 = vector.extract_strided_slice %23 {offsets = [0, 16], sizes = [8, 8], strides = [1, 1]} : vector<8x32xf32> to vector<8x8xf32>
    %65 = vector.extract_strided_slice %24 {offsets = [0, 16], sizes = [8, 8], strides = [1, 1]} : vector<8x32xf32> to vector<8x8xf32>
    %cst_38 = arith.constant dense<0.000000e+00> : vector<8x8xf32>
    %66 = tpu.matmul %64, %65, %cst_38 {dimension_numbers = #tpu.dot_dimension_numbers<[1], [1], [0], [0], [0, 0, 1, 0], [], []>} : vector<8x8xf32>, vector<8x8xf32>, vector<8x8xf32> -> vector<8x8xf32>
    %cst_39 = arith.constant dense<0xFF800000> : vector<8xf32>
    %67 = vector.multi_reduction <maximumf>, %66, %cst_39 [1] : vector<8x8xf32> to vector<8xf32>
    %68 = vector.shape_cast %67 : vector<8xf32> to vector<8x1xf32>
    %69 = vector.broadcast %68 : vector<8x1xf32> to vector<8x8xf32>
    %70 = arith.subf %66, %69 : vector<8x8xf32>
    %71 = math.exp %70 : vector<8x8xf32>
    %cst_40 = arith.constant dense<0.000000e+00> : vector<8xf32>
    %72 = vector.multi_reduction <add>, %71, %cst_40 [1] : vector<8x8xf32> to vector<8xf32>
    %73 = vector.shape_cast %72 : vector<8xf32> to vector<8x1xf32>
    %74 = tpu.reciprocal %73 {approx = true} : vector<8x1xf32> -> vector<8x1xf32>
    %75 = vector.broadcast %74 : vector<8x1xf32> to vector<8x8xf32>
    %76 = arith.mulf %71, %75 : vector<8x8xf32>
    %77 = vector.extract_strided_slice %22 {offsets = [0, 16], sizes = [8, 8], strides = [1, 1]} : vector<8x32xf32> to vector<8x8xf32>
    %cst_41 = arith.constant dense<0.000000e+00> : vector<8x8xf32>
    %78 = tpu.matmul %76, %77, %cst_41 {dimension_numbers = #tpu.dot_dimension_numbers<[1], [0], [0], [1], [0, 0, 1, 1], [], []>} : vector<8x8xf32>, vector<8x8xf32>, vector<8x8xf32> -> vector<8x8xf32>
    %79 = vector.extract_strided_slice %26 {offsets = [16, 0], sizes = [8, 32], strides = [1, 1]} : vector<32x32xf32> to vector<8x32xf32>
    %cst_42 = arith.constant dense<0.000000e+00> : vector<8x32xf32>
    %80 = tpu.matmul %78, %79, %cst_42 {dimension_numbers = #tpu.dot_dimension_numbers<[1], [0], [0], [1], [0, 0, 1, 1], [], []>} : vector<8x8xf32>, vector<8x32xf32>, vector<8x32xf32> -> vector<8x32xf32>
    %81 = arith.addf %63, %80 : vector<8x32xf32>
    %82 = vector.extract_strided_slice %23 {offsets = [0, 24], sizes = [8, 8], strides = [1, 1]} : vector<8x32xf32> to vector<8x8xf32>
    %83 = vector.extract_strided_slice %24 {offsets = [0, 24], sizes = [8, 8], strides = [1, 1]} : vector<8x32xf32> to vector<8x8xf32>
    %cst_43 = arith.constant dense<0.000000e+00> : vector<8x8xf32>
    %84 = tpu.matmul %82, %83, %cst_43 {dimension_numbers = #tpu.dot_dimension_numbers<[1], [1], [0], [0], [0, 0, 1, 0], [], []>} : vector<8x8xf32>, vector<8x8xf32>, vector<8x8xf32> -> vector<8x8xf32>
    %cst_44 = arith.constant dense<0xFF800000> : vector<8xf32>
    %85 = vector.multi_reduction <maximumf>, %84, %cst_44 [1] : vector<8x8xf32> to vector<8xf32>
    %86 = vector.shape_cast %85 : vector<8xf32> to vector<8x1xf32>
    %87 = vector.broadcast %86 : vector<8x1xf32> to vector<8x8xf32>
    %88 = arith.subf %84, %87 : vector<8x8xf32>
    %89 = math.exp %88 : vector<8x8xf32>
    %cst_45 = arith.constant dense<0.000000e+00> : vector<8xf32>
    %90 = vector.multi_reduction <add>, %89, %cst_45 [1] : vector<8x8xf32> to vector<8xf32>
    %91 = vector.shape_cast %90 : vector<8xf32> to vector<8x1xf32>
    %92 = tpu.reciprocal %91 {approx = true} : vector<8x1xf32> -> vector<8x1xf32>
    %93 = vector.broadcast %92 : vector<8x1xf32> to vector<8x8xf32>
    %94 = arith.mulf %89, %93 : vector<8x8xf32>
    %95 = vector.extract_strided_slice %22 {offsets = [0, 24], sizes = [8, 8], strides = [1, 1]} : vector<8x32xf32> to vector<8x8xf32>
    %cst_46 = arith.constant dense<0.000000e+00> : vector<8x8xf32>
    %96 = tpu.matmul %94, %95, %cst_46 {dimension_numbers = #tpu.dot_dimension_numbers<[1], [0], [0], [1], [0, 0, 1, 1], [], []>} : vector<8x8xf32>, vector<8x8xf32>, vector<8x8xf32> -> vector<8x8xf32>
    %97 = vector.extract_strided_slice %26 {offsets = [24, 0], sizes = [8, 32], strides = [1, 1]} : vector<32x32xf32> to vector<8x32xf32>
    %cst_47 = arith.constant dense<0.000000e+00> : vector<8x32xf32>
    %98 = tpu.matmul %96, %97, %cst_47 {dimension_numbers = #tpu.dot_dimension_numbers<[1], [0], [0], [1], [0, 0, 1, 1], [], []>} : vector<8x8xf32>, vector<8x32xf32>, vector<8x32xf32> -> vector<8x32xf32>
    %99 = arith.addf %81, %98 : vector<8x32xf32>
    %c0_48 = arith.constant 0 : index
    %c0_49 = arith.constant 0 : index
    %c0_50 = arith.constant 0 : index
    %100 = vector.load %arg10[%c0_48, %c0_49, %c0_50] : memref<2x1x32xf32, #tpu.memory_space<vmem>>, vector<1x1x32xf32>
    %101 = vector.shape_cast %100 : vector<1x1x32xf32> to vector<1x32xf32>
    %102 = vector.broadcast %101 : vector<1x32xf32> to vector<8x32xf32>
    %103 = arith.addf %99, %102 : vector<8x32xf32>
    %104 = arith.addf %1, %103 : vector<8x32xf32>
    %c0_51 = arith.constant 0 : index
    %c0_52 = arith.constant 0 : index
    %c0_53 = arith.constant 0 : index
    %105 = vector.load %arg23[%c0_51, %c0_52, %c0_53] : memref<2x1x32xf32, #tpu.memory_space<vmem>>, vector<1x1x32xf32>
    %106 = vector.shape_cast %105 : vector<1x1x32xf32> to vector<1x32xf32>
    %c0_54 = arith.constant 0 : index
    %c0_55 = arith.constant 0 : index
    %c0_56 = arith.constant 0 : index
    %107 = vector.load %arg24[%c0_54, %c0_55, %c0_56] : memref<2x1x32xf32, #tpu.memory_space<vmem>>, vector<1x1x32xf32>
    %108 = vector.shape_cast %107 : vector<1x1x32xf32> to vector<1x32xf32>
    %cst_57 = arith.constant dense<0.000000e+00> : vector<8xf32>
    %109 = vector.multi_reduction <add>, %104, %cst_57 [1] : vector<8x32xf32> to vector<8xf32>
    %110 = vector.shape_cast %109 : vector<8xf32> to vector<8x1xf32>
    %cst_58 = arith.constant 3.200000e+01 : f32
    %111 = vector.broadcast %cst_58 : f32 to vector<8x1xf32>
    %112 = arith.divf %110, %111 : vector<8x1xf32>
    %113 = vector.broadcast %112 : vector<8x1xf32> to vector<8x32xf32>
    %114 = arith.subf %104, %113 : vector<8x32xf32>
    %115 = arith.mulf %114, %114 : vector<8x32xf32>
    %cst_59 = arith.constant dense<0.000000e+00> : vector<8xf32>
    %116 = vector.multi_reduction <add>, %115, %cst_59 [1] : vector<8x32xf32> to vector<8xf32>
    %117 = vector.shape_cast %116 : vector<8xf32> to vector<8x1xf32>
    %cst_60 = arith.constant 3.200000e+01 : f32
    %118 = vector.broadcast %cst_60 : f32 to vector<8x1xf32>
    %119 = arith.divf %117, %118 : vector<8x1xf32>
    %120 = vector.broadcast %112 : vector<8x1xf32> to vector<8x32xf32>
    %121 = arith.subf %104, %120 : vector<8x32xf32>
    %cst_61 = arith.constant 9.99999974E-6 : f32
    %122 = vector.broadcast %cst_61 : f32 to vector<8x1xf32>
    %123 = arith.addf %119, %122 : vector<8x1xf32>
    %124 = math.rsqrt %123 : vector<8x1xf32>
    %125 = vector.broadcast %124 : vector<8x1xf32> to vector<8x32xf32>
    %126 = arith.mulf %121, %125 : vector<8x32xf32>
    %127 = vector.broadcast %106 : vector<1x32xf32> to vector<8x32xf32>
    %128 = arith.mulf %126, %127 : vector<8x32xf32>
    %129 = vector.broadcast %108 : vector<1x32xf32> to vector<8x32xf32>
    %130 = arith.addf %128, %129 : vector<8x32xf32>
    %131 = arith.addf %130, %7 : vector<8x32xf32>
    %c0_62 = arith.constant 0 : index
    %c0_63 = arith.constant 0 : index
    %c0_64 = arith.constant 0 : index
    %132 = vector.load %arg11[%c0_62, %c0_63, %c0_64] : memref<2x32x32xf32, #tpu.memory_space<vmem>>, vector<1x32x32xf32>
    %133 = vector.shape_cast %132 : vector<1x32x32xf32> to vector<32x32xf32>
    %cst_65 = arith.constant dense<0.000000e+00> : vector<8x32xf32>
    %134 = tpu.matmul %131, %133, %cst_65 {dimension_numbers = #tpu.dot_dimension_numbers<[1], [0], [0], [1], [0, 0, 1, 1], [], []>} : vector<8x32xf32>, vector<32x32xf32>, vector<8x32xf32> -> vector<8x32xf32>
    %c0_66 = arith.constant 0 : index
    %c0_67 = arith.constant 0 : index
    %c0_68 = arith.constant 0 : index
    %135 = vector.load %arg12[%c0_66, %c0_67, %c0_68] : memref<2x1x32xf32, #tpu.memory_space<vmem>>, vector<1x1x32xf32>
    %136 = vector.shape_cast %135 : vector<1x1x32xf32> to vector<1x32xf32>
    %137 = vector.broadcast %136 : vector<1x32xf32> to vector<8x32xf32>
    %138 = arith.addf %134, %137 : vector<8x32xf32>
    %c0_69 = arith.constant 0 : index
    %c0_70 = arith.constant 0 : index
    %c0_71 = arith.constant 0 : index
    %139 = vector.load %arg13[%c0_69, %c0_70, %c0_71] : memref<2x32x32xf32, #tpu.memory_space<vmem>>, vector<1x32x32xf32>
    %140 = vector.shape_cast %139 : vector<1x32x32xf32> to vector<32x32xf32>
    %cst_72 = arith.constant dense<0.000000e+00> : vector<16x32xf32>
    %141 = tpu.matmul %3, %140, %cst_72 {dimension_numbers = #tpu.dot_dimension_numbers<[1], [0], [0], [1], [0, 0, 1, 1], [], []>} : vector<16x32xf32>, vector<32x32xf32>, vector<16x32xf32> -> vector<16x32xf32>
    %c0_73 = arith.constant 0 : index
    %c0_74 = arith.constant 0 : index
    %c0_75 = arith.constant 0 : index
    %142 = vector.load %arg14[%c0_73, %c0_74, %c0_75] : memref<2x1x32xf32, #tpu.memory_space<vmem>>, vector<1x1x32xf32>
    %143 = vector.shape_cast %142 : vector<1x1x32xf32> to vector<1x32xf32>
    %144 = vector.broadcast %143 : vector<1x32xf32> to vector<16x32xf32>
    %145 = arith.addf %141, %144 : vector<16x32xf32>
    %c0_76 = arith.constant 0 : index
    %c0_77 = arith.constant 0 : index
    %c0_78 = arith.constant 0 : index
    %146 = vector.load %arg15[%c0_76, %c0_77, %c0_78] : memref<2x32x32xf32, #tpu.memory_space<vmem>>, vector<1x32x32xf32>
    %147 = vector.shape_cast %146 : vector<1x32x32xf32> to vector<32x32xf32>
    %cst_79 = arith.constant dense<0.000000e+00> : vector<16x32xf32>
    %148 = tpu.matmul %5, %147, %cst_79 {dimension_numbers = #tpu.dot_dimension_numbers<[1], [0], [0], [1], [0, 0, 1, 1], [], []>} : vector<16x32xf32>, vector<32x32xf32>, vector<16x32xf32> -> vector<16x32xf32>
    %c0_80 = arith.constant 0 : index
    %c0_81 = arith.constant 0 : index
    %c0_82 = arith.constant 0 : index
    %149 = vector.load %arg16[%c0_80, %c0_81, %c0_82] : memref<2x1x32xf32, #tpu.memory_space<vmem>>, vector<1x1x32xf32>
    %150 = vector.shape_cast %149 : vector<1x1x32xf32> to vector<1x32xf32>
    %151 = vector.broadcast %150 : vector<1x32xf32> to vector<16x32xf32>
    %152 = arith.addf %148, %151 : vector<16x32xf32>
    %c0_83 = arith.constant 0 : index
    %c0_84 = arith.constant 0 : index
    %c0_85 = arith.constant 0 : index
    %153 = vector.load %arg17[%c0_83, %c0_84, %c0_85] : memref<2x32x32xf32, #tpu.memory_space<vmem>>, vector<1x32x32xf32>
    %154 = vector.shape_cast %153 : vector<1x32x32xf32> to vector<32x32xf32>
    %cst_86 = arith.constant 0.000000e+00 : f32
    %155 = vector.broadcast %cst_86 : f32 to vector<8x32xf32>
    %156 = vector.extract_strided_slice %138 {offsets = [0, 0], sizes = [8, 8], strides = [1, 1]} : vector<8x32xf32> to vector<8x8xf32>
    %157 = vector.extract_strided_slice %145 {offsets = [0, 0], sizes = [16, 8], strides = [1, 1]} : vector<16x32xf32> to vector<16x8xf32>
    %cst_87 = arith.constant dense<0.000000e+00> : vector<8x16xf32>
    %158 = tpu.matmul %156, %157, %cst_87 {dimension_numbers = #tpu.dot_dimension_numbers<[1], [1], [0], [0], [0, 0, 1, 0], [], []>} : vector<8x8xf32>, vector<16x8xf32>, vector<8x16xf32> -> vector<8x16xf32>
    %cst_88 = arith.constant dense<0xFF800000> : vector<8xf32>
    %159 = vector.multi_reduction <maximumf>, %158, %cst_88 [1] : vector<8x16xf32> to vector<8xf32>
    %160 = vector.shape_cast %159 : vector<8xf32> to vector<8x1xf32>
    %161 = vector.broadcast %160 : vector<8x1xf32> to vector<8x16xf32>
    %162 = arith.subf %158, %161 : vector<8x16xf32>
    %163 = math.exp %162 : vector<8x16xf32>
    %cst_89 = arith.constant dense<0.000000e+00> : vector<8xf32>
    %164 = vector.multi_reduction <add>, %163, %cst_89 [1] : vector<8x16xf32> to vector<8xf32>
    %165 = vector.shape_cast %164 : vector<8xf32> to vector<8x1xf32>
    %166 = tpu.reciprocal %165 {approx = true} : vector<8x1xf32> -> vector<8x1xf32>
    %167 = vector.broadcast %166 : vector<8x1xf32> to vector<8x16xf32>
    %168 = arith.mulf %163, %167 : vector<8x16xf32>
    %169 = vector.extract_strided_slice %152 {offsets = [0, 0], sizes = [16, 8], strides = [1, 1]} : vector<16x32xf32> to vector<16x8xf32>
    %cst_90 = arith.constant dense<0.000000e+00> : vector<8x8xf32>
    %170 = tpu.matmul %168, %169, %cst_90 {dimension_numbers = #tpu.dot_dimension_numbers<[1], [0], [0], [1], [0, 0, 1, 1], [], []>} : vector<8x16xf32>, vector<16x8xf32>, vector<8x8xf32> -> vector<8x8xf32>
    %171 = vector.extract_strided_slice %154 {offsets = [0, 0], sizes = [8, 32], strides = [1, 1]} : vector<32x32xf32> to vector<8x32xf32>
    %cst_91 = arith.constant dense<0.000000e+00> : vector<8x32xf32>
    %172 = tpu.matmul %170, %171, %cst_91 {dimension_numbers = #tpu.dot_dimension_numbers<[1], [0], [0], [1], [0, 0, 1, 1], [], []>} : vector<8x8xf32>, vector<8x32xf32>, vector<8x32xf32> -> vector<8x32xf32>
    %173 = arith.addf %155, %172 : vector<8x32xf32>
    %174 = vector.extract_strided_slice %138 {offsets = [0, 8], sizes = [8, 8], strides = [1, 1]} : vector<8x32xf32> to vector<8x8xf32>
    %175 = vector.extract_strided_slice %145 {offsets = [0, 8], sizes = [16, 8], strides = [1, 1]} : vector<16x32xf32> to vector<16x8xf32>
    %cst_92 = arith.constant dense<0.000000e+00> : vector<8x16xf32>
    %176 = tpu.matmul %174, %175, %cst_92 {dimension_numbers = #tpu.dot_dimension_numbers<[1], [1], [0], [0], [0, 0, 1, 0], [], []>} : vector<8x8xf32>, vector<16x8xf32>, vector<8x16xf32> -> vector<8x16xf32>
    %cst_93 = arith.constant dense<0xFF800000> : vector<8xf32>
    %177 = vector.multi_reduction <maximumf>, %176, %cst_93 [1] : vector<8x16xf32> to vector<8xf32>
    %178 = vector.shape_cast %177 : vector<8xf32> to vector<8x1xf32>
    %179 = vector.broadcast %178 : vector<8x1xf32> to vector<8x16xf32>
    %180 = arith.subf %176, %179 : vector<8x16xf32>
    %181 = math.exp %180 : vector<8x16xf32>
    %cst_94 = arith.constant dense<0.000000e+00> : vector<8xf32>
    %182 = vector.multi_reduction <add>, %181, %cst_94 [1] : vector<8x16xf32> to vector<8xf32>
    %183 = vector.shape_cast %182 : vector<8xf32> to vector<8x1xf32>
    %184 = tpu.reciprocal %183 {approx = true} : vector<8x1xf32> -> vector<8x1xf32>
    %185 = vector.broadcast %184 : vector<8x1xf32> to vector<8x16xf32>
    %186 = arith.mulf %181, %185 : vector<8x16xf32>
    %187 = vector.extract_strided_slice %152 {offsets = [0, 8], sizes = [16, 8], strides = [1, 1]} : vector<16x32xf32> to vector<16x8xf32>
    %cst_95 = arith.constant dense<0.000000e+00> : vector<8x8xf32>
    %188 = tpu.matmul %186, %187, %cst_95 {dimension_numbers = #tpu.dot_dimension_numbers<[1], [0], [0], [1], [0, 0, 1, 1], [], []>} : vector<8x16xf32>, vector<16x8xf32>, vector<8x8xf32> -> vector<8x8xf32>
    %189 = vector.extract_strided_slice %154 {offsets = [8, 0], sizes = [8, 32], strides = [1, 1]} : vector<32x32xf32> to vector<8x32xf32>
    %cst_96 = arith.constant dense<0.000000e+00> : vector<8x32xf32>
    %190 = tpu.matmul %188, %189, %cst_96 {dimension_numbers = #tpu.dot_dimension_numbers<[1], [0], [0], [1], [0, 0, 1, 1], [], []>} : vector<8x8xf32>, vector<8x32xf32>, vector<8x32xf32> -> vector<8x32xf32>
    %191 = arith.addf %173, %190 : vector<8x32xf32>
    %192 = vector.extract_strided_slice %138 {offsets = [0, 16], sizes = [8, 8], strides = [1, 1]} : vector<8x32xf32> to vector<8x8xf32>
    %193 = vector.extract_strided_slice %145 {offsets = [0, 16], sizes = [16, 8], strides = [1, 1]} : vector<16x32xf32> to vector<16x8xf32>
    %cst_97 = arith.constant dense<0.000000e+00> : vector<8x16xf32>
    %194 = tpu.matmul %192, %193, %cst_97 {dimension_numbers = #tpu.dot_dimension_numbers<[1], [1], [0], [0], [0, 0, 1, 0], [], []>} : vector<8x8xf32>, vector<16x8xf32>, vector<8x16xf32> -> vector<8x16xf32>
    %cst_98 = arith.constant dense<0xFF800000> : vector<8xf32>
    %195 = vector.multi_reduction <maximumf>, %194, %cst_98 [1] : vector<8x16xf32> to vector<8xf32>
    %196 = vector.shape_cast %195 : vector<8xf32> to vector<8x1xf32>
    %197 = vector.broadcast %196 : vector<8x1xf32> to vector<8x16xf32>
    %198 = arith.subf %194, %197 : vector<8x16xf32>
    %199 = math.exp %198 : vector<8x16xf32>
    %cst_99 = arith.constant dense<0.000000e+00> : vector<8xf32>
    %200 = vector.multi_reduction <add>, %199, %cst_99 [1] : vector<8x16xf32> to vector<8xf32>
    %201 = vector.shape_cast %200 : vector<8xf32> to vector<8x1xf32>
    %202 = tpu.reciprocal %201 {approx = true} : vector<8x1xf32> -> vector<8x1xf32>
    %203 = vector.broadcast %202 : vector<8x1xf32> to vector<8x16xf32>
    %204 = arith.mulf %199, %203 : vector<8x16xf32>
    %205 = vector.extract_strided_slice %152 {offsets = [0, 16], sizes = [16, 8], strides = [1, 1]} : vector<16x32xf32> to vector<16x8xf32>
    %cst_100 = arith.constant dense<0.000000e+00> : vector<8x8xf32>
    %206 = tpu.matmul %204, %205, %cst_100 {dimension_numbers = #tpu.dot_dimension_numbers<[1], [0], [0], [1], [0, 0, 1, 1], [], []>} : vector<8x16xf32>, vector<16x8xf32>, vector<8x8xf32> -> vector<8x8xf32>
    %207 = vector.extract_strided_slice %154 {offsets = [16, 0], sizes = [8, 32], strides = [1, 1]} : vector<32x32xf32> to vector<8x32xf32>
    %cst_101 = arith.constant dense<0.000000e+00> : vector<8x32xf32>
    %208 = tpu.matmul %206, %207, %cst_101 {dimension_numbers = #tpu.dot_dimension_numbers<[1], [0], [0], [1], [0, 0, 1, 1], [], []>} : vector<8x8xf32>, vector<8x32xf32>, vector<8x32xf32> -> vector<8x32xf32>
    %209 = arith.addf %191, %208 : vector<8x32xf32>
    %210 = vector.extract_strided_slice %138 {offsets = [0, 24], sizes = [8, 8], strides = [1, 1]} : vector<8x32xf32> to vector<8x8xf32>
    %211 = vector.extract_strided_slice %145 {offsets = [0, 24], sizes = [16, 8], strides = [1, 1]} : vector<16x32xf32> to vector<16x8xf32>
    %cst_102 = arith.constant dense<0.000000e+00> : vector<8x16xf32>
    %212 = tpu.matmul %210, %211, %cst_102 {dimension_numbers = #tpu.dot_dimension_numbers<[1], [1], [0], [0], [0, 0, 1, 0], [], []>} : vector<8x8xf32>, vector<16x8xf32>, vector<8x16xf32> -> vector<8x16xf32>
    %cst_103 = arith.constant dense<0xFF800000> : vector<8xf32>
    %213 = vector.multi_reduction <maximumf>, %212, %cst_103 [1] : vector<8x16xf32> to vector<8xf32>
    %214 = vector.shape_cast %213 : vector<8xf32> to vector<8x1xf32>
    %215 = vector.broadcast %214 : vector<8x1xf32> to vector<8x16xf32>
    %216 = arith.subf %212, %215 : vector<8x16xf32>
    %217 = math.exp %216 : vector<8x16xf32>
    %cst_104 = arith.constant dense<0.000000e+00> : vector<8xf32>
    %218 = vector.multi_reduction <add>, %217, %cst_104 [1] : vector<8x16xf32> to vector<8xf32>
    %219 = vector.shape_cast %218 : vector<8xf32> to vector<8x1xf32>
    %220 = tpu.reciprocal %219 {approx = true} : vector<8x1xf32> -> vector<8x1xf32>
    %221 = vector.broadcast %220 : vector<8x1xf32> to vector<8x16xf32>
    %222 = arith.mulf %217, %221 : vector<8x16xf32>
    %223 = vector.extract_strided_slice %152 {offsets = [0, 24], sizes = [16, 8], strides = [1, 1]} : vector<16x32xf32> to vector<16x8xf32>
    %cst_105 = arith.constant dense<0.000000e+00> : vector<8x8xf32>
    %224 = tpu.matmul %222, %223, %cst_105 {dimension_numbers = #tpu.dot_dimension_numbers<[1], [0], [0], [1], [0, 0, 1, 1], [], []>} : vector<8x16xf32>, vector<16x8xf32>, vector<8x8xf32> -> vector<8x8xf32>
    %225 = vector.extract_strided_slice %154 {offsets = [24, 0], sizes = [8, 32], strides = [1, 1]} : vector<32x32xf32> to vector<8x32xf32>
    %cst_106 = arith.constant dense<0.000000e+00> : vector<8x32xf32>
    %226 = tpu.matmul %224, %225, %cst_106 {dimension_numbers = #tpu.dot_dimension_numbers<[1], [0], [0], [1], [0, 0, 1, 1], [], []>} : vector<8x8xf32>, vector<8x32xf32>, vector<8x32xf32> -> vector<8x32xf32>
    %227 = arith.addf %209, %226 : vector<8x32xf32>
    %c0_107 = arith.constant 0 : index
    %c0_108 = arith.constant 0 : index
    %c0_109 = arith.constant 0 : index
    %228 = vector.load %arg18[%c0_107, %c0_108, %c0_109] : memref<2x1x32xf32, #tpu.memory_space<vmem>>, vector<1x1x32xf32>
    %229 = vector.shape_cast %228 : vector<1x1x32xf32> to vector<1x32xf32>
    %230 = vector.broadcast %229 : vector<1x32xf32> to vector<8x32xf32>
    %231 = arith.addf %227, %230 : vector<8x32xf32>
    %232 = arith.addf %130, %231 : vector<8x32xf32>
    %c0_110 = arith.constant 0 : index
    %c0_111 = arith.constant 0 : index
    %c0_112 = arith.constant 0 : index
    %233 = vector.load %arg25[%c0_110, %c0_111, %c0_112] : memref<2x1x32xf32, #tpu.memory_space<vmem>>, vector<1x1x32xf32>
    %234 = vector.shape_cast %233 : vector<1x1x32xf32> to vector<1x32xf32>
    %c0_113 = arith.constant 0 : index
    %c0_114 = arith.constant 0 : index
    %c0_115 = arith.constant 0 : index
    %235 = vector.load %arg26[%c0_113, %c0_114, %c0_115] : memref<2x1x32xf32, #tpu.memory_space<vmem>>, vector<1x1x32xf32>
    %236 = vector.shape_cast %235 : vector<1x1x32xf32> to vector<1x32xf32>
    %cst_116 = arith.constant dense<0.000000e+00> : vector<8xf32>
    %237 = vector.multi_reduction <add>, %232, %cst_116 [1] : vector<8x32xf32> to vector<8xf32>
    %238 = vector.shape_cast %237 : vector<8xf32> to vector<8x1xf32>
    %cst_117 = arith.constant 3.200000e+01 : f32
    %239 = vector.broadcast %cst_117 : f32 to vector<8x1xf32>
    %240 = arith.divf %238, %239 : vector<8x1xf32>
    %241 = vector.broadcast %240 : vector<8x1xf32> to vector<8x32xf32>
    %242 = arith.subf %232, %241 : vector<8x32xf32>
    %243 = arith.mulf %242, %242 : vector<8x32xf32>
    %cst_118 = arith.constant dense<0.000000e+00> : vector<8xf32>
    %244 = vector.multi_reduction <add>, %243, %cst_118 [1] : vector<8x32xf32> to vector<8xf32>
    %245 = vector.shape_cast %244 : vector<8xf32> to vector<8x1xf32>
    %cst_119 = arith.constant 3.200000e+01 : f32
    %246 = vector.broadcast %cst_119 : f32 to vector<8x1xf32>
    %247 = arith.divf %245, %246 : vector<8x1xf32>
    %248 = vector.broadcast %240 : vector<8x1xf32> to vector<8x32xf32>
    %249 = arith.subf %232, %248 : vector<8x32xf32>
    %cst_120 = arith.constant 9.99999974E-6 : f32
    %250 = vector.broadcast %cst_120 : f32 to vector<8x1xf32>
    %251 = arith.addf %247, %250 : vector<8x1xf32>
    %252 = math.rsqrt %251 : vector<8x1xf32>
    %253 = vector.broadcast %252 : vector<8x1xf32> to vector<8x32xf32>
    %254 = arith.mulf %249, %253 : vector<8x32xf32>
    %255 = vector.broadcast %234 : vector<1x32xf32> to vector<8x32xf32>
    %256 = arith.mulf %254, %255 : vector<8x32xf32>
    %257 = vector.broadcast %236 : vector<1x32xf32> to vector<8x32xf32>
    %258 = arith.addf %256, %257 : vector<8x32xf32>
    %c0_121 = arith.constant 0 : index
    %c0_122 = arith.constant 0 : index
    %c0_123 = arith.constant 0 : index
    %259 = vector.load %arg19[%c0_121, %c0_122, %c0_123] : memref<2x32x64xf32, #tpu.memory_space<vmem>>, vector<1x32x64xf32>
    %260 = vector.shape_cast %259 : vector<1x32x64xf32> to vector<32x64xf32>
    %cst_124 = arith.constant dense<0.000000e+00> : vector<8x64xf32>
    %261 = tpu.matmul %258, %260, %cst_124 {dimension_numbers = #tpu.dot_dimension_numbers<[1], [0], [0], [1], [0, 0, 1, 1], [], []>} : vector<8x32xf32>, vector<32x64xf32>, vector<8x64xf32> -> vector<8x64xf32>
    %c0_125 = arith.constant 0 : index
    %c0_126 = arith.constant 0 : index
    %c0_127 = arith.constant 0 : index
    %262 = vector.load %arg20[%c0_125, %c0_126, %c0_127] : memref<2x1x64xf32, #tpu.memory_space<vmem>>, vector<1x1x64xf32>
    %263 = vector.shape_cast %262 : vector<1x1x64xf32> to vector<1x64xf32>
    %264 = vector.broadcast %263 : vector<1x64xf32> to vector<8x64xf32>
    %265 = arith.addf %261, %264 : vector<8x64xf32>
    %cst_128 = arith.constant 0.000000e+00 : f32
    %266 = vector.broadcast %cst_128 : f32 to vector<8x64xf32>
    %267 = arith.maximumf %265, %266 : vector<8x64xf32>
    %c0_129 = arith.constant 0 : index
    %c0_130 = arith.constant 0 : index
    %c0_131 = arith.constant 0 : index
    %268 = vector.load %arg21[%c0_129, %c0_130, %c0_131] : memref<2x64x32xf32, #tpu.memory_space<vmem>>, vector<1x64x32xf32>
    %269 = vector.shape_cast %268 : vector<1x64x32xf32> to vector<64x32xf32>
    %cst_132 = arith.constant dense<0.000000e+00> : vector<8x32xf32>
    %270 = tpu.matmul %267, %269, %cst_132 {dimension_numbers = #tpu.dot_dimension_numbers<[1], [0], [0], [1], [0, 0, 1, 1], [], []>} : vector<8x64xf32>, vector<64x32xf32>, vector<8x32xf32> -> vector<8x32xf32>
    %c0_133 = arith.constant 0 : index
    %c0_134 = arith.constant 0 : index
    %c0_135 = arith.constant 0 : index
    %271 = vector.load %arg22[%c0_133, %c0_134, %c0_135] : memref<2x1x32xf32, #tpu.memory_space<vmem>>, vector<1x1x32xf32>
    %272 = vector.shape_cast %271 : vector<1x1x32xf32> to vector<1x32xf32>
    %273 = vector.broadcast %272 : vector<1x32xf32> to vector<8x32xf32>
    %274 = arith.addf %270, %273 : vector<8x32xf32>
    %275 = arith.addf %258, %274 : vector<8x32xf32>
    %c0_136 = arith.constant 0 : index
    %c0_137 = arith.constant 0 : index
    %c0_138 = arith.constant 0 : index
    %276 = vector.load %arg27[%c0_136, %c0_137, %c0_138] : memref<2x1x32xf32, #tpu.memory_space<vmem>>, vector<1x1x32xf32>
    %277 = vector.shape_cast %276 : vector<1x1x32xf32> to vector<1x32xf32>
    %c0_139 = arith.constant 0 : index
    %c0_140 = arith.constant 0 : index
    %c0_141 = arith.constant 0 : index
    %278 = vector.load %arg28[%c0_139, %c0_140, %c0_141] : memref<2x1x32xf32, #tpu.memory_space<vmem>>, vector<1x1x32xf32>
    %279 = vector.shape_cast %278 : vector<1x1x32xf32> to vector<1x32xf32>
    %cst_142 = arith.constant dense<0.000000e+00> : vector<8xf32>
    %280 = vector.multi_reduction <add>, %275, %cst_142 [1] : vector<8x32xf32> to vector<8xf32>
    %281 = vector.shape_cast %280 : vector<8xf32> to vector<8x1xf32>
    %cst_143 = arith.constant 3.200000e+01 : f32
    %282 = vector.broadcast %cst_143 : f32 to vector<8x1xf32>
    %283 = arith.divf %281, %282 : vector<8x1xf32>
    %284 = vector.broadcast %283 : vector<8x1xf32> to vector<8x32xf32>
    %285 = arith.subf %275, %284 : vector<8x32xf32>
    %286 = arith.mulf %285, %285 : vector<8x32xf32>
    %cst_144 = arith.constant dense<0.000000e+00> : vector<8xf32>
    %287 = vector.multi_reduction <add>, %286, %cst_144 [1] : vector<8x32xf32> to vector<8xf32>
    %288 = vector.shape_cast %287 : vector<8xf32> to vector<8x1xf32>
    %cst_145 = arith.constant 3.200000e+01 : f32
    %289 = vector.broadcast %cst_145 : f32 to vector<8x1xf32>
    %290 = arith.divf %288, %289 : vector<8x1xf32>
    %291 = vector.broadcast %283 : vector<8x1xf32> to vector<8x32xf32>
    %292 = arith.subf %275, %291 : vector<8x32xf32>
    %cst_146 = arith.constant 9.99999974E-6 : f32
    %293 = vector.broadcast %cst_146 : f32 to vector<8x1xf32>
    %294 = arith.addf %290, %293 : vector<8x1xf32>
    %295 = math.rsqrt %294 : vector<8x1xf32>
    %296 = vector.broadcast %295 : vector<8x1xf32> to vector<8x32xf32>
    %297 = arith.mulf %292, %296 : vector<8x32xf32>
    %298 = vector.broadcast %277 : vector<1x32xf32> to vector<8x32xf32>
    %299 = arith.mulf %297, %298 : vector<8x32xf32>
    %300 = vector.broadcast %279 : vector<1x32xf32> to vector<8x32xf32>
    %301 = arith.addf %299, %300 : vector<8x32xf32>
    %302 = arith.addf %301, %7 : vector<8x32xf32>
    %c1 = arith.constant 1 : index
    %c0_147 = arith.constant 0 : index
    %c0_148 = arith.constant 0 : index
    %303 = vector.load %arg5[%c1, %c0_147, %c0_148] : memref<2x32x64xf32, #tpu.memory_space<vmem>>, vector<1x32x64xf32>
    %304 = vector.shape_cast %303 : vector<1x32x64xf32> to vector<32x64xf32>
    %cst_149 = arith.constant dense<0.000000e+00> : vector<8x64xf32>
    %305 = tpu.matmul %302, %304, %cst_149 {dimension_numbers = #tpu.dot_dimension_numbers<[1], [0], [0], [1], [0, 0, 1, 1], [], []>} : vector<8x32xf32>, vector<32x64xf32>, vector<8x64xf32> -> vector<8x64xf32>
    %c1_150 = arith.constant 1 : index
    %c0_151 = arith.constant 0 : index
    %c0_152 = arith.constant 0 : index
    %306 = vector.load %arg6[%c1_150, %c0_151, %c0_152] : memref<2x1x64xf32, #tpu.memory_space<vmem>>, vector<1x1x64xf32>
    %307 = vector.shape_cast %306 : vector<1x1x64xf32> to vector<1x64xf32>
    %308 = vector.broadcast %307 : vector<1x64xf32> to vector<8x64xf32>
    %309 = arith.addf %305, %308 : vector<8x64xf32>
    %c1_153 = arith.constant 1 : index
    %c0_154 = arith.constant 0 : index
    %c0_155 = arith.constant 0 : index
    %310 = vector.load %arg7[%c1_153, %c0_154, %c0_155] : memref<2x32x32xf32, #tpu.memory_space<vmem>>, vector<1x32x32xf32>
    %311 = vector.shape_cast %310 : vector<1x32x32xf32> to vector<32x32xf32>
    %cst_156 = arith.constant dense<0.000000e+00> : vector<8x32xf32>
    %312 = tpu.matmul %301, %311, %cst_156 {dimension_numbers = #tpu.dot_dimension_numbers<[1], [0], [0], [1], [0, 0, 1, 1], [], []>} : vector<8x32xf32>, vector<32x32xf32>, vector<8x32xf32> -> vector<8x32xf32>
    %c1_157 = arith.constant 1 : index
    %c0_158 = arith.constant 0 : index
    %c0_159 = arith.constant 0 : index
    %313 = vector.load %arg8[%c1_157, %c0_158, %c0_159] : memref<2x1x32xf32, #tpu.memory_space<vmem>>, vector<1x1x32xf32>
    %314 = vector.shape_cast %313 : vector<1x1x32xf32> to vector<1x32xf32>
    %315 = vector.broadcast %314 : vector<1x32xf32> to vector<8x32xf32>
    %316 = arith.addf %312, %315 : vector<8x32xf32>
    %317 = vector.extract_strided_slice %309 {offsets = [0, 0], sizes = [8, 32], strides = [1, 1]} : vector<8x64xf32> to vector<8x32xf32>
    %318 = vector.extract_strided_slice %309 {offsets = [0, 32], sizes = [8, 32], strides = [1, 1]} : vector<8x64xf32> to vector<8x32xf32>
    %c1_160 = arith.constant 1 : index
    %c0_161 = arith.constant 0 : index
    %c0_162 = arith.constant 0 : index
    %319 = vector.load %arg9[%c1_160, %c0_161, %c0_162] : memref<2x32x32xf32, #tpu.memory_space<vmem>>, vector<1x32x32xf32>
    %320 = vector.shape_cast %319 : vector<1x32x32xf32> to vector<32x32xf32>
    %cst_163 = arith.constant 0.000000e+00 : f32
    %321 = vector.broadcast %cst_163 : f32 to vector<8x32xf32>
    %322 = vector.extract_strided_slice %317 {offsets = [0, 0], sizes = [8, 8], strides = [1, 1]} : vector<8x32xf32> to vector<8x8xf32>
    %323 = vector.extract_strided_slice %318 {offsets = [0, 0], sizes = [8, 8], strides = [1, 1]} : vector<8x32xf32> to vector<8x8xf32>
    %cst_164 = arith.constant dense<0.000000e+00> : vector<8x8xf32>
    %324 = tpu.matmul %322, %323, %cst_164 {dimension_numbers = #tpu.dot_dimension_numbers<[1], [1], [0], [0], [0, 0, 1, 0], [], []>} : vector<8x8xf32>, vector<8x8xf32>, vector<8x8xf32> -> vector<8x8xf32>
    %cst_165 = arith.constant dense<0xFF800000> : vector<8xf32>
    %325 = vector.multi_reduction <maximumf>, %324, %cst_165 [1] : vector<8x8xf32> to vector<8xf32>
    %326 = vector.shape_cast %325 : vector<8xf32> to vector<8x1xf32>
    %327 = vector.broadcast %326 : vector<8x1xf32> to vector<8x8xf32>
    %328 = arith.subf %324, %327 : vector<8x8xf32>
    %329 = math.exp %328 : vector<8x8xf32>
    %cst_166 = arith.constant dense<0.000000e+00> : vector<8xf32>
    %330 = vector.multi_reduction <add>, %329, %cst_166 [1] : vector<8x8xf32> to vector<8xf32>
    %331 = vector.shape_cast %330 : vector<8xf32> to vector<8x1xf32>
    %332 = tpu.reciprocal %331 {approx = true} : vector<8x1xf32> -> vector<8x1xf32>
    %333 = vector.broadcast %332 : vector<8x1xf32> to vector<8x8xf32>
    %334 = arith.mulf %329, %333 : vector<8x8xf32>
    %335 = vector.extract_strided_slice %316 {offsets = [0, 0], sizes = [8, 8], strides = [1, 1]} : vector<8x32xf32> to vector<8x8xf32>
    %cst_167 = arith.constant dense<0.000000e+00> : vector<8x8xf32>
    %336 = tpu.matmul %334, %335, %cst_167 {dimension_numbers = #tpu.dot_dimension_numbers<[1], [0], [0], [1], [0, 0, 1, 1], [], []>} : vector<8x8xf32>, vector<8x8xf32>, vector<8x8xf32> -> vector<8x8xf32>
    %337 = vector.extract_strided_slice %320 {offsets = [0, 0], sizes = [8, 32], strides = [1, 1]} : vector<32x32xf32> to vector<8x32xf32>
    %cst_168 = arith.constant dense<0.000000e+00> : vector<8x32xf32>
    %338 = tpu.matmul %336, %337, %cst_168 {dimension_numbers = #tpu.dot_dimension_numbers<[1], [0], [0], [1], [0, 0, 1, 1], [], []>} : vector<8x8xf32>, vector<8x32xf32>, vector<8x32xf32> -> vector<8x32xf32>
    %339 = arith.addf %321, %338 : vector<8x32xf32>
    %340 = vector.extract_strided_slice %317 {offsets = [0, 8], sizes = [8, 8], strides = [1, 1]} : vector<8x32xf32> to vector<8x8xf32>
    %341 = vector.extract_strided_slice %318 {offsets = [0, 8], sizes = [8, 8], strides = [1, 1]} : vector<8x32xf32> to vector<8x8xf32>
    %cst_169 = arith.constant dense<0.000000e+00> : vector<8x8xf32>
    %342 = tpu.matmul %340, %341, %cst_169 {dimension_numbers = #tpu.dot_dimension_numbers<[1], [1], [0], [0], [0, 0, 1, 0], [], []>} : vector<8x8xf32>, vector<8x8xf32>, vector<8x8xf32> -> vector<8x8xf32>
    %cst_170 = arith.constant dense<0xFF800000> : vector<8xf32>
    %343 = vector.multi_reduction <maximumf>, %342, %cst_170 [1] : vector<8x8xf32> to vector<8xf32>
    %344 = vector.shape_cast %343 : vector<8xf32> to vector<8x1xf32>
    %345 = vector.broadcast %344 : vector<8x1xf32> to vector<8x8xf32>
    %346 = arith.subf %342, %345 : vector<8x8xf32>
    %347 = math.exp %346 : vector<8x8xf32>
    %cst_171 = arith.constant dense<0.000000e+00> : vector<8xf32>
    %348 = vector.multi_reduction <add>, %347, %cst_171 [1] : vector<8x8xf32> to vector<8xf32>
    %349 = vector.shape_cast %348 : vector<8xf32> to vector<8x1xf32>
    %350 = tpu.reciprocal %349 {approx = true} : vector<8x1xf32> -> vector<8x1xf32>
    %351 = vector.broadcast %350 : vector<8x1xf32> to vector<8x8xf32>
    %352 = arith.mulf %347, %351 : vector<8x8xf32>
    %353 = vector.extract_strided_slice %316 {offsets = [0, 8], sizes = [8, 8], strides = [1, 1]} : vector<8x32xf32> to vector<8x8xf32>
    %cst_172 = arith.constant dense<0.000000e+00> : vector<8x8xf32>
    %354 = tpu.matmul %352, %353, %cst_172 {dimension_numbers = #tpu.dot_dimension_numbers<[1], [0], [0], [1], [0, 0, 1, 1], [], []>} : vector<8x8xf32>, vector<8x8xf32>, vector<8x8xf32> -> vector<8x8xf32>
    %355 = vector.extract_strided_slice %320 {offsets = [8, 0], sizes = [8, 32], strides = [1, 1]} : vector<32x32xf32> to vector<8x32xf32>
    %cst_173 = arith.constant dense<0.000000e+00> : vector<8x32xf32>
    %356 = tpu.matmul %354, %355, %cst_173 {dimension_numbers = #tpu.dot_dimension_numbers<[1], [0], [0], [1], [0, 0, 1, 1], [], []>} : vector<8x8xf32>, vector<8x32xf32>, vector<8x32xf32> -> vector<8x32xf32>
    %357 = arith.addf %339, %356 : vector<8x32xf32>
    %358 = vector.extract_strided_slice %317 {offsets = [0, 16], sizes = [8, 8], strides = [1, 1]} : vector<8x32xf32> to vector<8x8xf32>
    %359 = vector.extract_strided_slice %318 {offsets = [0, 16], sizes = [8, 8], strides = [1, 1]} : vector<8x32xf32> to vector<8x8xf32>
    %cst_174 = arith.constant dense<0.000000e+00> : vector<8x8xf32>
    %360 = tpu.matmul %358, %359, %cst_174 {dimension_numbers = #tpu.dot_dimension_numbers<[1], [1], [0], [0], [0, 0, 1, 0], [], []>} : vector<8x8xf32>, vector<8x8xf32>, vector<8x8xf32> -> vector<8x8xf32>
    %cst_175 = arith.constant dense<0xFF800000> : vector<8xf32>
    %361 = vector.multi_reduction <maximumf>, %360, %cst_175 [1] : vector<8x8xf32> to vector<8xf32>
    %362 = vector.shape_cast %361 : vector<8xf32> to vector<8x1xf32>
    %363 = vector.broadcast %362 : vector<8x1xf32> to vector<8x8xf32>
    %364 = arith.subf %360, %363 : vector<8x8xf32>
    %365 = math.exp %364 : vector<8x8xf32>
    %cst_176 = arith.constant dense<0.000000e+00> : vector<8xf32>
    %366 = vector.multi_reduction <add>, %365, %cst_176 [1] : vector<8x8xf32> to vector<8xf32>
    %367 = vector.shape_cast %366 : vector<8xf32> to vector<8x1xf32>
    %368 = tpu.reciprocal %367 {approx = true} : vector<8x1xf32> -> vector<8x1xf32>
    %369 = vector.broadcast %368 : vector<8x1xf32> to vector<8x8xf32>
    %370 = arith.mulf %365, %369 : vector<8x8xf32>
    %371 = vector.extract_strided_slice %316 {offsets = [0, 16], sizes = [8, 8], strides = [1, 1]} : vector<8x32xf32> to vector<8x8xf32>
    %cst_177 = arith.constant dense<0.000000e+00> : vector<8x8xf32>
    %372 = tpu.matmul %370, %371, %cst_177 {dimension_numbers = #tpu.dot_dimension_numbers<[1], [0], [0], [1], [0, 0, 1, 1], [], []>} : vector<8x8xf32>, vector<8x8xf32>, vector<8x8xf32> -> vector<8x8xf32>
    %373 = vector.extract_strided_slice %320 {offsets = [16, 0], sizes = [8, 32], strides = [1, 1]} : vector<32x32xf32> to vector<8x32xf32>
    %cst_178 = arith.constant dense<0.000000e+00> : vector<8x32xf32>
    %374 = tpu.matmul %372, %373, %cst_178 {dimension_numbers = #tpu.dot_dimension_numbers<[1], [0], [0], [1], [0, 0, 1, 1], [], []>} : vector<8x8xf32>, vector<8x32xf32>, vector<8x32xf32> -> vector<8x32xf32>
    %375 = arith.addf %357, %374 : vector<8x32xf32>
    %376 = vector.extract_strided_slice %317 {offsets = [0, 24], sizes = [8, 8], strides = [1, 1]} : vector<8x32xf32> to vector<8x8xf32>
    %377 = vector.extract_strided_slice %318 {offsets = [0, 24], sizes = [8, 8], strides = [1, 1]} : vector<8x32xf32> to vector<8x8xf32>
    %cst_179 = arith.constant dense<0.000000e+00> : vector<8x8xf32>
    %378 = tpu.matmul %376, %377, %cst_179 {dimension_numbers = #tpu.dot_dimension_numbers<[1], [1], [0], [0], [0, 0, 1, 0], [], []>} : vector<8x8xf32>, vector<8x8xf32>, vector<8x8xf32> -> vector<8x8xf32>
    %cst_180 = arith.constant dense<0xFF800000> : vector<8xf32>
    %379 = vector.multi_reduction <maximumf>, %378, %cst_180 [1] : vector<8x8xf32> to vector<8xf32>
    %380 = vector.shape_cast %379 : vector<8xf32> to vector<8x1xf32>
    %381 = vector.broadcast %380 : vector<8x1xf32> to vector<8x8xf32>
    %382 = arith.subf %378, %381 : vector<8x8xf32>
    %383 = math.exp %382 : vector<8x8xf32>
    %cst_181 = arith.constant dense<0.000000e+00> : vector<8xf32>
    %384 = vector.multi_reduction <add>, %383, %cst_181 [1] : vector<8x8xf32> to vector<8xf32>
    %385 = vector.shape_cast %384 : vector<8xf32> to vector<8x1xf32>
    %386 = tpu.reciprocal %385 {approx = true} : vector<8x1xf32> -> vector<8x1xf32>
    %387 = vector.broadcast %386 : vector<8x1xf32> to vector<8x8xf32>
    %388 = arith.mulf %383, %387 : vector<8x8xf32>
    %389 = vector.extract_strided_slice %316 {offsets = [0, 24], sizes = [8, 8], strides = [1, 1]} : vector<8x32xf32> to vector<8x8xf32>
    %cst_182 = arith.constant dense<0.000000e+00> : vector<8x8xf32>
    %390 = tpu.matmul %388, %389, %cst_182 {dimension_numbers = #tpu.dot_dimension_numbers<[1], [0], [0], [1], [0, 0, 1, 1], [], []>} : vector<8x8xf32>, vector<8x8xf32>, vector<8x8xf32> -> vector<8x8xf32>
    %391 = vector.extract_strided_slice %320 {offsets = [24, 0], sizes = [8, 32], strides = [1, 1]} : vector<32x32xf32> to vector<8x32xf32>
    %cst_183 = arith.constant dense<0.000000e+00> : vector<8x32xf32>
    %392 = tpu.matmul %390, %391, %cst_183 {dimension_numbers = #tpu.dot_dimension_numbers<[1], [0], [0], [1], [0, 0, 1, 1], [], []>} : vector<8x8xf32>, vector<8x32xf32>, vector<8x32xf32> -> vector<8x32xf32>
    %393 = arith.addf %375, %392 : vector<8x32xf32>
    %c1_184 = arith.constant 1 : index
    %c0_185 = arith.constant 0 : index
    %c0_186 = arith.constant 0 : index
    %394 = vector.load %arg10[%c1_184, %c0_185, %c0_186] : memref<2x1x32xf32, #tpu.memory_space<vmem>>, vector<1x1x32xf32>
    %395 = vector.shape_cast %394 : vector<1x1x32xf32> to vector<1x32xf32>
    %396 = vector.broadcast %395 : vector<1x32xf32> to vector<8x32xf32>
    %397 = arith.addf %393, %396 : vector<8x32xf32>
    %398 = arith.addf %301, %397 : vector<8x32xf32>
    %c1_187 = arith.constant 1 : index
    %c0_188 = arith.constant 0 : index
    %c0_189 = arith.constant 0 : index
    %399 = vector.load %arg23[%c1_187, %c0_188, %c0_189] : memref<2x1x32xf32, #tpu.memory_space<vmem>>, vector<1x1x32xf32>
    %400 = vector.shape_cast %399 : vector<1x1x32xf32> to vector<1x32xf32>
    %c1_190 = arith.constant 1 : index
    %c0_191 = arith.constant 0 : index
    %c0_192 = arith.constant 0 : index
    %401 = vector.load %arg24[%c1_190, %c0_191, %c0_192] : memref<2x1x32xf32, #tpu.memory_space<vmem>>, vector<1x1x32xf32>
    %402 = vector.shape_cast %401 : vector<1x1x32xf32> to vector<1x32xf32>
    %cst_193 = arith.constant dense<0.000000e+00> : vector<8xf32>
    %403 = vector.multi_reduction <add>, %398, %cst_193 [1] : vector<8x32xf32> to vector<8xf32>
    %404 = vector.shape_cast %403 : vector<8xf32> to vector<8x1xf32>
    %cst_194 = arith.constant 3.200000e+01 : f32
    %405 = vector.broadcast %cst_194 : f32 to vector<8x1xf32>
    %406 = arith.divf %404, %405 : vector<8x1xf32>
    %407 = vector.broadcast %406 : vector<8x1xf32> to vector<8x32xf32>
    %408 = arith.subf %398, %407 : vector<8x32xf32>
    %409 = arith.mulf %408, %408 : vector<8x32xf32>
    %cst_195 = arith.constant dense<0.000000e+00> : vector<8xf32>
    %410 = vector.multi_reduction <add>, %409, %cst_195 [1] : vector<8x32xf32> to vector<8xf32>
    %411 = vector.shape_cast %410 : vector<8xf32> to vector<8x1xf32>
    %cst_196 = arith.constant 3.200000e+01 : f32
    %412 = vector.broadcast %cst_196 : f32 to vector<8x1xf32>
    %413 = arith.divf %411, %412 : vector<8x1xf32>
    %414 = vector.broadcast %406 : vector<8x1xf32> to vector<8x32xf32>
    %415 = arith.subf %398, %414 : vector<8x32xf32>
    %cst_197 = arith.constant 9.99999974E-6 : f32
    %416 = vector.broadcast %cst_197 : f32 to vector<8x1xf32>
    %417 = arith.addf %413, %416 : vector<8x1xf32>
    %418 = math.rsqrt %417 : vector<8x1xf32>
    %419 = vector.broadcast %418 : vector<8x1xf32> to vector<8x32xf32>
    %420 = arith.mulf %415, %419 : vector<8x32xf32>
    %421 = vector.broadcast %400 : vector<1x32xf32> to vector<8x32xf32>
    %422 = arith.mulf %420, %421 : vector<8x32xf32>
    %423 = vector.broadcast %402 : vector<1x32xf32> to vector<8x32xf32>
    %424 = arith.addf %422, %423 : vector<8x32xf32>
    %425 = arith.addf %424, %7 : vector<8x32xf32>
    %c1_198 = arith.constant 1 : index
    %c0_199 = arith.constant 0 : index
    %c0_200 = arith.constant 0 : index
    %426 = vector.load %arg11[%c1_198, %c0_199, %c0_200] : memref<2x32x32xf32, #tpu.memory_space<vmem>>, vector<1x32x32xf32>
    %427 = vector.shape_cast %426 : vector<1x32x32xf32> to vector<32x32xf32>
    %cst_201 = arith.constant dense<0.000000e+00> : vector<8x32xf32>
    %428 = tpu.matmul %425, %427, %cst_201 {dimension_numbers = #tpu.dot_dimension_numbers<[1], [0], [0], [1], [0, 0, 1, 1], [], []>} : vector<8x32xf32>, vector<32x32xf32>, vector<8x32xf32> -> vector<8x32xf32>
    %c1_202 = arith.constant 1 : index
    %c0_203 = arith.constant 0 : index
    %c0_204 = arith.constant 0 : index
    %429 = vector.load %arg12[%c1_202, %c0_203, %c0_204] : memref<2x1x32xf32, #tpu.memory_space<vmem>>, vector<1x1x32xf32>
    %430 = vector.shape_cast %429 : vector<1x1x32xf32> to vector<1x32xf32>
    %431 = vector.broadcast %430 : vector<1x32xf32> to vector<8x32xf32>
    %432 = arith.addf %428, %431 : vector<8x32xf32>
    %c1_205 = arith.constant 1 : index
    %c0_206 = arith.constant 0 : index
    %c0_207 = arith.constant 0 : index
    %433 = vector.load %arg13[%c1_205, %c0_206, %c0_207] : memref<2x32x32xf32, #tpu.memory_space<vmem>>, vector<1x32x32xf32>
    %434 = vector.shape_cast %433 : vector<1x32x32xf32> to vector<32x32xf32>
    %cst_208 = arith.constant dense<0.000000e+00> : vector<16x32xf32>
    %435 = tpu.matmul %3, %434, %cst_208 {dimension_numbers = #tpu.dot_dimension_numbers<[1], [0], [0], [1], [0, 0, 1, 1], [], []>} : vector<16x32xf32>, vector<32x32xf32>, vector<16x32xf32> -> vector<16x32xf32>
    %c1_209 = arith.constant 1 : index
    %c0_210 = arith.constant 0 : index
    %c0_211 = arith.constant 0 : index
    %436 = vector.load %arg14[%c1_209, %c0_210, %c0_211] : memref<2x1x32xf32, #tpu.memory_space<vmem>>, vector<1x1x32xf32>
    %437 = vector.shape_cast %436 : vector<1x1x32xf32> to vector<1x32xf32>
    %438 = vector.broadcast %437 : vector<1x32xf32> to vector<16x32xf32>
    %439 = arith.addf %435, %438 : vector<16x32xf32>
    %c1_212 = arith.constant 1 : index
    %c0_213 = arith.constant 0 : index
    %c0_214 = arith.constant 0 : index
    %440 = vector.load %arg15[%c1_212, %c0_213, %c0_214] : memref<2x32x32xf32, #tpu.memory_space<vmem>>, vector<1x32x32xf32>
    %441 = vector.shape_cast %440 : vector<1x32x32xf32> to vector<32x32xf32>
    %cst_215 = arith.constant dense<0.000000e+00> : vector<16x32xf32>
    %442 = tpu.matmul %5, %441, %cst_215 {dimension_numbers = #tpu.dot_dimension_numbers<[1], [0], [0], [1], [0, 0, 1, 1], [], []>} : vector<16x32xf32>, vector<32x32xf32>, vector<16x32xf32> -> vector<16x32xf32>
    %c1_216 = arith.constant 1 : index
    %c0_217 = arith.constant 0 : index
    %c0_218 = arith.constant 0 : index
    %443 = vector.load %arg16[%c1_216, %c0_217, %c0_218] : memref<2x1x32xf32, #tpu.memory_space<vmem>>, vector<1x1x32xf32>
    %444 = vector.shape_cast %443 : vector<1x1x32xf32> to vector<1x32xf32>
    %445 = vector.broadcast %444 : vector<1x32xf32> to vector<16x32xf32>
    %446 = arith.addf %442, %445 : vector<16x32xf32>
    %c1_219 = arith.constant 1 : index
    %c0_220 = arith.constant 0 : index
    %c0_221 = arith.constant 0 : index
    %447 = vector.load %arg17[%c1_219, %c0_220, %c0_221] : memref<2x32x32xf32, #tpu.memory_space<vmem>>, vector<1x32x32xf32>
    %448 = vector.shape_cast %447 : vector<1x32x32xf32> to vector<32x32xf32>
    %cst_222 = arith.constant 0.000000e+00 : f32
    %449 = vector.broadcast %cst_222 : f32 to vector<8x32xf32>
    %450 = vector.extract_strided_slice %432 {offsets = [0, 0], sizes = [8, 8], strides = [1, 1]} : vector<8x32xf32> to vector<8x8xf32>
    %451 = vector.extract_strided_slice %439 {offsets = [0, 0], sizes = [16, 8], strides = [1, 1]} : vector<16x32xf32> to vector<16x8xf32>
    %cst_223 = arith.constant dense<0.000000e+00> : vector<8x16xf32>
    %452 = tpu.matmul %450, %451, %cst_223 {dimension_numbers = #tpu.dot_dimension_numbers<[1], [1], [0], [0], [0, 0, 1, 0], [], []>} : vector<8x8xf32>, vector<16x8xf32>, vector<8x16xf32> -> vector<8x16xf32>
    %cst_224 = arith.constant dense<0xFF800000> : vector<8xf32>
    %453 = vector.multi_reduction <maximumf>, %452, %cst_224 [1] : vector<8x16xf32> to vector<8xf32>
    %454 = vector.shape_cast %453 : vector<8xf32> to vector<8x1xf32>
    %455 = vector.broadcast %454 : vector<8x1xf32> to vector<8x16xf32>
    %456 = arith.subf %452, %455 : vector<8x16xf32>
    %457 = math.exp %456 : vector<8x16xf32>
    %cst_225 = arith.constant dense<0.000000e+00> : vector<8xf32>
    %458 = vector.multi_reduction <add>, %457, %cst_225 [1] : vector<8x16xf32> to vector<8xf32>
    %459 = vector.shape_cast %458 : vector<8xf32> to vector<8x1xf32>
    %460 = tpu.reciprocal %459 {approx = true} : vector<8x1xf32> -> vector<8x1xf32>
    %461 = vector.broadcast %460 : vector<8x1xf32> to vector<8x16xf32>
    %462 = arith.mulf %457, %461 : vector<8x16xf32>
    %463 = vector.extract_strided_slice %446 {offsets = [0, 0], sizes = [16, 8], strides = [1, 1]} : vector<16x32xf32> to vector<16x8xf32>
    %cst_226 = arith.constant dense<0.000000e+00> : vector<8x8xf32>
    %464 = tpu.matmul %462, %463, %cst_226 {dimension_numbers = #tpu.dot_dimension_numbers<[1], [0], [0], [1], [0, 0, 1, 1], [], []>} : vector<8x16xf32>, vector<16x8xf32>, vector<8x8xf32> -> vector<8x8xf32>
    %465 = vector.extract_strided_slice %448 {offsets = [0, 0], sizes = [8, 32], strides = [1, 1]} : vector<32x32xf32> to vector<8x32xf32>
    %cst_227 = arith.constant dense<0.000000e+00> : vector<8x32xf32>
    %466 = tpu.matmul %464, %465, %cst_227 {dimension_numbers = #tpu.dot_dimension_numbers<[1], [0], [0], [1], [0, 0, 1, 1], [], []>} : vector<8x8xf32>, vector<8x32xf32>, vector<8x32xf32> -> vector<8x32xf32>
    %467 = arith.addf %449, %466 : vector<8x32xf32>
    %468 = vector.extract_strided_slice %432 {offsets = [0, 8], sizes = [8, 8], strides = [1, 1]} : vector<8x32xf32> to vector<8x8xf32>
    %469 = vector.extract_strided_slice %439 {offsets = [0, 8], sizes = [16, 8], strides = [1, 1]} : vector<16x32xf32> to vector<16x8xf32>
    %cst_228 = arith.constant dense<0.000000e+00> : vector<8x16xf32>
    %470 = tpu.matmul %468, %469, %cst_228 {dimension_numbers = #tpu.dot_dimension_numbers<[1], [1], [0], [0], [0, 0, 1, 0], [], []>} : vector<8x8xf32>, vector<16x8xf32>, vector<8x16xf32> -> vector<8x16xf32>
    %cst_229 = arith.constant dense<0xFF800000> : vector<8xf32>
    %471 = vector.multi_reduction <maximumf>, %470, %cst_229 [1] : vector<8x16xf32> to vector<8xf32>
    %472 = vector.shape_cast %471 : vector<8xf32> to vector<8x1xf32>
    %473 = vector.broadcast %472 : vector<8x1xf32> to vector<8x16xf32>
    %474 = arith.subf %470, %473 : vector<8x16xf32>
    %475 = math.exp %474 : vector<8x16xf32>
    %cst_230 = arith.constant dense<0.000000e+00> : vector<8xf32>
    %476 = vector.multi_reduction <add>, %475, %cst_230 [1] : vector<8x16xf32> to vector<8xf32>
    %477 = vector.shape_cast %476 : vector<8xf32> to vector<8x1xf32>
    %478 = tpu.reciprocal %477 {approx = true} : vector<8x1xf32> -> vector<8x1xf32>
    %479 = vector.broadcast %478 : vector<8x1xf32> to vector<8x16xf32>
    %480 = arith.mulf %475, %479 : vector<8x16xf32>
    %481 = vector.extract_strided_slice %446 {offsets = [0, 8], sizes = [16, 8], strides = [1, 1]} : vector<16x32xf32> to vector<16x8xf32>
    %cst_231 = arith.constant dense<0.000000e+00> : vector<8x8xf32>
    %482 = tpu.matmul %480, %481, %cst_231 {dimension_numbers = #tpu.dot_dimension_numbers<[1], [0], [0], [1], [0, 0, 1, 1], [], []>} : vector<8x16xf32>, vector<16x8xf32>, vector<8x8xf32> -> vector<8x8xf32>
    %483 = vector.extract_strided_slice %448 {offsets = [8, 0], sizes = [8, 32], strides = [1, 1]} : vector<32x32xf32> to vector<8x32xf32>
    %cst_232 = arith.constant dense<0.000000e+00> : vector<8x32xf32>
    %484 = tpu.matmul %482, %483, %cst_232 {dimension_numbers = #tpu.dot_dimension_numbers<[1], [0], [0], [1], [0, 0, 1, 1], [], []>} : vector<8x8xf32>, vector<8x32xf32>, vector<8x32xf32> -> vector<8x32xf32>
    %485 = arith.addf %467, %484 : vector<8x32xf32>
    %486 = vector.extract_strided_slice %432 {offsets = [0, 16], sizes = [8, 8], strides = [1, 1]} : vector<8x32xf32> to vector<8x8xf32>
    %487 = vector.extract_strided_slice %439 {offsets = [0, 16], sizes = [16, 8], strides = [1, 1]} : vector<16x32xf32> to vector<16x8xf32>
    %cst_233 = arith.constant dense<0.000000e+00> : vector<8x16xf32>
    %488 = tpu.matmul %486, %487, %cst_233 {dimension_numbers = #tpu.dot_dimension_numbers<[1], [1], [0], [0], [0, 0, 1, 0], [], []>} : vector<8x8xf32>, vector<16x8xf32>, vector<8x16xf32> -> vector<8x16xf32>
    %cst_234 = arith.constant dense<0xFF800000> : vector<8xf32>
    %489 = vector.multi_reduction <maximumf>, %488, %cst_234 [1] : vector<8x16xf32> to vector<8xf32>
    %490 = vector.shape_cast %489 : vector<8xf32> to vector<8x1xf32>
    %491 = vector.broadcast %490 : vector<8x1xf32> to vector<8x16xf32>
    %492 = arith.subf %488, %491 : vector<8x16xf32>
    %493 = math.exp %492 : vector<8x16xf32>
    %cst_235 = arith.constant dense<0.000000e+00> : vector<8xf32>
    %494 = vector.multi_reduction <add>, %493, %cst_235 [1] : vector<8x16xf32> to vector<8xf32>
    %495 = vector.shape_cast %494 : vector<8xf32> to vector<8x1xf32>
    %496 = tpu.reciprocal %495 {approx = true} : vector<8x1xf32> -> vector<8x1xf32>
    %497 = vector.broadcast %496 : vector<8x1xf32> to vector<8x16xf32>
    %498 = arith.mulf %493, %497 : vector<8x16xf32>
    %499 = vector.extract_strided_slice %446 {offsets = [0, 16], sizes = [16, 8], strides = [1, 1]} : vector<16x32xf32> to vector<16x8xf32>
    %cst_236 = arith.constant dense<0.000000e+00> : vector<8x8xf32>
    %500 = tpu.matmul %498, %499, %cst_236 {dimension_numbers = #tpu.dot_dimension_numbers<[1], [0], [0], [1], [0, 0, 1, 1], [], []>} : vector<8x16xf32>, vector<16x8xf32>, vector<8x8xf32> -> vector<8x8xf32>
    %501 = vector.extract_strided_slice %448 {offsets = [16, 0], sizes = [8, 32], strides = [1, 1]} : vector<32x32xf32> to vector<8x32xf32>
    %cst_237 = arith.constant dense<0.000000e+00> : vector<8x32xf32>
    %502 = tpu.matmul %500, %501, %cst_237 {dimension_numbers = #tpu.dot_dimension_numbers<[1], [0], [0], [1], [0, 0, 1, 1], [], []>} : vector<8x8xf32>, vector<8x32xf32>, vector<8x32xf32> -> vector<8x32xf32>
    %503 = arith.addf %485, %502 : vector<8x32xf32>
    %504 = vector.extract_strided_slice %432 {offsets = [0, 24], sizes = [8, 8], strides = [1, 1]} : vector<8x32xf32> to vector<8x8xf32>
    %505 = vector.extract_strided_slice %439 {offsets = [0, 24], sizes = [16, 8], strides = [1, 1]} : vector<16x32xf32> to vector<16x8xf32>
    %cst_238 = arith.constant dense<0.000000e+00> : vector<8x16xf32>
    %506 = tpu.matmul %504, %505, %cst_238 {dimension_numbers = #tpu.dot_dimension_numbers<[1], [1], [0], [0], [0, 0, 1, 0], [], []>} : vector<8x8xf32>, vector<16x8xf32>, vector<8x16xf32> -> vector<8x16xf32>
    %cst_239 = arith.constant dense<0xFF800000> : vector<8xf32>
    %507 = vector.multi_reduction <maximumf>, %506, %cst_239 [1] : vector<8x16xf32> to vector<8xf32>
    %508 = vector.shape_cast %507 : vector<8xf32> to vector<8x1xf32>
    %509 = vector.broadcast %508 : vector<8x1xf32> to vector<8x16xf32>
    %510 = arith.subf %506, %509 : vector<8x16xf32>
    %511 = math.exp %510 : vector<8x16xf32>
    %cst_240 = arith.constant dense<0.000000e+00> : vector<8xf32>
    %512 = vector.multi_reduction <add>, %511, %cst_240 [1] : vector<8x16xf32> to vector<8xf32>
    %513 = vector.shape_cast %512 : vector<8xf32> to vector<8x1xf32>
    %514 = tpu.reciprocal %513 {approx = true} : vector<8x1xf32> -> vector<8x1xf32>
    %515 = vector.broadcast %514 : vector<8x1xf32> to vector<8x16xf32>
    %516 = arith.mulf %511, %515 : vector<8x16xf32>
    %517 = vector.extract_strided_slice %446 {offsets = [0, 24], sizes = [16, 8], strides = [1, 1]} : vector<16x32xf32> to vector<16x8xf32>
    %cst_241 = arith.constant dense<0.000000e+00> : vector<8x8xf32>
    %518 = tpu.matmul %516, %517, %cst_241 {dimension_numbers = #tpu.dot_dimension_numbers<[1], [0], [0], [1], [0, 0, 1, 1], [], []>} : vector<8x16xf32>, vector<16x8xf32>, vector<8x8xf32> -> vector<8x8xf32>
    %519 = vector.extract_strided_slice %448 {offsets = [24, 0], sizes = [8, 32], strides = [1, 1]} : vector<32x32xf32> to vector<8x32xf32>
    %cst_242 = arith.constant dense<0.000000e+00> : vector<8x32xf32>
    %520 = tpu.matmul %518, %519, %cst_242 {dimension_numbers = #tpu.dot_dimension_numbers<[1], [0], [0], [1], [0, 0, 1, 1], [], []>} : vector<8x8xf32>, vector<8x32xf32>, vector<8x32xf32> -> vector<8x32xf32>
    %521 = arith.addf %503, %520 : vector<8x32xf32>
    %c1_243 = arith.constant 1 : index
    %c0_244 = arith.constant 0 : index
    %c0_245 = arith.constant 0 : index
    %522 = vector.load %arg18[%c1_243, %c0_244, %c0_245] : memref<2x1x32xf32, #tpu.memory_space<vmem>>, vector<1x1x32xf32>
    %523 = vector.shape_cast %522 : vector<1x1x32xf32> to vector<1x32xf32>
    %524 = vector.broadcast %523 : vector<1x32xf32> to vector<8x32xf32>
    %525 = arith.addf %521, %524 : vector<8x32xf32>
    %526 = arith.addf %424, %525 : vector<8x32xf32>
    %c1_246 = arith.constant 1 : index
    %c0_247 = arith.constant 0 : index
    %c0_248 = arith.constant 0 : index
    %527 = vector.load %arg25[%c1_246, %c0_247, %c0_248] : memref<2x1x32xf32, #tpu.memory_space<vmem>>, vector<1x1x32xf32>
    %528 = vector.shape_cast %527 : vector<1x1x32xf32> to vector<1x32xf32>
    %c1_249 = arith.constant 1 : index
    %c0_250 = arith.constant 0 : index
    %c0_251 = arith.constant 0 : index
    %529 = vector.load %arg26[%c1_249, %c0_250, %c0_251] : memref<2x1x32xf32, #tpu.memory_space<vmem>>, vector<1x1x32xf32>
    %530 = vector.shape_cast %529 : vector<1x1x32xf32> to vector<1x32xf32>
    %cst_252 = arith.constant dense<0.000000e+00> : vector<8xf32>
    %531 = vector.multi_reduction <add>, %526, %cst_252 [1] : vector<8x32xf32> to vector<8xf32>
    %532 = vector.shape_cast %531 : vector<8xf32> to vector<8x1xf32>
    %cst_253 = arith.constant 3.200000e+01 : f32
    %533 = vector.broadcast %cst_253 : f32 to vector<8x1xf32>
    %534 = arith.divf %532, %533 : vector<8x1xf32>
    %535 = vector.broadcast %534 : vector<8x1xf32> to vector<8x32xf32>
    %536 = arith.subf %526, %535 : vector<8x32xf32>
    %537 = arith.mulf %536, %536 : vector<8x32xf32>
    %cst_254 = arith.constant dense<0.000000e+00> : vector<8xf32>
    %538 = vector.multi_reduction <add>, %537, %cst_254 [1] : vector<8x32xf32> to vector<8xf32>
    %539 = vector.shape_cast %538 : vector<8xf32> to vector<8x1xf32>
    %cst_255 = arith.constant 3.200000e+01 : f32
    %540 = vector.broadcast %cst_255 : f32 to vector<8x1xf32>
    %541 = arith.divf %539, %540 : vector<8x1xf32>
    %542 = vector.broadcast %534 : vector<8x1xf32> to vector<8x32xf32>
    %543 = arith.subf %526, %542 : vector<8x32xf32>
    %cst_256 = arith.constant 9.99999974E-6 : f32
    %544 = vector.broadcast %cst_256 : f32 to vector<8x1xf32>
    %545 = arith.addf %541, %544 : vector<8x1xf32>
    %546 = math.rsqrt %545 : vector<8x1xf32>
    %547 = vector.broadcast %546 : vector<8x1xf32> to vector<8x32xf32>
    %548 = arith.mulf %543, %547 : vector<8x32xf32>
    %549 = vector.broadcast %528 : vector<1x32xf32> to vector<8x32xf32>
    %550 = arith.mulf %548, %549 : vector<8x32xf32>
    %551 = vector.broadcast %530 : vector<1x32xf32> to vector<8x32xf32>
    %552 = arith.addf %550, %551 : vector<8x32xf32>
    %c1_257 = arith.constant 1 : index
    %c0_258 = arith.constant 0 : index
    %c0_259 = arith.constant 0 : index
    %553 = vector.load %arg19[%c1_257, %c0_258, %c0_259] : memref<2x32x64xf32, #tpu.memory_space<vmem>>, vector<1x32x64xf32>
    %554 = vector.shape_cast %553 : vector<1x32x64xf32> to vector<32x64xf32>
    %cst_260 = arith.constant dense<0.000000e+00> : vector<8x64xf32>
    %555 = tpu.matmul %552, %554, %cst_260 {dimension_numbers = #tpu.dot_dimension_numbers<[1], [0], [0], [1], [0, 0, 1, 1], [], []>} : vector<8x32xf32>, vector<32x64xf32>, vector<8x64xf32> -> vector<8x64xf32>
    %c1_261 = arith.constant 1 : index
    %c0_262 = arith.constant 0 : index
    %c0_263 = arith.constant 0 : index
    %556 = vector.load %arg20[%c1_261, %c0_262, %c0_263] : memref<2x1x64xf32, #tpu.memory_space<vmem>>, vector<1x1x64xf32>
    %557 = vector.shape_cast %556 : vector<1x1x64xf32> to vector<1x64xf32>
    %558 = vector.broadcast %557 : vector<1x64xf32> to vector<8x64xf32>
    %559 = arith.addf %555, %558 : vector<8x64xf32>
    %cst_264 = arith.constant 0.000000e+00 : f32
    %560 = vector.broadcast %cst_264 : f32 to vector<8x64xf32>
    %561 = arith.maximumf %559, %560 : vector<8x64xf32>
    %c1_265 = arith.constant 1 : index
    %c0_266 = arith.constant 0 : index
    %c0_267 = arith.constant 0 : index
    %562 = vector.load %arg21[%c1_265, %c0_266, %c0_267] : memref<2x64x32xf32, #tpu.memory_space<vmem>>, vector<1x64x32xf32>
    %563 = vector.shape_cast %562 : vector<1x64x32xf32> to vector<64x32xf32>
    %cst_268 = arith.constant dense<0.000000e+00> : vector<8x32xf32>
    %564 = tpu.matmul %561, %563, %cst_268 {dimension_numbers = #tpu.dot_dimension_numbers<[1], [0], [0], [1], [0, 0, 1, 1], [], []>} : vector<8x64xf32>, vector<64x32xf32>, vector<8x32xf32> -> vector<8x32xf32>
    %c1_269 = arith.constant 1 : index
    %c0_270 = arith.constant 0 : index
    %c0_271 = arith.constant 0 : index
    %565 = vector.load %arg22[%c1_269, %c0_270, %c0_271] : memref<2x1x32xf32, #tpu.memory_space<vmem>>, vector<1x1x32xf32>
    %566 = vector.shape_cast %565 : vector<1x1x32xf32> to vector<1x32xf32>
    %567 = vector.broadcast %566 : vector<1x32xf32> to vector<8x32xf32>
    %568 = arith.addf %564, %567 : vector<8x32xf32>
    %569 = arith.addf %552, %568 : vector<8x32xf32>
    %c1_272 = arith.constant 1 : index
    %c0_273 = arith.constant 0 : index
    %c0_274 = arith.constant 0 : index
    %570 = vector.load %arg27[%c1_272, %c0_273, %c0_274] : memref<2x1x32xf32, #tpu.memory_space<vmem>>, vector<1x1x32xf32>
    %571 = vector.shape_cast %570 : vector<1x1x32xf32> to vector<1x32xf32>
    %c1_275 = arith.constant 1 : index
    %c0_276 = arith.constant 0 : index
    %c0_277 = arith.constant 0 : index
    %572 = vector.load %arg28[%c1_275, %c0_276, %c0_277] : memref<2x1x32xf32, #tpu.memory_space<vmem>>, vector<1x1x32xf32>
    %573 = vector.shape_cast %572 : vector<1x1x32xf32> to vector<1x32xf32>
    %cst_278 = arith.constant dense<0.000000e+00> : vector<8xf32>
    %574 = vector.multi_reduction <add>, %569, %cst_278 [1] : vector<8x32xf32> to vector<8xf32>
    %575 = vector.shape_cast %574 : vector<8xf32> to vector<8x1xf32>
    %cst_279 = arith.constant 3.200000e+01 : f32
    %576 = vector.broadcast %cst_279 : f32 to vector<8x1xf32>
    %577 = arith.divf %575, %576 : vector<8x1xf32>
    %578 = vector.broadcast %577 : vector<8x1xf32> to vector<8x32xf32>
    %579 = arith.subf %569, %578 : vector<8x32xf32>
    %580 = arith.mulf %579, %579 : vector<8x32xf32>
    %cst_280 = arith.constant dense<0.000000e+00> : vector<8xf32>
    %581 = vector.multi_reduction <add>, %580, %cst_280 [1] : vector<8x32xf32> to vector<8xf32>
    %582 = vector.shape_cast %581 : vector<8xf32> to vector<8x1xf32>
    %cst_281 = arith.constant 3.200000e+01 : f32
    %583 = vector.broadcast %cst_281 : f32 to vector<8x1xf32>
    %584 = arith.divf %582, %583 : vector<8x1xf32>
    %585 = vector.broadcast %577 : vector<8x1xf32> to vector<8x32xf32>
    %586 = arith.subf %569, %585 : vector<8x32xf32>
    %cst_282 = arith.constant 9.99999974E-6 : f32
    %587 = vector.broadcast %cst_282 : f32 to vector<8x1xf32>
    %588 = arith.addf %584, %587 : vector<8x1xf32>
    %589 = math.rsqrt %588 : vector<8x1xf32>
    %590 = vector.broadcast %589 : vector<8x1xf32> to vector<8x32xf32>
    %591 = arith.mulf %586, %590 : vector<8x32xf32>
    %592 = vector.broadcast %571 : vector<1x32xf32> to vector<8x32xf32>
    %593 = arith.mulf %591, %592 : vector<8x32xf32>
    %594 = vector.broadcast %573 : vector<1x32xf32> to vector<8x32xf32>
    %595 = arith.addf %593, %594 : vector<8x32xf32>
    %c0_283 = arith.constant 0 : index
    %c0_284 = arith.constant 0 : index
    %596 = vector.load %arg29[%c0_283, %c0_284] : memref<1x32xf32, #tpu.memory_space<vmem>>, vector<1x32xf32>
    %c0_285 = arith.constant 0 : index
    %c0_286 = arith.constant 0 : index
    %597 = vector.load %arg30[%c0_285, %c0_286] : memref<1x32xf32, #tpu.memory_space<vmem>>, vector<1x32xf32>
    %cst_287 = arith.constant dense<0.000000e+00> : vector<8xf32>
    %598 = vector.multi_reduction <add>, %595, %cst_287 [1] : vector<8x32xf32> to vector<8xf32>
    %599 = vector.shape_cast %598 : vector<8xf32> to vector<8x1xf32>
    %cst_288 = arith.constant 3.200000e+01 : f32
    %600 = vector.broadcast %cst_288 : f32 to vector<8x1xf32>
    %601 = arith.divf %599, %600 : vector<8x1xf32>
    %602 = vector.broadcast %601 : vector<8x1xf32> to vector<8x32xf32>
    %603 = arith.subf %595, %602 : vector<8x32xf32>
    %604 = arith.mulf %603, %603 : vector<8x32xf32>
    %cst_289 = arith.constant dense<0.000000e+00> : vector<8xf32>
    %605 = vector.multi_reduction <add>, %604, %cst_289 [1] : vector<8x32xf32> to vector<8xf32>
    %606 = vector.shape_cast %605 : vector<8xf32> to vector<8x1xf32>
    %cst_290 = arith.constant 3.200000e+01 : f32
    %607 = vector.broadcast %cst_290 : f32 to vector<8x1xf32>
    %608 = arith.divf %606, %607 : vector<8x1xf32>
    %609 = vector.broadcast %601 : vector<8x1xf32> to vector<8x32xf32>
    %610 = arith.subf %595, %609 : vector<8x32xf32>
    %cst_291 = arith.constant 9.99999974E-6 : f32
    %611 = vector.broadcast %cst_291 : f32 to vector<8x1xf32>
    %612 = arith.addf %608, %611 : vector<8x1xf32>
    %613 = math.rsqrt %612 : vector<8x1xf32>
    %614 = vector.broadcast %613 : vector<8x1xf32> to vector<8x32xf32>
    %615 = arith.mulf %610, %614 : vector<8x32xf32>
    %616 = vector.broadcast %596 : vector<1x32xf32> to vector<8x32xf32>
    %617 = arith.mulf %615, %616 : vector<8x32xf32>
    %618 = vector.broadcast %597 : vector<1x32xf32> to vector<8x32xf32>
    %619 = arith.addf %617, %618 : vector<8x32xf32>
    %c0_292 = arith.constant 0 : index
    %c0_293 = arith.constant 0 : index
    %c0_294 = arith.constant 0 : index
    %620 = vector.load %arg31[%c0_292, %c0_293, %c0_294] : memref<1x8x32xf32, #tpu.memory_space<vmem>>, vector<1x8x32xf32>
    %621 = vector.shape_cast %620 : vector<1x8x32xf32> to vector<8x32xf32>
    %622 = vector.shape_cast %619 : vector<8x32xf32> to vector<1x8x32xf32>
    tpu.vector_store %arg31[%c0_292, %c0_293, %c0_294], %622 {strides = array<i32>} : memref<1x8x32xf32, #tpu.memory_space<vmem>>, vector<1x8x32xf32>,
    return
  }
  func.func @transform_0(%arg0: i32) -> (i32, i32, i32) {
    %c0_i32 = arith.constant 0 : i32
    %c0_i32_0 = arith.constant 0 : i32
    %c0_i32_1 = arith.constant 0 : i32
    return %arg0, %c0_i32, %c0_i32_0 : i32, i32, i32
  }
  func.func @transform_1(%arg0: i32) -> (i32, i32, i32) {
    %c0_i32 = arith.constant 0 : i32
    %c0_i32_0 = arith.constant 0 : i32
    %c0_i32_1 = arith.constant 0 : i32
    return %arg0, %c0_i32, %c0_i32_0 : i32, i32, i32
  }
  func.func @transform_2(%arg0: i32) -> (i32, i32, i32) {
    %c0_i32 = arith.constant 0 : i32
    %c0_i32_0 = arith.constant 0 : i32
    %c0_i32_1 = arith.constant 0 : i32
    return %arg0, %c0_i32, %c0_i32_0 : i32, i32, i32
  }
  func.func @transform_3(%arg0: i32) -> (i32, i32, i32) {
    %c0_i32 = arith.constant 0 : i32
    %c0_i32_0 = arith.constant 0 : i32
    %c0_i32_1 = arith.constant 0 : i32
    return %arg0, %c0_i32, %c0_i32_0 : i32, i32, i32
  }
  func.func @transform_4(%arg0: i32) -> (i32, i32, i32) {
    %c0_i32 = arith.constant 0 : i32
    %c0_i32_0 = arith.constant 0 : i32
    %c0_i32_1 = arith.constant 0 : i32
    %c0_i32_2 = arith.constant 0 : i32
    return %c0_i32, %c0_i32_0, %c0_i32_1 : i32, i32, i32
  }
  func.func @transform_5(%arg0: i32) -> (i32, i32, i32) {
    %c0_i32 = arith.constant 0 : i32
    %c0_i32_0 = arith.constant 0 : i32
    %c0_i32_1 = arith.constant 0 : i32
    %c0_i32_2 = arith.constant 0 : i32
    return %c0_i32, %c0_i32_0, %c0_i32_1 : i32, i32, i32
  }
  func.func @transform_6(%arg0: i32) -> (i32, i32, i32) {
    %c0_i32 = arith.constant 0 : i32
    %c0_i32_0 = arith.constant 0 : i32
    %c0_i32_1 = arith.constant 0 : i32
    %c0_i32_2 = arith.constant 0 : i32
    return %c0_i32, %c0_i32_0, %c0_i32_1 : i32, i32, i32
  }
  func.func @transform_7(%arg0: i32) -> (i32, i32, i32) {
    %c0_i32 = arith.constant 0 : i32
    %c0_i32_0 = arith.constant 0 : i32
    %c0_i32_1 = arith.constant 0 : i32
    %c0_i32_2 = arith.constant 0 : i32
    return %c0_i32, %c0_i32_0, %c0_i32_1 : i32, i32, i32
  }
  func.func @transform_8(%arg0: i32) -> (i32, i32, i32) {
    %c0_i32 = arith.constant 0 : i32
    %c0_i32_0 = arith.constant 0 : i32
    %c0_i32_1 = arith.constant 0 : i32
    %c0_i32_2 = arith.constant 0 : i32
    return %c0_i32, %c0_i32_0, %c0_i32_1 : i32, i32, i32
  }
  func.func @transform_9(%arg0: i32) -> (i32, i32, i32) {
    %c0_i32 = arith.constant 0 : i32
    %c0_i32_0 = arith.constant 0 : i32
    %c0_i32_1 = arith.constant 0 : i32
    %c0_i32_2 = arith.constant 0 : i32
    return %c0_i32, %c0_i32_0, %c0_i32_1 : i32, i32, i32
  }
  func.func @transform_10(%arg0: i32) -> (i32, i32, i32) {
    %c0_i32 = arith.constant 0 : i32
    %c0_i32_0 = arith.constant 0 : i32
    %c0_i32_1 = arith.constant 0 : i32
    %c0_i32_2 = arith.constant 0 : i32
    return %c0_i32, %c0_i32_0, %c0_i32_1 : i32, i32, i32
  }
  func.func @transform_11(%arg0: i32) -> (i32, i32, i32) {
    %c0_i32 = arith.constant 0 : i32
    %c0_i32_0 = arith.constant 0 : i32
    %c0_i32_1 = arith.constant 0 : i32
    %c0_i32_2 = arith.constant 0 : i32
    return %c0_i32, %c0_i32_0, %c0_i32_1 : i32, i32, i32
  }
  func.func @transform_12(%arg0: i32) -> (i32, i32, i32) {
    %c0_i32 = arith.constant 0 : i32
    %c0_i32_0 = arith.constant 0 : i32
    %c0_i32_1 = arith.constant 0 : i32
    %c0_i32_2 = arith.constant 0 : i32
    return %c0_i32, %c0_i32_0, %c0_i32_1 : i32, i32, i32
  }
  func.func @transform_13(%arg0: i32) -> (i32, i32, i32) {
    %c0_i32 = arith.constant 0 : i32
    %c0_i32_0 = arith.constant 0 : i32
    %c0_i32_1 = arith.constant 0 : i32
    %c0_i32_2 = arith.constant 0 : i32
    return %c0_i32, %c0_i32_0, %c0_i32_1 : i32, i32, i32
  }
  func.func @transform_14(%arg0: i32) -> (i32, i32, i32) {
    %c0_i32 = arith.constant 0 : i32
    %c0_i32_0 = arith.constant 0 : i32
    %c0_i32_1 = arith.constant 0 : i32
    %c0_i32_2 = arith.constant 0 : i32
    return %c0_i32, %c0_i32_0, %c0_i32_1 : i32, i32, i32
  }
  func.func @transform_15(%arg0: i32) -> (i32, i32, i32) {
    %c0_i32 = arith.constant 0 : i32
    %c0_i32_0 = arith.constant 0 : i32
    %c0_i32_1 = arith.constant 0 : i32
    %c0_i32_2 = arith.constant 0 : i32
    return %c0_i32, %c0_i32_0, %c0_i32_1 : i32, i32, i32
  }
  func.func @transform_16(%arg0: i32) -> (i32, i32, i32) {
    %c0_i32 = arith.constant 0 : i32
    %c0_i32_0 = arith.constant 0 : i32
    %c0_i32_1 = arith.constant 0 : i32
    %c0_i32_2 = arith.constant 0 : i32
    return %c0_i32, %c0_i32_0, %c0_i32_1 : i32, i32, i32
  }
  func.func @transform_17(%arg0: i32) -> (i32, i32, i32) {
    %c0_i32 = arith.constant 0 : i32
    %c0_i32_0 = arith.constant 0 : i32
    %c0_i32_1 = arith.constant 0 : i32
    %c0_i32_2 = arith.constant 0 : i32
    return %c0_i32, %c0_i32_0, %c0_i32_1 : i32, i32, i32
  }
  func.func @transform_18(%arg0: i32) -> (i32, i32, i32) {
    %c0_i32 = arith.constant 0 : i32
    %c0_i32_0 = arith.constant 0 : i32
    %c0_i32_1 = arith.constant 0 : i32
    %c0_i32_2 = arith.constant 0 : i32
    return %c0_i32, %c0_i32_0, %c0_i32_1 : i32, i32, i32
  }
  func.func @transform_19(%arg0: i32) -> (i32, i32, i32) {
    %c0_i32 = arith.constant 0 : i32
    %c0_i32_0 = arith.constant 0 : i32
    %c0_i32_1 = arith.constant 0 : i32
    %c0_i32_2 = arith.constant 0 : i32
    return %c0_i32, %c0_i32_0, %c0_i32_1 : i32, i32, i32
  }
  func.func @transform_20(%arg0: i32) -> (i32, i32, i32) {
    %c0_i32 = arith.constant 0 : i32
    %c0_i32_0 = arith.constant 0 : i32
    %c0_i32_1 = arith.constant 0 : i32
    %c0_i32_2 = arith.constant 0 : i32
    return %c0_i32, %c0_i32_0, %c0_i32_1 : i32, i32, i32
  }
  func.func @transform_21(%arg0: i32) -> (i32, i32, i32) {
    %c0_i32 = arith.constant 0 : i32
    %c0_i32_0 = arith.constant 0 : i32
    %c0_i32_1 = arith.constant 0 : i32
    %c0_i32_2 = arith.constant 0 : i32
    return %c0_i32, %c0_i32_0, %c0_i32_1 : i32, i32, i32
  }
  func.func @transform_22(%arg0: i32) -> (i32, i32, i32) {
    %c0_i32 = arith.constant 0 : i32
    %c0_i32_0 = arith.constant 0 : i32
    %c0_i32_1 = arith.constant 0 : i32
    %c0_i32_2 = arith.constant 0 : i32
    return %c0_i32, %c0_i32_0, %c0_i32_1 : i32, i32, i32
  }
  func.func @transform_23(%arg0: i32) -> (i32, i32, i32) {
    %c0_i32 = arith.constant 0 : i32
    %c0_i32_0 = arith.constant 0 : i32
    %c0_i32_1 = arith.constant 0 : i32
    %c0_i32_2 = arith.constant 0 : i32
    return %c0_i32, %c0_i32_0, %c0_i32_1 : i32, i32, i32
  }
  func.func @transform_24(%arg0: i32) -> (i32, i32, i32) {
    %c0_i32 = arith.constant 0 : i32
    %c0_i32_0 = arith.constant 0 : i32
    %c0_i32_1 = arith.constant 0 : i32
    %c0_i32_2 = arith.constant 0 : i32
    return %c0_i32, %c0_i32_0, %c0_i32_1 : i32, i32, i32
  }
  func.func @transform_25(%arg0: i32) -> (i32, i32, i32) {
    %c0_i32 = arith.constant 0 : i32
    %c0_i32_0 = arith.constant 0 : i32
    %c0_i32_1 = arith.constant 0 : i32
    %c0_i32_2 = arith.constant 0 : i32
    return %c0_i32, %c0_i32_0, %c0_i32_1 : i32, i32, i32
  }
  func.func @transform_26(%arg0: i32) -> (i32, i32, i32) {
    %c0_i32 = arith.constant 0 : i32
    %c0_i32_0 = arith.constant 0 : i32
    %c0_i32_1 = arith.constant 0 : i32
    %c0_i32_2 = arith.constant 0 : i32
    return %c0_i32, %c0_i32_0, %c0_i32_1 : i32, i32, i32
  }
  func.func @transform_27(%arg0: i32) -> (i32, i32, i32) {
    %c0_i32 = arith.constant 0 : i32
    %c0_i32_0 = arith.constant 0 : i32
    %c0_i32_1 = arith.constant 0 : i32
    %c0_i32_2 = arith.constant 0 : i32
    return %c0_i32, %c0_i32_0, %c0_i32_1 : i32, i32, i32
  }
  func.func @transform_28(%arg0: i32) -> (i32, i32) {
    %c0_i32 = arith.constant 0 : i32
    %c0_i32_0 = arith.constant 0 : i32
    %c0_i32_1 = arith.constant 0 : i32
    return %c0_i32, %c0_i32_0 : i32, i32
  }
  func.func @transform_29(%arg0: i32) -> (i32, i32) {
    %c0_i32 = arith.constant 0 : i32
    %c0_i32_0 = arith.constant 0 : i32
    %c0_i32_1 = arith.constant 0 : i32
    return %c0_i32, %c0_i32_0 : i32, i32
  }
  func.func @transform_30(%arg0: i32) -> (i32, i32, i32) {
    %c0_i32 = arith.constant 0 : i32
    %c0_i32_0 = arith.constant 0 : i32
    %c0_i32_1 = arith.constant 0 : i32
    return %arg0, %c0_i32, %c0_i32_0 : i32, i32, i32
  }
}

</mosaic_0001>

<bundles_post_ra>
// kernel: tpu_custom_call.1
= control target key start
LH: loop header
LB: loop body
LE: loop exit
PB: predicated region body
PF: predicated region fallthrough
CT: control target
= control target key end

     0   :  { %s8545_s6 = smov 1   ;;  %s8546_s10 = smov 2   ;;  %s9713_s0 = inlined_call_operand.smem [shape: u32[31], index: -1, kind: input, shape index: {}] }
   0x1   :  { %s8610_s5 = sld [smem:[%s9713_s0]]   ;;  %s8547_s14 = smov 3  }
   0x2   :  { %s8615_s9 = sld [smem:[%s9713_s0 + %s8545_s6]]   ;;  %s8548_s18 = smov 4  }
   0x3   :  { %s8620_s13 = sld [smem:[%s9713_s0 + %s8546_s10]]   ;;  %s8549_s22 = smov 5  }
   0x4   :  { %s8625_s17 = sld [smem:[%s9713_s0 + %s8547_s14]]   ;;  %s8550_s26 = smov 6  }
   0x5   :  { %s8630_s21 = sld [smem:[%s9713_s0 + %s8548_s18]]   ;;  %s8551_s30 = smov 7  }
   0x6   :  { %s8635_s25 = sld [smem:[%s9713_s0 + %s8549_s22]]   ;;  %s8552_s4 = smov 8  }
   0x7   :  { %9781 = sst [smem:[#allocation32_spill]] %s8610_s5  ;;  %s8553_s10 = smov 9  }
   0x8   :  { %9782 = sst [smem:[#allocation33_spill]] %s8615_s9  ;;  %s8554_s15 = smov 10  }
   0x9   :  { %s8640_s29 = sld [smem:[%s9713_s0 + %s8550_s26]]   ;;  %s8555_s20 = smov 11  }
   0xa   :  { %s8645_s3 = sld [smem:[%s9713_s0 + %s8551_s30]]   ;;  %s8556_s26 = smov 12  }
   0xb   :  { %s8650_s8 = sld [smem:[%s9713_s0 + %s8552_s4]]   ;;  %s8557_s1 = smov 13  }
   0xc   :  { %9783 = sst [smem:[#allocation34_spill]] %s8635_s25  ;;  %s8558_s7 = smov 14  }
   0xd   :  { %s8655_s14 = sld [smem:[%s9713_s0 + %s8553_s10]]   ;;  %s8560_s22 = smov 16  }
   0xe   :  { %s8660_s19 = sld [smem:[%s9713_s0 + %s8554_s15]]   ;;  %s8559_s15 = smov 15  }
   0xf   :  { %9784 = sst [smem:[#allocation35_spill]] %s8640_s29  ;;  %s8561_s28 = smov 17  }
  0x10   :  { %9785 = sst [smem:[#allocation36_spill]] %s8645_s3 }
  0x11   :  { %9786 = sst [smem:[#allocation37_spill]] %s8650_s8 }
  0x12   :  { %s8665_s24 = sld [smem:[%s9713_s0 + %s8555_s20]]  }
  0x13   :  { %9787 = sst [smem:[#allocation38_spill]] %s8655_s14 }
  0x14   :  { %9788 = sst [smem:[#allocation39_spill]] %s8660_s19 }
  0x15   :  { %s8670_s30 = sld [smem:[%s9713_s0 + %s8556_s26]]  }
  0x16   :  { %s8675_s6 = sld [smem:[%s9713_s0 + %s8557_s1]]  }
  0x17   :  { %s8680_s12 = sld [smem:[%s9713_s0 + %s8558_s7]]   ;;  %s8562_s7 = smov 18  }
  0x18   :  { %9789 = sst [smem:[#allocation40_spill]] %s8665_s24 }
  0x19   :  { %s8685_s20 = sld [smem:[%s9713_s0 + %s8559_s15]]   ;;  %s8563_s15 = smov 19  }
  0x1a   :  { %s8690_s27 = sld [smem:[%s9713_s0 + %s8560_s22]]   ;;  %s8564_s22 = smov 20  }
  0x1b   :  { %9790 = sst [smem:[#allocation41_spill]] %s8670_s30 }
  0x1c   :  { %9791 = sst [smem:[#allocation42_spill]] %s8675_s6 }
  0x1d   :  { %9792 = sst [smem:[#allocation43_spill]] %s8680_s12 }
  0x1e   :  { %s8695_s4 = sld [smem:[%s9713_s0 + %s8561_s28]]   ;;  %s8565_s28 = smov 21  }
  0x1f   :  { %9793 = sst [smem:[#allocation44_spill]] %s8685_s20 }
  0x20   :  { %s8700_s24 = sld [smem:[%s9713_s0 + %s8562_s7]]   ;;  %s8566_s7 = smov 22  }
  0x21   :  { %s8705_s6 = sld [smem:[%s9713_s0 + %s8563_s15]]   ;;  %s8567_s15 = smov 23  }
  0x22   :  { %s8710_s14 = sld [smem:[%s9713_s0 + %s8564_s22]]   ;;  %s8568_s22 = smov 24  }
  0x23   :  { %s8715_s8 = sld [smem:[%s9713_s0 + %s8565_s28]]   ;;  %s8569_s28 = smov 25  }
  0x24   :  { %9794 = sst [smem:[#allocation45_spill]] %s8695_s4 }
  0x25   :  { %s8720_s3 = sld [smem:[%s9713_s0 + %s8566_s7]]   ;;  %s8570_s7 = smov 26  }
  0x26   :  { %s8725_s29 = sld [smem:[%s9713_s0 + %s8567_s15]]   ;;  %s8571_s15 = smov 27  }
  0x27   :  { %9795 = sst [smem:[#allocation46_spill]] %s8705_s6 }
  0x28   :  { %9796 = sst [smem:[#allocation47_spill]] %s8710_s14 }
  0x29   :  { %9797 = sst [smem:[#allocation48_spill]] %s8715_s8 }
  0x2a   :  { %s8730_s14 = sld [smem:[%s9713_s0 + %s8568_s22]]   ;;  %s8572_s22 = smov 28  }
  0x2b   :  { %9798 = sst [smem:[#allocation49_spill]] %s8720_s3 }
  0x2c   :  { %9799 = sst [smem:[#allocation50_spill]] %s8725_s29 }
  0x2d   :  { %s8735_s8 = sld [smem:[%s9713_s0 + %s8569_s28]]   ;;  %s8573_s28 = smov 29  }
  0x2e   :  { %s8740_s3 = sld [smem:[%s9713_s0 + %s8570_s7]]   ;;  %s8574_s7 = smov 30  }
  0x2f   :  { %s8745_s29 = sld [smem:[%s9713_s0 + %s8571_s15]]  }
  0x30   :  { %9800 = sst [smem:[#allocation51_spill]] %s8730_s14 }
  0x31   :  { %s8750_s14 = sld [smem:[%s9713_s0 + %s8572_s22]]  }
  0x33   :  { %9801 = sst [smem:[#allocation52_spill]] %s8735_s8 }
  0x34   :  { %9802 = sst [smem:[#allocation53_spill]] %s8740_s3 }
  0x35   :  { %9803 = sst [smem:[#allocation54_spill]] %s8745_s29 }
  0x36   :  { %s8755_s8 = sld [smem:[%s9713_s0 + %s8573_s28]]  }
  0x37   :  { %9804 = sst [smem:[#allocation55_spill]] %s8750_s14 }
  0x38   :  { %s8760_s3 = sld [smem:[%s9713_s0 + %s8574_s7]]  }
  0x3c   :  { %9805 = sst [smem:[#allocation56_spill]] %s8755_s8 }
  0x3e   :  { %9806 = sst [smem:[#allocation57_spill]] %s8760_s3 }
  0x3f   :  { %66 = vsyncpa [#allocation3], 0 }
  0x40   :  { %68 = vsyncpa [#allocation3 + $0x1], 0 }
  0x41   :  { %69 = vsyncpa [#allocation6], 0 }
  0x42   :  { %71 = vsyncpa [#allocation6 + $0x1], 0 }
  0x43   :  { %72 = vsyncpa [#allocation9], 0 }
  0x44   :  { %74 = vsyncpa [#allocation9 + $0x1], 0 }
  0x45   :  { %75 = vsyncpa [#allocation12], 0 }
  0x46   :  { %76 = vsyncpa [#allocation15], 0 }
  0x47   :  { %77 = vsyncpa [#allocation18], 0 }
  0x48   :  { %78 = vsyncpa [#allocation21], 0 }
  0x49   :  { %79 = vsyncpa [#allocation4], 0 }
  0x4a   :  { %81 = vsyncpa [#allocation4 + $0x1], 0  ;;  %s8762_s15 = smov 0   ;;  %s8764_s16 = smov 0  }
  0x4b   :  { %s8766_s18 = smov 0   ;;  %s8768_s0 = smov 0  }
  0x4c LB: > { %s9807_s6 = sld [smem:[#allocation46_spill]]  ;;  %s9808_s5 = sld [smem:[#allocation32_spill]]  ;;  %s8543_s0 = sphi %s8768_s0, %s9892_s0   ;;  %s8539_s18 = sphi %s8766_s18, %s9894_s18   ;;  %s8535_s16 = sphi %s8764_s16, %s9896_s16   ;;  %s8531_s15 = sphi %s8762_s15, %s9895_s15  }
  0x4d   : > { %s9809_s12 = sld [smem:[#allocation43_spill]]  ;;  %s9810_s9 = sld [smem:[#allocation33_spill]] }
  0x4e   : > { %s9811_s30 = sld [smem:[#allocation41_spill]]  ;;  %s9812_s20 = sld [smem:[#allocation44_spill]] }
  0x4f   : > { %s9813_s4 = sld [smem:[#allocation45_spill]]  ;;  %s9814_s19 = sld [smem:[#allocation39_spill]] }
  0x50   : > { %9815 = sst [smem:[#allocation58_spill]] %s8531_s15  ;;  %s8575_s22 = smov [#allocation10]  }
  0x51   : > { %9816 = sst [smem:[#allocation59_spill]] %s8539_s18  ;;  %s798_s23 = sshll.u32 %s8575_s22, 4  ;;  %s8788_s23 = int_to_ptr.vmem [resolvable:$true] %s798_s23 }
  0x52   : > { %s8783_s26 = sadd.s32 4294967295, %s8543_s0   ;;  %p6788_p0 = scmp.ge.s32.totalorder %s8543_s0, 1 }
  0x53   : > { %p9728_p1 = scmp.eq.s32.totalorder %s8783_s26, 0  ;;  %p768_p2 = scmp.lt.s32.totalorder %s8543_s0, 3 }
  0x54   : > { %s8576_s1 = smov [#allocation11]   ;;  %s8577_s10 = smov [#allocation14]  }
  0x55   : > { %p8790_p3 = pnand %p6788_p0, %p768_p2  ;;  %s814_s2 = sshll.u32 %s8576_s1, 4  ;;  %s8803_s2 = int_to_ptr.vmem [resolvable:$true] %s814_s2 }
  0x56   : > { %s843_s11 = sshll.u32 %s8577_s10, 4  ;;  %s8105_s22 = scalar_lea.hbm %s9814_s19, 1024  ;;  %s8805_s11 = int_to_ptr.vmem [resolvable:$true] %s843_s11 }
  0x57   : > { %s9817_s28 = scalar_select %p8790_p3, 1, 0 }
  0x58   : > { %p7820_p5 = pneg %p8790_p3  ;;  %p8106_p7 = scmp.ne.s32.totalorder %s9814_s19, %s8105_s22 }
  0x59   : > { %p8112_p11 = scmp.lt.u32.totalorder %s8105_s22, %s9814_s19 }
  0x5a   : > { %p8799_p6 = pnand %p7820_p5, %p9728_p1 }
  0x5c   : > { %s9818_s7 = scalar_select %p8799_p6, 1, 0 }
  0x5d   : > { %p8811_p8 = pneg %p8799_p6 }
  0x5f   : > { %s9819_s3 = scalar_select %p8811_p8, 1, 0 }
  0x60   : > { %p8108_p9 = pnand %p8811_p8, %p8106_p7 }
  0x62   : > { %p8109_p10 = pneg %p8108_p9 }
  0x64   : > { %p8114_p12 = pnand %p8112_p11, %p8109_p10 }
  0x66   : > { %8117 = shalt.err (!%p8114_p12)
}
  0x67   : > { %s8118_s1 = scalar_lea.vmem %s8788_s23, 1024  ;;  %p8126_p5 = scmp.lt.s32.totalorder %s8788_s23, %s8788_s23 }
  0x68   : > { %p8119_p13 = scmp.ne.s32.totalorder %s8788_s23, %s8118_s1  ;;  %p8127_p4 = scmp.lt.s32.totalorder %s8118_s1, %s8118_s1 }
  0x6a   : > { %p8121_p0 = pnand %p8119_p13, %p8811_p8  ;;  %p8128_p1 = por %p8127_p4, %p8126_p5 }
  0x6c   : > { %p8122_p2 = pneg %p8121_p0 }
  0x6e   : > { %p8129_p3 = pnand %p8128_p1, %p8122_p2 }
  0x70   : > { %8132 = shalt.err (!%p8129_p3)
}
  0x71   : > { %s9730_s10 = smov 128   ;;  %s9732_s22 = smov 8  }
  0x72   : > { %7823 = dma.hbm_to_vmem [thread:$0]  (!%p8799_p6), %s9814_s19, 1024, %s8788_s23, [#allocation9], %s9730_s10, %s9730_s10, %s9732_s22  }
  0x73   : > { %s8133_s8 = scalar_lea.hbm %s9811_s30, 1024 }
  0x74   : > { %p8134_p7 = scmp.ne.s32.totalorder %s9811_s30, %s8133_s8  ;;  %p8140_p3 = scmp.lt.u32.totalorder %s8133_s8, %s9811_s30 }
  0x76   : > { %p8136_p4 = pnand %p8134_p7, %p8811_p8 }
  0x78   : > { %p8137_p1 = pneg %p8136_p4 }
  0x7a   : > { %p8142_p9 = pnand %p8140_p3, %p8137_p1 }
  0x7c   : > { %8145 = shalt.err (!%p8142_p9)
}
  0x7d   : > { %s8146_s1 = scalar_lea.vmem %s8803_s2, 1024  ;;  %p8154_p13 = scmp.lt.s32.totalorder %s8803_s2, %s8803_s2 }
  0x7e   : > { %p8147_p10 = scmp.ne.s32.totalorder %s8803_s2, %s8146_s1  ;;  %p8155_p0 = scmp.lt.s32.totalorder %s8146_s1, %s8146_s1 }
  0x80   : > { %p8149_p11 = pnand %p8147_p10, %p8811_p8  ;;  %p8156_p2 = por %p8155_p0, %p8154_p13 }
  0x82   : > { %p8150_p12 = pneg %p8149_p11 }
  0x84   : > { %p8157_p5 = pnand %p8156_p2, %p8150_p12 }
  0x86   : > { %8160 = shalt.err (!%p8157_p5)
}
  0x87   : > { %7826 = dma.hbm_to_vmem [thread:$0]  (!%p8799_p6), %s9811_s30, 1024, %s8803_s2, [#allocation12], %s9730_s10, %s9730_s10, %s9732_s22  }
  0x88   : > { %s8161_s8 = scalar_lea.hbm %s9812_s20, 32 }
  0x89   : > { %p8162_p7 = scmp.ne.s32.totalorder %s9812_s20, %s8161_s8  ;;  %p8168_p3 = scmp.lt.u32.totalorder %s8161_s8, %s9812_s20 }
  0x8b   : > { %p8164_p4 = pnand %p8162_p7, %p8811_p8 }
  0x8d   : > { %p8165_p1 = pneg %p8164_p4 }
  0x8f   : > { %p8170_p9 = pnand %p8168_p3, %p8165_p1 }
  0x91   : > { %8173 = shalt.err (!%p8170_p9)
}
  0x92   : > { %s8174_s23 = scalar_lea.vmem %s8805_s11, 32  ;;  %p8182_p13 = scmp.lt.s32.totalorder %s8805_s11, %s8805_s11 }
  0x93   : > { %p8175_p10 = scmp.ne.s32.totalorder %s8805_s11, %s8174_s23  ;;  %p8183_p0 = scmp.lt.s32.totalorder %s8174_s23, %s8174_s23 }
  0x95   : > { %p8177_p11 = pnand %p8175_p10, %p8811_p8  ;;  %p8184_p2 = por %p8183_p0, %p8182_p13 }
  0x97   : > { %p8178_p12 = pneg %p8177_p11 }
  0x99   : > { %p8185_p5 = pnand %p8184_p2, %p8178_p12 }
  0x9b   : > { %8188 = shalt.err (!%p8185_p5)
}
  0x9c   : > { %s9735_s2 = smov 16   ;;  %s9736_s1 = smov 1  }
  0x9d   : > { %7832 = dma.hbm_to_vmem [thread:$0]  (!%p8799_p6), %s9812_s20, 32, %s8805_s11, [#allocation15], %s9735_s2, %s9735_s2, %s9736_s1  }
  0x9e   : > { %s8582_s8 = smov [#allocation17]   ;;  %s8189_s23 = scalar_lea.hbm %s9813_s4, 32 }
  0x9f   : > { %s869_s10 = sshll.u32 %s8582_s8, 4  ;;  %p8190_p7 = scmp.ne.s32.totalorder %s9813_s4, %s8189_s23  ;;  %s870_s10 = int_to_ptr.vmem [resolvable:$true] %s869_s10 }
  0xa0   : > { %p8196_p3 = scmp.lt.u32.totalorder %s8189_s23, %s9813_s4 }
  0xa1   : > { %p8192_p4 = pnand %p8190_p7, %p8811_p8 }
  0xa3   : > { %p8193_p1 = pneg %p8192_p4 }
  0xa5   : > { %p8198_p9 = pnand %p8196_p3, %p8193_p1 }
  0xa7   : > { %8201 = shalt.err (!%p8198_p9)
}
  0xa8   : > { %s8202_s22 = scalar_lea.vmem %s870_s10, 32  ;;  %p8210_p13 = scmp.lt.s32.totalorder %s870_s10, %s870_s10 }
  0xa9   : > { %p8203_p10 = scmp.ne.s32.totalorder %s870_s10, %s8202_s22  ;;  %p8211_p0 = scmp.lt.s32.totalorder %s8202_s22, %s8202_s22 }
  0xab   : > { %p8205_p11 = pnand %p8203_p10, %p8811_p8  ;;  %p8212_p2 = por %p8211_p0, %p8210_p13 }
  0xad   : > { %p8206_p12 = pneg %p8205_p11 }
  0xaf   : > { %p8213_p5 = pnand %p8212_p2, %p8206_p12 }
  0xb1   : > { %8216 = shalt.err (!%p8213_p5)
}
  0xb2   : > { %7838 = dma.hbm_to_vmem [thread:$0]  (!%p8799_p6), %s9813_s4, 32, %s870_s10, [#allocation18], %s9735_s2, %s9735_s2, %s9736_s1  }
  0xb3   : > { %s6787_s11 = sadd.s32 4294967294, %s8543_s0   ;;  %s8882_s22 = sadd.s32 1, %s8543_s0  }
  0xb4   : > { %9820 = sst [smem:[#allocation60_spill]] %s8882_s22  ;;  %s91_s8 = ssub.s32 %s8543_s0, %s8882_s22 }
  0xb5   : > { %s94_s23 = sadd.s32 1, %s8539_s18  ;;  %p92_p7 = scmp.eq.s32.totalorder %s91_s8, 0 }
  0xb6   : > { %p101_p4 = scmp.ne.s32.totalorder %s8539_s18, %s8535_s16  ;;  %p102_p1 = scmp.eq.s32.totalorder %s8543_s0, 0 }
  0xb7   : > { %p107_p3 = scmp.ne.s32.totalorder %s8535_s16, %s8531_s15  ;;  %p9822_p10 = scmp.eq.s32.totalorder %s8783_s26, 0 }
  0xb8   : > { %s8893_s19 = scalar_select %p92_p7, %s8539_s18, %s94_s23  }
  0xb9   : > { %p103_p9 = por %p102_p1, %p101_p4  ;;  %p8897_p11 = por %p9822_p10, %p107_p3 }
  0xba   : > { %9821 = sst [smem:[#allocation61_spill]] %s8893_s19  ;;  %p755_p12 = scmp.eq.s32.totalorder %s8783_s26, 1 }
  0xbb   : > { %s9823_s10 = scalar_select %p8897_p11, 1, 0 }
  0xbc   : > { %p761_p13 = scmp.eq.s32.totalorder %s6787_s11, 1  ;;  %p7870_p0 = scmp.lt.s32.totalorder %s8543_s0, 2 }
  0xbd   : > { %s8904_s2 = sand.u32 1, %s8539_s18   ;;  %p8906_p2 = por %p755_p12, %p101_p4 }
  0xbe   : > { %p8910_p5 = por %p761_p13, %p107_p3  ;;  %p8914_p7 = pnand %p7870_p0, %p103_p9 }
  0xbf   : > { %s9824_s8 = scalar_select %p8906_p2, 1, 0 }
  0xc0   : > { %s9826_s23 = scalar_select %p8910_p5, 1, 0 }
  0xc1   : > { %9825 = sst [smem:[#allocation62_spill]] %s9824_s8  ;;  %s9746_s11 = sand.u32 1, %s8543_s0  }
  0xc2   : > { %9827 = sst [smem:[#allocation63_spill]] %s9826_s23  ;;  %s9752_s4 = sshll.u32 %s8904_s2, 4 }
  0xc3   : > { %s9828_s1 = scalar_select %p8914_p7, 1, 0 }
  0xc4   : > { %s9753_s20 = sshll.u32 %s8543_s0, 8  ;;  %s961_s30 = scalar_lea.vmem [#allocation5], %s9752_s4 }
  0xc5   : > { %s968_s19 = sshll.u32 %s961_s30, 4  ;;  %s8926_s18 = scalar_lea.hbm %s9810_s9, %s9753_s20  ;;  %s8928_s19 = int_to_ptr.vmem [resolvable:$true] %s968_s19 }
  0xc6   : > { %s8932_s22 = scalar_lea.sflag [#allocation6], %s9746_s11  ;;  %s8217_s23 = scalar_lea.hbm %s8926_s18, 256 }
  0xc7   : > { %p8218_p4 = scmp.ne.s32.totalorder %s8926_s18, %s8217_s23  ;;  %p8938_p1 = pneg %p8914_p7 }
  0xc8   : > { %s8222_s30 = scalar_lea.hbm %s9810_s9, 512  ;;  %p8223_p10 = scmp.lt.u32.totalorder %s8926_s18, %s9810_s9 }
  0xc9   : > { %s9829_s15 = scalar_select %p8938_p1, 1, 0 }
  0xca   : > { %p8220_p3 = pnand %p8938_p1, %p8218_p4  ;;  %p8224_p12 = scmp.lt.u32.totalorder %s8222_s30, %s8217_s23 }
  0xcb   : > { %p8226_p0 = scmp.lt.u32.totalorder %s8217_s23, %s8926_s18 }
  0xcc   : > { %p8221_p9 = pneg %p8220_p3  ;;  %p8225_p13 = por %p8224_p12, %p8223_p10 }
  0xce   : > { %p8227_p5 = por %p8226_p0, %p8225_p13 }
  0xd0   : > { %p8228_p2 = pnand %p8227_p5, %p8221_p9 }
  0xd2   : > { %8231 = shalt.err (!%p8228_p2)
}
  0xd3   : > { %s8232_s11 = scalar_lea.vmem %s8928_s19, 256  ;;  %s8583_s4 = smov [#allocation5]  }
  0xd4   : > { %p8233_p11 = scmp.ne.s32.totalorder %s8928_s19, %s8232_s11  ;;  %s8237_s20 = sshll.u32 %s8583_s4, 4  ;;  %s8238_s20 = int_to_ptr.vmem [resolvable:$false] %s8237_s20 }
  0xd5   : > { %s8239_s8 = scalar_lea.vmem %s8238_s20, 512  ;;  %p8240_p4 = scmp.lt.s32.totalorder %s8928_s19, %s8238_s20 }
  0xd6   : > { %p8235_p6 = pnand %p8233_p11, %p8938_p1  ;;  %p8241_p3 = scmp.lt.s32.totalorder %s8239_s8, %s8232_s11 }
  0xd8   : > { %p8236_p8 = pneg %p8235_p6  ;;  %p8242_p10 = por %p8241_p3, %p8240_p4 }
  0xda   : > { %p8243_p12 = pnand %p8242_p10, %p8236_p8 }
  0xdc   : > { %8246 = shalt.err (!%p8243_p12)
}
  0xdd   : > { %s9830_s23 = smov 8   ;;  %s9831_s30 = smov 128  }
  0xde   : > { %7851 = dma.hbm_to_vmem [thread:$0]  (!%p8914_p7), %s8926_s18, 256, %s8928_s19, %s8932_s22, %s9831_s30, %s9831_s30, %s9830_s23  }
  0xdf   : > { %s9832_s20 = sshll.u32 %s8543_s0, 8  ;;  %s9833_s8 = sshll.u32 %s8904_s2, 4 }
  0xe0   : > { %s8964_s4 = scalar_lea.hbm %s8620_s13, %s9832_s20  ;;  %s982_s11 = scalar_lea.vmem [#allocation7], %s9833_s8 }
  0xe1   : > { %s989_s9 = sshll.u32 %s982_s11, 4  ;;  %s8584_s14 = smov [#allocation13]   ;;  %s8968_s9 = int_to_ptr.vmem [resolvable:$true] %s989_s9 }
  0xe2   : > { %s830_s29 = sshll.u32 %s8584_s14, 4  ;;  %s8247_s25 = scalar_lea.hbm %s9809_s12, 1024  ;;  %s831_s29 = int_to_ptr.vmem [resolvable:$true] %s830_s29 }
  0xe3   : > { %p8248_p6 = scmp.ne.s32.totalorder %s9809_s12, %s8247_s25  ;;  %p9834_p8 = scmp.ne.s32.totalorder %s9819_s3, 0 }
  0xe4   : > { %p8254_p5 = scmp.lt.u32.totalorder %s8247_s25, %s9809_s12 }
  0xe5   : > { %p8250_p11 = pnand %p8248_p6, %p9834_p8 }
  0xe7   : > { %p8251_p2 = pneg %p8250_p11 }
  0xe9   : > { %p8256_p9 = pnand %p8254_p5, %p8251_p2 }
  0xeb   : > { %8259 = shalt.err (!%p8256_p9)
}
  0xec   : > { %s8260_s19 = scalar_lea.vmem %s831_s29, 1024  ;;  %p8268_p3 = scmp.lt.s32.totalorder %s831_s29, %s831_s29 }
  0xed   : > { %p8261_p13 = scmp.ne.s32.totalorder %s831_s29, %s8260_s19  ;;  %p8269_p10 = scmp.lt.s32.totalorder %s8260_s19, %s8260_s19 }
  0xef   : > { %p8263_p0 = pnand %p8261_p13, %p9834_p8  ;;  %p8270_p12 = por %p8269_p10, %p8268_p3 }
  0xf1   : > { %p8264_p4 = pneg %p8263_p0 }
  0xf3   : > { %p8271_p7 = pnand %p8270_p12, %p8264_p4 }
  0xf5   : > { %8274 = shalt.err (!%p8271_p7)
}
  0xf6   : > { %p9835_p1 = scmp.ne.s32.totalorder %s9818_s7, 0  ;;  %s8585_s25 = smov [#allocation16]  }
  0xf7   : > { %s856_s14 = sshll.u32 %s8585_s25, 4  ;;  %s8586_s18 = smov [#allocation19]   ;;  %s857_s14 = int_to_ptr.vmem [resolvable:$true] %s856_s14 }
  0xf8   : > { %7829 = dma.hbm_to_vmem [thread:$0]  (!%p9835_p1), %s9809_s12, 1024, %s831_s29, [#allocation12], %s9831_s30, %s9831_s30, %s9830_s23  }
  0xf9   : > { %s882_s20 = sshll.u32 %s8586_s18, 4  ;;  %s8275_s8 = scalar_lea.hbm %s8690_s27, 1024  ;;  %s883_s20 = int_to_ptr.vmem [resolvable:$true] %s882_s20 }
  0xfa   : > { %p8276_p6 = scmp.ne.s32.totalorder %s8690_s27, %s8275_s8  ;;  %p8282_p2 = scmp.lt.u32.totalorder %s8275_s8, %s8690_s27 }
  0xfc   : > { %p8278_p7 = pnand %p8276_p6, %p9834_p8 }
  0xfe   : > { %p8279_p11 = pneg %p8278_p7 }
 0x100   : > { %p8284_p5 = pnand %p8282_p2, %p8279_p11 }
 0x102   : > { %8287 = shalt.err (!%p8284_p5)
}
 0x103   : > { %s8288_s11 = scalar_lea.vmem %s857_s14, 1024  ;;  %p8296_p4 = scmp.lt.s32.totalorder %s857_s14, %s857_s14 }
 0x104   : > { %p8289_p9 = scmp.ne.s32.totalorder %s857_s14, %s8288_s11  ;;  %p8297_p3 = scmp.lt.s32.totalorder %s8288_s11, %s8288_s11 }
 0x106   : > { %p8291_p13 = pnand %p8289_p9, %p9834_p8  ;;  %p8298_p10 = por %p8297_p3, %p8296_p4 }
 0x108   : > { %p8292_p0 = pneg %p8291_p13 }
 0x10a   : > { %p8299_p12 = pnand %p8298_p10, %p8292_p0 }
 0x10c   : > { %8302 = shalt.err (!%p8299_p12)
}
 0x10d   : > { %7835 = dma.hbm_to_vmem [thread:$0]  (!%p9835_p1), %s8690_s27, 1024, %s857_s14, [#allocation15], %s9831_s30, %s9831_s30, %s9830_s23  }
 0x10e   : > { %s8303_s29 = scalar_lea.hbm %s8700_s24, 1024 }
 0x10f   : > { %p8304_p6 = scmp.ne.s32.totalorder %s8700_s24, %s8303_s29  ;;  %p8310_p2 = scmp.lt.u32.totalorder %s8303_s29, %s8700_s24 }
 0x111   : > { %p8306_p7 = pnand %p8304_p6, %p9834_p8 }
 0x113   : > { %p8307_p11 = pneg %p8306_p7 }
 0x115   : > { %p8312_p5 = pnand %p8310_p2, %p8307_p11 }
 0x117   : > { %8315 = shalt.err (!%p8312_p5)
}
 0x118   : > { %s8316_s19 = scalar_lea.vmem %s883_s20, 1024  ;;  %p8324_p4 = scmp.lt.s32.totalorder %s883_s20, %s883_s20 }
 0x119   : > { %p8317_p9 = scmp.ne.s32.totalorder %s883_s20, %s8316_s19  ;;  %p8325_p3 = scmp.lt.s32.totalorder %s8316_s19, %s8316_s19 }
 0x11b   : > { %p8319_p13 = pnand %p8317_p9, %p9834_p8  ;;  %p8326_p10 = por %p8325_p3, %p8324_p4 }
 0x11d   : > { %p8320_p0 = pneg %p8319_p13 }
 0x11f   : > { %p8327_p12 = pnand %p8326_p10, %p8320_p0 }
 0x121   : > { %8330 = shalt.err (!%p8327_p12)
}
 0x122   : > { %7841 = dma.hbm_to_vmem [thread:$0]  (!%p9835_p1), %s8700_s24, 1024, %s883_s20, [#allocation18], %s9831_s30, %s9831_s30, %s9830_s23  }
 0x123   : > { %s8587_s25 = smov [#allocation20]   ;;  %s6798_s18 = sshll.u32 %s8904_s2, 3 }
 0x124   : > { %s895_s14 = sshll.u32 %s8587_s25, 4  ;;  %s8331_s8 = scalar_lea.hbm %s9807_s6, 32  ;;  %s896_s14 = int_to_ptr.vmem [resolvable:$true] %s895_s14 }
 0x125   : > { %p8332_p6 = scmp.ne.s32.totalorder %s9807_s6, %s8331_s8  ;;  %p8338_p2 = scmp.lt.u32.totalorder %s8331_s8, %s9807_s6 }
 0x127   : > { %p8334_p7 = pnand %p8332_p6, %p9834_p8 }
 0x129   : > { %p8335_p11 = pneg %p8334_p7 }
 0x12b   : > { %p8340_p5 = pnand %p8338_p2, %p8335_p11 }
 0x12d   : > { %8343 = shalt.err (!%p8340_p5)
}
 0x12e   : > { %s8344_s11 = scalar_lea.vmem %s896_s14, 32  ;;  %p8352_p4 = scmp.lt.s32.totalorder %s896_s14, %s896_s14 }
 0x12f   : > { %p8345_p9 = scmp.ne.s32.totalorder %s896_s14, %s8344_s11  ;;  %p8353_p3 = scmp.lt.s32.totalorder %s8344_s11, %s8344_s11 }
 0x131   : > { %p8347_p13 = pnand %p8345_p9, %p9834_p8  ;;  %p8354_p10 = por %p8353_p3, %p8352_p4 }
 0x133   : > { %p8348_p0 = pneg %p8347_p13 }
 0x135   : > { %p8355_p12 = pnand %p8354_p10, %p8348_p0 }
 0x137   : > { %8358 = shalt.err (!%p8355_p12)
}
 0x138   : > { %s9836_s20 = smov 1   ;;  %s9837_s29 = smov 16  }
 0x139   : > { %7844 = dma.hbm_to_vmem [thread:$0]  (!%p9835_p1), %s9807_s6, 32, %s896_s14, [#allocation21], %s9837_s29, %s9837_s29, %s9836_s20  }
 0x13a   : > { %s6799_s3 = sshll.u32 %s8543_s0, 7  ;;  %s943_s7 = scalar_lea.vmem [#allocation2], %s6798_s18 }
 0x13b   : > { %s9027_s19 = scalar_lea.hbm %s9808_s5, %s6799_s3  ;;  %s950_s25 = sshll.u32 %s943_s7, 4  ;;  %s951_s25 = int_to_ptr.vmem [resolvable:$true] %s950_s25 }
 0x13c   : > { %s940_s8 = scalar_lea.sflag [#allocation3], %s8904_s2  ;;  %s8359_s11 = scalar_lea.hbm %s9027_s19, 128 }
 0x13d   : > { %p8360_p8 = scmp.ne.s32.totalorder %s9027_s19, %s8359_s11  ;;  %p9838_p6 = scmp.ne.s32.totalorder %s9829_s15, 0 }
 0x13e   : > { %s8364_s12 = scalar_lea.hbm %s9808_s5, 256  ;;  %p8365_p1 = scmp.lt.u32.totalorder %s9027_s19, %s9808_s5 }
 0x13f   : > { %p8362_p7 = pnand %p8360_p8, %p9838_p6  ;;  %p8366_p2 = scmp.lt.u32.totalorder %s8364_s12, %s8359_s11 }
 0x140   : > { %p8368_p9 = scmp.lt.u32.totalorder %s8359_s11, %s9027_s19 }
 0x141   : > { %p8363_p11 = pneg %p8362_p7  ;;  %p8367_p5 = por %p8366_p2, %p8365_p1 }
 0x143   : > { %p8369_p13 = por %p8368_p9, %p8367_p5 }
 0x145   : > { %p8370_p0 = pnand %p8369_p13, %p8363_p11 }
 0x147   : > { %8373 = shalt.err (!%p8370_p0)
}
 0x148   : > { %s8374_s14 = scalar_lea.vmem %s951_s25, 128  ;;  %s8588_s20 = smov [#allocation2]  }
 0x149   : > { %p8375_p4 = scmp.ne.s32.totalorder %s951_s25, %s8374_s14  ;;  %s8379_s29 = sshll.u32 %s8588_s20, 4  ;;  %s8380_s29 = int_to_ptr.vmem [resolvable:$false] %s8379_s29 }
 0x14a   : > { %s8381_s7 = scalar_lea.vmem %s8380_s29, 256  ;;  %p8382_p12 = scmp.lt.s32.totalorder %s951_s25, %s8380_s29 }
 0x14b   : > { %p8377_p3 = pnand %p8375_p4, %p9838_p6  ;;  %p8383_p8 = scmp.lt.s32.totalorder %s8381_s7, %s8374_s14 }
 0x14d   : > { %p8378_p10 = pneg %p8377_p3  ;;  %p8384_p7 = por %p8383_p8, %p8382_p12 }
 0x14f   : > { %p8385_p1 = pnand %p8384_p7, %p8378_p10 }
 0x151   : > { %8388 = shalt.err (!%p8385_p1)
}
 0x152   : > { %p9839_p2 = scmp.ne.s32.totalorder %s9828_s1, 0  ;;  %s9048_s12 = scalar_lea.hbm %s8625_s17, %s6799_s3 }
 0x153   : > { %s8389_s11 = scalar_lea.hbm %s8964_s4, 256  ;;  %s8394_s14 = scalar_lea.hbm %s8620_s13, 512 }
 0x154   : > { %7848 = dma.hbm_to_vmem [thread:$0]  (!%p9839_p2), %s9027_s19, 128, %s951_s25, %s940_s8  }
 0x155   : > { %p8390_p11 = scmp.ne.s32.totalorder %s8964_s4, %s8389_s11  ;;  %p8395_p13 = scmp.lt.u32.totalorder %s8964_s4, %s8620_s13 }
 0x156   : > { %p8396_p0 = scmp.lt.u32.totalorder %s8394_s14, %s8389_s11  ;;  %p8398_p3 = scmp.lt.u32.totalorder %s8389_s11, %s8964_s4 }
 0x157   : > { %p8392_p5 = pnand %p8390_p11, %p9838_p6 }
 0x158   : > { %p8397_p4 = por %p8396_p0, %p8395_p13 }
 0x159   : > { %p8393_p9 = pneg %p8392_p5 }
 0x15a   : > { %p8399_p10 = por %p8398_p3, %p8397_p4 }
 0x15c   : > { %p8400_p12 = pnand %p8399_p10, %p8393_p9 }
 0x15e   : > { %8403 = shalt.err (!%p8400_p12)
}
 0x15f   : > { %s8404_s19 = scalar_lea.vmem %s8968_s9, 256  ;;  %s8589_s3 = smov [#allocation7]  }
 0x160   : > { %p8405_p8 = scmp.ne.s32.totalorder %s8968_s9, %s8404_s19  ;;  %s8409_s25 = sshll.u32 %s8589_s3, 4  ;;  %s8410_s25 = int_to_ptr.vmem [resolvable:$false] %s8409_s25 }
 0x161   : > { %s8411_s8 = scalar_lea.vmem %s8410_s25, 512  ;;  %p8412_p11 = scmp.lt.s32.totalorder %s8968_s9, %s8410_s25 }
 0x162   : > { %p8407_p7 = pnand %p8405_p8, %p9838_p6  ;;  %p8413_p5 = scmp.lt.s32.totalorder %s8411_s8, %s8404_s19 }
 0x164   : > { %p8408_p1 = pneg %p8407_p7  ;;  %p8414_p13 = por %p8413_p5, %p8412_p11 }
 0x166   : > { %p8415_p0 = pnand %p8414_p13, %p8408_p1 }
 0x168   : > { %8418 = shalt.err (!%p8415_p0)
}
 0x169   : > { %7854 = dma.hbm_to_vmem [thread:$0]  (!%p9839_p2), %s8964_s4, 256, %s8968_s9, %s8932_s22, %s9831_s30, %s9831_s30, %s9830_s23  }
 0x16a   : > { %s1003_s20 = scalar_lea.vmem [#allocation8], %s6798_s18  ;;  %s9840_s7 = sand.u32 1, %s8543_s0  }
 0x16b   : > { %s1010_s29 = sshll.u32 %s1003_s20, 4  ;;  %s1000_s11 = scalar_lea.sflag [#allocation9], %s9840_s7  ;;  %s1011_s29 = int_to_ptr.vmem [resolvable:$true] %s1010_s29 }
 0x16c   : > { %s8419_s14 = scalar_lea.hbm %s9048_s12, 128  ;;  %s8424_s19 = scalar_lea.hbm %s8625_s17, 256 }
 0x16d   : > { %p8420_p9 = scmp.ne.s32.totalorder %s9048_s12, %s8419_s14  ;;  %p8425_p10 = scmp.lt.u32.totalorder %s9048_s12, %s8625_s17 }
 0x16e   : > { %p8426_p12 = scmp.lt.u32.totalorder %s8424_s19, %s8419_s14  ;;  %p8428_p7 = scmp.lt.u32.totalorder %s8419_s14, %s9048_s12 }
 0x16f   : > { %p8422_p4 = pnand %p8420_p9, %p9838_p6 }
 0x170   : > { %p8427_p8 = por %p8426_p12, %p8425_p10 }
 0x171   : > { %p8423_p3 = pneg %p8422_p4 }
 0x172   : > { %p8429_p1 = por %p8428_p7, %p8427_p8 }
 0x174   : > { %p8430_p11 = pnand %p8429_p1, %p8423_p3 }
 0x176   : > { %8433 = shalt.err (!%p8430_p11)
}
 0x177   : > { %s8434_s9 = scalar_lea.vmem %s1011_s29, 128  ;;  %s8590_s2 = smov [#allocation8]  }
 0x178   : > { %p8435_p5 = scmp.ne.s32.totalorder %s1011_s29, %s8434_s9  ;;  %s8439_s22 = sshll.u32 %s8590_s2, 4  ;;  %s8440_s22 = int_to_ptr.vmem [resolvable:$false] %s8439_s22 }
 0x179   : > { %s8441_s23 = scalar_lea.vmem %s8440_s22, 256  ;;  %p8442_p9 = scmp.lt.s32.totalorder %s1011_s29, %s8440_s22 }
 0x17a   : > { %p8437_p13 = pnand %p8435_p5, %p9838_p6  ;;  %p8443_p4 = scmp.lt.s32.totalorder %s8441_s23, %s8434_s9 }
 0x17c   : > { %p8438_p0 = pneg %p8437_p13  ;;  %p8444_p2 = por %p8443_p4, %p8442_p9 }
 0x17e   : > { %p8445_p10 = pnand %p8444_p2, %p8438_p0 }
 0x180   : > { %8448 = shalt.err (!%p8445_p10)
}
 0x181   : > { %p9841_p12 = scmp.ne.s32.totalorder %s9828_s1, 0  ;;  %p9842_p3 = scmp.ne.s32.totalorder %s9817_s28, 0 }
 0x182   : > { %s9091_s15 = sand.u32 (!%p9842_p3), 1, %s8535_s16   ;;  %p9843_p6 = scmp.ne.s32.totalorder (!%p9842_p3), %s9823_s10, 0 }
 0x183   : > { %7857 = dma.hbm_to_vmem [thread:$0]  (!%p9841_p12), %s9048_s12, 128, %s1011_s29, %s1000_s11  }
 0x184   : > { %1019 = sbr.rel (%p9842_p3) target bundleno = 13652 (0x3554), region = 140  ;;  %s9094_s30 = sshll.u32 (!%p9842_p3), %s9091_s15, 3 }
 0x185   : > { %s1022_s4 = scalar_lea.sflag (!%p9842_p3), [#allocation3], %s9091_s15  ;;  %s1025_s18 = scalar_lea.vmem (!%p9842_p3), [#allocation2], %s9094_s30 }
 0x18b   : > { %8494 = dma.done.wait (%p9843_p6), %s1022_s4, 128  }
 0x18c   : > { %8496 = vsyncadd (%p9843_p6), %s1022_s4, 4294967168  ;;  %s1030_s28 = sand.u32 1, %s8783_s26   ;;  %s6810_s1 = sshll.u32 %s9091_s15, 4 }
 0x18d   : > { %s1031_s12 = scalar_lea.sflag [#allocation6], %s1030_s28  ;;  %s9104_s3 = scalar_lea.vmem [#allocation5], %s6810_s1 }
 0x18e   : > { %8498 = dma.done.wait (%p9843_p6), %s1031_s12, 512  }
 0x18f   : > { %8500 = vsyncadd (%p9843_p6), %s1031_s12, 4294966784  ;;  %s9110_s25 = scalar_lea.vmem [#allocation7], %s6810_s1  ;;  %s1049_s8 = scalar_lea.sflag [#allocation9], %s1030_s28 }
 0x190   : > { %s1052_s20 = scalar_lea.vmem [#allocation8], %s9094_s30 }
 0x191   : > { %8502 = dma.done.wait (%p9843_p6), %s1049_s8, 128  }
 0x192   : > { %8504 = vsyncadd (%p9843_p6), %s1049_s8, 4294967168  ;;  %p9844_p2 = scmp.eq.s32.totalorder %s8783_s26, 0 }
 0x194   : > { %8506 = dma.done.wait (%p9844_p2), [#allocation9], 1024   ;;  %p9845_p8 = pmov %p9844_p2 }
 0x195   : > { %p9846_p7 = pmov %p9844_p2 }
 0x196   : > { %8508 = vsyncadd (%p9845_p8), [#allocation9], 4294966272 }
 0x197   : > { %8510 = dma.done.wait (%p9846_p7), [#allocation12], 2048   ;;  %p9847_p1 = pmov %p9844_p2 }
 0x199   : > { %8512 = vsyncadd (%p9847_p1), [#allocation12], 4294965248  ;;  %p9848_p11 = pmov %p9847_p1 }
 0x19a   : > { %p9849_p5 = pmov %p9847_p1 }
 0x19b   : > { %8514 = dma.done.wait (%p9848_p11), [#allocation15], 1056  }
 0x19c   : > { %8516 = vsyncadd (%p9849_p5), [#allocation15], 4294966240  ;;  %p9850_p13 = pmov %p9847_p1 }
 0x19d   : > { %p9851_p0 = pmov %p9847_p1 }
 0x19e   : > { %8518 = dma.done.wait (%p9850_p13), [#allocation18], 1056  }
 0x19f   : > { %8520 = vsyncadd (%p9851_p0), [#allocation18], 4294966240  ;;  %p9852_p9 = pmov %p9851_p0 }
 0x1a0   : > { %p9853_p4 = pmov %p9851_p0 }
 0x1a1   : > { %8522 = dma.done.wait (%p9852_p9), [#allocation21], 32  }
 0x1a2   : > { %8524 = vsyncadd (%p9853_p4), [#allocation21], 4294967264  ;;  %v8591_v0 = vmov 0.0|0.0   ;;  %vm8592_vm0 = vmmov 0   ;;  %v8593_v1 = vmov 0.0   ;;  %v1183_v2 = vld [vmem:[%s8630_s21] sm:$0xff] }
 0x1a3   : > { %7618 = vmatprep.subr.bf16.mxu0 %v8591_v0  ;;  %7184 = vmatprep.mubr.msk.f32.mxu0 %vm8592_vm0, %v8593_v1  ;;  %s9854_s10 = sld [smem:[#allocation34_spill]]  ;;  %v1184_v3 = vld [vmem:[%s8630_s21 + $0x8] sm:$0xff]  ;;  %v1185_v4 = vld [vmem:[%s8630_s21 + $0x10] sm:$0xff]  ;;  %v1186_v6 = vld [vmem:[%s8630_s21 + $0x18] sm:$0xff]  ;;  %vm1194_vm1 = vcmask 261120   ;;  %s9855_s29 = sld [smem:[#allocation35_spill]] }
 0x1a4   : > { %7624 = vmatprep.subr.bf16.mxu1 %v8591_v0  ;;  %7195 = vmatprep.mubr.msk.f32.mxu1 %vm8592_vm0, %v8593_v1  ;;  %v7619_v5 = vpack.c.bf16 %v1184_v3, %v1183_v2  ;;  %v7622_v7 = vpack.c.bf16 %v1186_v6, %v1185_v4  ;;  %v9149_v8 = vld [vmem:[%s1025_s18] sm:$0xff]  ;;  %v9153_v9 = vld [vmem:[%s1052_s20] sm:$0xff]  ;;  %s9774_s7 = smov 88   ;;  %s9773_s11 = smov 96   ;;  %vm1359_vm2 = vcmask 64512   ;;  %vm2699_vm4 = vcmask 130048  }
 0x1a5   : > { %v1182_v10 = vadd.f32 %v9153_v9, %v9149_v8  ;;  %s9856_s14 = sld [smem:[#allocation36_spill]]  ;;  %s9771_s19 = smov 120   ;;  %vm9286_vm3 = vmpackc.low %vm1359_vm2, %vm1359_vm2  ;;  %vm3734_vm5 = vcmask 523264  }
 0x1a6   : > { %7620 = vmatpush3.bf16.msra.mxu0 %v7619_v5  ;;  %s9857_s9 = sld [smem:[#allocation37_spill]]  ;;  %s9768_s2 = smov 112  }
 0x1a7   : > { %7621 = vmatprep.subr.bf16.mxu0 %v8591_v0  ;;  %s9770_s22 = smov 80   ;;  %s9766_s23 = smov 104  }
 0x1a8   : > { %s9765_s4 = smov 72   ;;  %s9858_s18 = sld [smem:[#allocation38_spill]] }
 0x1a9   : > { %v6822_v11 = vld [vmem:[%s9854_s10] ss:$0 sm:$0xff]  ;;  %v1269_v17 = vld [vmem:[%s9855_s29 + $0x8] sm:$0xff]  ;;  %v1270_v18 = vld [vmem:[%s9855_s29 + $0x10] sm:$0xff]  ;;  %s9860_s1 = sld [smem:[#allocation49_spill]]  ;;  %s9861_s12 = sld [smem:[#allocation50_spill]] }
 0x1aa   : > { %7623 = vmatpush3.bf16.msra.mxu0 %v7622_v7  ;;  %v1268_v16 = vld [vmem:[%s9855_s29] sm:$0xff]  ;;  %v1271_v20 = vld [vmem:[%s9855_s29 + $0x18] sm:$0xff]  ;;  %s9862_s8 = sld [smem:[#allocation42_spill]]  ;;  %s9878_s5 = smov 120  }
 0x1ab   : > { %7198 = vmatprep.subr.mxu0 %v8593_v1  ;;  %v7625_v19 = vpack.c.bf16 %v1269_v17, %v1268_v16  ;;  %v7628_v21 = vpack.c.bf16 %v1271_v20, %v1270_v18  ;;  %v6824_v30 = vld [vmem:[%s9856_s14] ss:$0 sm:$0xff]  ;;  %s9882_s6 = smov 72  }
 0x1ac   : > { %v1353_v49 = vld [vmem:[%s9857_s9 + $0x8] sm:$0xff]  ;;  %v1352_v54 = vld [vmem:[%s9857_s9] sm:$0xff] }
 0x1ad   : > { %7185 = vmatmul.mubr.msk.f32.vlgmr.msra.gmra.mrb[0].mxu0 %vm1194_vm1, %v1182_v10  ;;  %7626 = vmatpush3.bf16.msra.mxu1 %v7625_v19 }
 0x1ae   : > { %7200 = vmatprep.mubr.msk.f32.mxu0 %vm8592_vm0, %v8593_v1  ;;  %7627 = vmatprep.subr.bf16.mxu1 %v8591_v0  ;;  %s9859_s28 = smov %s9858_s18 }
 0x1b1   : > { %7629 = vmatpush3.bf16.msra.mxu1 %v7628_v21 }
 0x1b2   : > { %7213 = vmatprep.subr.mxu1 %v8593_v1 }
 0x1b4   : > { %7196 = vmatmul.mubr.msk.f32.vlgmr.msra.gmra.mrb[0].mxu1 %vm1194_vm1, %v9149_v8 }
 0x1b5   : > { %7215 = vmatprep.mubr.msk.f32.mxu1 %vm8592_vm0, %v8593_v1 }
 0x280   : > { %v1264_v12 = vpop.f32.mrb[0].mxu0 }
 0x281   : > { %v9163_v13 = vadd.f32 %v6822_v11, %v1264_v12  ;;  %v7186_v14 = vpop.f32.mrb[1].mxu0 }
 0x283   : > { %1520 = vrot.lane.b32.xlu1 %v9163_v13, %s9774_s7  ;;  %1357 = vrot.lane.b32.xlu0 %v9163_v13, %s9773_s11  ;;  %s9873_s11 = sld [smem:[#allocation53_spill]] }
 0x287   : > { %v1348_v31 = vpop.f32.mrb[0].mxu1 }
 0x288   : > { %v9190_v32 = vadd.f32 %v6824_v30, %v1348_v31  ;;  %v7197_v33 = vpop.f32.mrb[1].mxu1  ;;  %v1355_v30 = vld [vmem:[%s9857_s9 + $0x18] sm:$0xff] }
 0x2f5   : > { %v1358_v15 = vpop.permute.xlu0 %1357  ;;  %v1521_v34 = vpop.permute.xlu1 %1520 }
 0x2f6   : > { %7199 = vmatpush3.xpose.msk.msra.mxu0 %vm1359_vm2, %v1358_v15 }
 0x2f7   : > { %7203 = vmatprep.subr.mxu0 %v8593_v1 }
 0x2f9   : > { %7201 = vmatmul.mubr.msk.f32.vlgmr.msra.gmra.mrb[2].mxu0 %vm1359_vm2, %v9163_v13 }
 0x2fa   : > { %7205 = vmatprep.mubr.msk.f32.mxu0 %vm8592_vm0, %v8593_v1  ;;  %7204 = vmatpush3.msra.mxu0 %v9190_v32 }
 0x2fb   : > { %7208 = vmatprep.subr.mxu0 %v8593_v1 }
 0x3cc   : > { %v1430_v22 = vpop.f32.mrb[2].mxu0 }
 0x3cd   : > { %v7202_v23 = vpop.f32.mrb[3].mxu0  ;;  %v1434_v24 = vsel %vm1359_vm2, %v1430_v22, -inf }
 0x3ce   : > { %1435 = vmax.xlane.f32.xlu0 %v1434_v24 }
 0x45b   : > { %v1436_v25 = vpop.xlane.xlu0 %1435 }
 0x45c   : > { %v1437_v26 = vsub.f32 %v1430_v22, %v1436_v25 }
 0x45e   : > { %v1438_v27 = vmul.f32 1.442695, %v1437_v26 }
 0x460   : > { %8024 = vpow2.f32 %v1438_v27 }
 0x46a   : > { %v8025_v28 = vpop.eup %8024 }
 0x46b   : > { %v1440_v29 = vsel %vm1359_vm2, %v8025_v28, 0.0 }
 0x46c   : > { %1441 = vadd.xlane.f32.xlu1 %v1440_v29 }
 0x47d   : > { %1518 = vrot.lane.b32.xlu1 %v9163_v13, %s9771_s19 }
 0x4f9   : > { %v1442_v35 = vpop.xlane.xlu1 %1441 }
 0x4fa   : > { %8026 = vrcp.f32 %v1442_v35 }
 0x4fd   : > { %v1519_v38 = vpop.permute.xlu1 %1518 }
 0x504   : > { %v8027_v36 = vpop.eup %8026 }
 0x505   : > { %v1444_v37 = vmul.f32 %v8027_v36, %v8025_v28 }
 0x507   : > { %7206 = vmatmul.mubr.msk.f32.vlgmr.msra.gmra.mrb[4].mxu0 %vm1359_vm2, %v1444_v37 }
 0x508   : > { %7209 = vmatpush3.xpose.msk.msra.mxu0 %vm1359_vm2, %v1521_v34  ;;  %7210 = vmatprep.mubr.msk.f32.mxu0 %vm8592_vm0, %v8593_v1 }
 0x509   : > { %7218 = vmatprep.subr.mxu0 %v8593_v1 }
 0x50b   : > { %7211 = vmatmul.mubr.msk.f32.vlgmr.msra.gmra.mrb[6].mxu0 %vm1359_vm2, %v1519_v38 }
 0x50c   : > { %7220 = vmatprep.mubr.msk.f32.mxu0 %vm8592_vm0, %v8593_v1  ;;  %7219 = vmatpush3.msra.mxu0 %v1353_v49 }
 0x50d   : > { %7228 = vmatprep.subr.mxu0 %v8593_v1 }
 0x5da   : > { %v1514_v39 = vpop.f32.mrb[4].mxu0 }
 0x5db   : > { %v7207_v40 = vpop.f32.mrb[5].mxu0 }
 0x5dc   : > { %v6842_v40 = vld [vmem:[%s9858_s18] ss:$0 sm:$0xff]  ;;  %s9863_s18 = sld [smem:[#allocation40_spill]] }
 0x5de   : > { %v1592_v41 = vpop.f32.mrb[6].mxu0 }
 0x5df   : > { %v7212_v42 = vpop.f32.mrb[7].mxu0  ;;  %v1596_v43 = vsel %vm1359_vm2, %v1592_v41, -inf }
 0x5e0   : > { %1597 = vmax.xlane.f32.xlu1 %v1596_v43 }
 0x5f1   : > { %1830 = vrot.lane.b32.xlu1 %v9163_v13, %s9768_s2 }
 0x66d   : > { %v1598_v44 = vpop.xlane.xlu1 %1597 }
 0x66e   : > { %v1599_v45 = vsub.f32 %v1592_v41, %v1598_v44 }
 0x670   : > { %v1600_v46 = vmul.f32 1.442695, %v1599_v45 }
 0x671   : > { %v1831_v58 = vpop.permute.xlu1 %1830 }
 0x672   : > { %8028 = vpow2.f32 %v1600_v46 }
 0x67c   : > { %v8029_v47 = vpop.eup %8028 }
 0x67d   : > { %v1602_v48 = vsel %vm1359_vm2, %v8029_v47, 0.0 }
 0x67e   : > { %1603 = vadd.xlane.f32.xlu0 %v1602_v48 }
 0x694   : > { %1608 = vrot.lane.b32.xlu0 %v9190_v32, %s9771_s19 }
 0x698   : > { %1832 = vrot.lane.b32.xlu0 %v9163_v13, %s9770_s22  ;;  %s9870_s22 = sld [smem:[#allocation52_spill]] }
 0x70b   : > { %v1604_v50 = vpop.xlane.xlu0 %1603 }
 0x70c   : > { %8030 = vrcp.f32 %v1604_v50 }
 0x70f   : > { %v1609_v51 = vpop.permute.xlu0 %1608 }
 0x710   : > { %7214 = vmatpush3.msra.mxu1 %v1609_v51  ;;  %v2432_v51 = vld [vmem:[#allocation11] sm:$0xff] }
 0x711   : > { %7223 = vmatprep.subr.mxu1 %v8593_v1 }
 0x713   : > { %v1833_v56 = vpop.permute.xlu0 %1832 }
 0x716   : > { %v8031_v52 = vpop.eup %8030 }
 0x717   : > { %v1606_v53 = vmul.f32 %v8031_v52, %v8029_v47  ;;  %v2433_v52 = vld [vmem:[#allocation11 + $0x8] sm:$0xff] }
 0x719   : > { %7216 = vmatmul.mubr.msk.f32.vlgmr.msra.gmra.mrb[2].mxu1 %vm1359_vm2, %v1606_v53  ;;  %v7636_v53 = vpack.c.bf16 %v2433_v52, %v2432_v51 }
 0x71a   : > { %7224 = vmatpush3.msra.mxu1 %v1352_v54  ;;  %7225 = vmatprep.mubr.msk.f32.mxu1 %vm8592_vm0, %v8593_v1  ;;  %v2434_v54 = vld [vmem:[#allocation11 + $0x10] sm:$0xff] }
 0x71b   : > { %7233 = vmatprep.subr.mxu1 %v8593_v1 }
 0x71d   : > { %7226 = vmatmul.mubr.msk.f32.vlgmr.msra.gmra.mrb[4].mxu1 %vm1359_vm2, %v1514_v39 }
 0x71e   : > { %7235 = vmatprep.mubr.msk.f32.mxu1 %vm8592_vm0, %v8593_v1 }
 0x7ec   : > { %v1680_v55 = vpop.f32.mrb[2].mxu1 }
 0x7ed   : > { %v7217_v57 = vpop.f32.mrb[3].mxu1  ;;  %7221 = vmatmul.mubr.msk.f32.vlgmr.msra.gmra.mrb[8].mxu0 %vm1359_vm2, %v1680_v55  ;;  %v2435_v55 = vld [vmem:[#allocation11 + $0x18] sm:$0xff] }
 0x7ee   : > { %7229 = vmatpush3.xpose.msk.msra.mxu0 %vm1359_vm2, %v1833_v56  ;;  %7230 = vmatprep.mubr.msk.f32.mxu0 %vm8592_vm0, %v8593_v1  ;;  %v9266_v56 = vld [vmem:[%s9104_s3] sm:$0xff]  ;;  %v1178_v57 = vld [vmem:[%s9104_s3 + $0x8] sm:$0xff] }
 0x7ef   : > { %7238 = vmatprep.subr.mxu0 %v8593_v1 }
 0x7f0   : > { %v1826_v59 = vpop.f32.mrb[4].mxu1 }
 0x7f1   : > { %v7227_v60 = vpop.f32.mrb[5].mxu1  ;;  %7231 = vmatmul.mubr.msk.f32.vlgmr.msra.gmra.mrb[10].mxu0 %vm1359_vm2, %v1831_v58  ;;  %v2348_v58 = vld [vmem:[#allocation10] sm:$0xff] }
 0x7f2   : > { %7240 = vmatprep.mubr.msk.f32.mxu0 %vm8592_vm0, %v8593_v1 }
 0x8c0   : > { %v1753_v61 = vpop.f32.mrb[8].mxu0 }
 0x8c1   : > { %v1827_v62 = vadd.f32 %v1826_v59, %v1753_v61  ;;  %v7222_v63 = vpop.f32.mrb[9].mxu0  ;;  %v2349_v59 = vld [vmem:[#allocation10 + $0x8] sm:$0xff]  ;;  %v2350_v61 = vld [vmem:[#allocation10 + $0x10] sm:$0xff] }
 0x8c2   : > { %v7631_v60 = vpack.c.bf16 %v2349_v59, %v2348_v58 }
 0x8c4   : > { %v1904_v2 = vpop.f32.mrb[10].mxu0 }
 0x8c5   : > { %v7232_v3 = vpop.f32.mrb[11].mxu0  ;;  %v1908_v4 = vsel %vm1359_vm2, %v1904_v2, -inf }
 0x8c6   : > { %1909 = vmax.xlane.f32.xlu0 %v1908_v4 }
 0x8dc   : > { %1919 = vrot.lane.b32.xlu0 %v9190_v32, %s9768_s2 }
 0x8e0   : > { %2069 = vrot.lane.b32.xlu0 %v9163_v13, %s9766_s23 }
 0x953   : > { %v1910_v5 = vpop.xlane.xlu0 %1909 }
 0x954   : > { %v1911_v6 = vsub.f32 %v1904_v2, %v1910_v5 }
 0x956   : > { %v1912_v7 = vmul.f32 1.442695, %v1911_v6  ;;  %v6843_v6 = vld [vmem:[%s9860_s1] ss:$0 sm:$0xff] }
 0x957   : > { %v1920_v10 = vpop.permute.xlu0 %1919 }
 0x958   : > { %8032 = vpow2.f32 %v1912_v7  ;;  %7234 = vmatpush3.msra.mxu1 %v1920_v10  ;;  %v6844_v10 = vld [vmem:[%s9861_s12] ss:$0 sm:$0xff] }
 0x959   : > { %7243 = vmatprep.subr.mxu1 %v8593_v1 }
 0x95b   : > { %v2070_v18 = vpop.permute.xlu0 %2069 }
 0x962   : > { %v8033_v11 = vpop.eup %8032 }
 0x963   : > { %v1914_v12 = vsel %vm1359_vm2, %v8033_v11, 0.0 }
 0x964   : > { %1915 = vadd.xlane.f32.xlu1 %v1914_v12 }
 0x975   : > { %2071 = vrot.lane.b32.xlu1 %v9163_v13, %s9765_s4  ;;  %v1354_v13 = vld [vmem:[%s9857_s9 + $0x10] sm:$0xff]  ;;  %s9864_s4 = smov %s9863_s18 }
 0x976   : > { %7239 = vmatpush3.msra.mxu0 %v1354_v13 }
 0x977   : > { %7248 = vmatprep.subr.mxu0 %v8593_v1 }
 0x9f1   : > { %v1916_v14 = vpop.xlane.xlu1 %1915 }
 0x9f2   : > { %8034 = vrcp.f32 %v1916_v14 }
 0x9f5   : > { %v2072_v17 = vpop.permute.xlu1 %2071 }
 0x9fc   : > { %v8035_v15 = vpop.eup %8034 }
 0x9fd   : > { %v1918_v16 = vmul.f32 %v8035_v15, %v8033_v11  ;;  %v6847_v15 = vld [vmem:[%s9862_s8] ss:$0 sm:$0xff] }
 0x9ff   : > { %7236 = vmatmul.mubr.msk.f32.vlgmr.msra.gmra.mrb[6].mxu1 %vm1359_vm2, %v1918_v16 }
 0xa00   : > { %7244 = vmatpush3.xpose.msk.msra.mxu1 %vm1359_vm2, %v2072_v17  ;;  %7245 = vmatprep.mubr.msk.f32.mxu1 %vm8592_vm0, %v8593_v1 }
 0xa01   : > { %7253 = vmatprep.subr.mxu1 %v8593_v1 }
 0xa03   : > { %7246 = vmatmul.mubr.msk.f32.vlgmr.msra.gmra.mrb[8].mxu1 %vm1359_vm2, %v2070_v18 }
 0xa04   : > { %7255 = vmatprep.mubr.msk.f32.mxu1 %vm8592_vm0, %v8593_v1  ;;  %7254 = vmatpush3.msra.mxu1 %v1355_v30  ;;  %v2525_v30 = vld [vmem:[#allocation13 + $0x8] sm:$0xff] }
 0xa05   : > { %7637 = vmatprep.subr.bf16.mxu1 %v7636_v53 }
 0xad2   : > { %v1991_v19 = vpop.f32.mrb[6].mxu1 }
 0xad3   : > { %v7237_v20 = vpop.f32.mrb[7].mxu1  ;;  %7241 = vmatmul.mubr.msk.f32.vlgmr.msra.gmra.mrb[12].mxu0 %vm1359_vm2, %v1991_v19 }
 0xad4   : > { %7250 = vmatprep.mubr.msk.f32.mxu0 %vm8592_vm0, %v8593_v1 }
 0xad6   : > { %v2143_v21 = vpop.f32.mrb[8].mxu1 }
 0xad7   : > { %v7247_v22 = vpop.f32.mrb[9].mxu1  ;;  %v2147_v23 = vsel %vm1359_vm2, %v2143_v21, -inf }
 0xad8   : > { %2148 = vmax.xlane.f32.xlu0 %v2147_v23 }
 0xaee   : > { %2158 = vrot.lane.b32.xlu0 %v9190_v32, %s9766_s23 }
 0xb65   : > { %v2149_v24 = vpop.xlane.xlu0 %2148 }
 0xb66   : > { %v2150_v25 = vsub.f32 %v2143_v21, %v2149_v24  ;;  %v6845_v24 = vld [vmem:[%s9863_s18] ss:$0 sm:$0xff]  ;;  %s9867_s18 = sld [smem:[#allocation47_spill]] }
 0xb68   : > { %v2151_v26 = vmul.f32 1.442695, %v2150_v25 }
 0xb69   : > { %v2159_v27 = vpop.permute.xlu0 %2158 }
 0xb6a   : > { %8036 = vpow2.f32 %v2151_v26  ;;  %7249 = vmatpush3.msra.mxu0 %v2159_v27 }
 0xb6b   : > { %7630 = vmatprep.subr.bf16.mxu0 %v8591_v0 }
 0xb74   : > { %v8037_v28 = vpop.eup %8036 }
 0xb75   : > { %v2153_v29 = vsel %vm1359_vm2, %v8037_v28, 0.0 }
 0xb76   : > { %2154 = vadd.xlane.f32.xlu1 %v2153_v29  ;;  %v2524_v29 = vld [vmem:[#allocation13] sm:$0xff] }
 0xba6   : > { %v2064_v31 = vpop.f32.mrb[12].mxu0 }
 0xba7   : > { %v2068_v33 = vadd.f32 %v2064_v31, %v1827_v62  ;;  %v7242_v34 = vpop.f32.mrb[13].mxu0  ;;  %v2351_v62 = vld [vmem:[#allocation10 + $0x18] sm:$0xff]  ;;  %v2526_v31 = vld [vmem:[#allocation13 + $0x10] sm:$0xff] }
 0xba8   : > { %v7634_v63 = vpack.c.bf16 %v2351_v62, %v2350_v61  ;;  %v2527_v34 = vld [vmem:[#allocation13 + $0x18] sm:$0xff] }
 0xc03   : > { %v2155_v35 = vpop.xlane.xlu1 %2154 }
 0xc04   : > { %8038 = vrcp.f32 %v2155_v35  ;;  %v9306_v35 = vld [vmem:[%s9110_s25] sm:$0xff] }
 0xc0e   : > { %v8039_v32 = vpop.eup %8038 }
 0xc0f   : > { %v2157_v36 = vmul.f32 %v8039_v32, %v8037_v28  ;;  %v7648_v32 = vpack.c.bf16 %v2527_v34, %v2526_v31 }
 0xc11   : > { %7251 = vmatmul.mubr.msk.f32.vlgmr.msra.gmra.mrb[14].mxu0 %vm1359_vm2, %v2157_v36  ;;  %v1180_v36 = vld [vmem:[%s9110_s25 + $0x8] sm:$0xff] }
 0xc12   : > { %7266 = vmatprep.mubr.msk.f32.mxu0 %vm8592_vm0, %v8593_v1  ;;  %7632 = vmatpush3.bf16.msra.mxu0 %v7631_v60 }
 0xc13   : > { %7633 = vmatprep.subr.bf16.mxu0 %v8591_v0 }
 0xc16   : > { %7635 = vmatpush3.bf16.msra.mxu0 %v7634_v63 }
 0xce4   : > { %v2230_v37 = vpop.f32.mrb[14].mxu0 }
 0xce5   : > { %v7252_v38 = vpop.f32.mrb[15].mxu0  ;;  %7256 = vmatmul.mubr.msk.f32.vlgmr.msra.gmra.mrb[10].mxu1 %vm1359_vm2, %v2230_v37 }
 0xce6   : > { %7639 = vmatpush3.bf16.msra.mxu1 %v7636_v53  ;;  %7277 = vmatprep.mubr.msk.f32.mxu1 %vm1194_vm1, %v9266_v56 }
 0xdb8   : > { %v2303_v39 = vpop.f32.mrb[10].mxu1 }
 0xdb9   : > { %v2307_v41 = vadd.f32 %v2303_v39, %v2068_v33  ;;  %v7257_v42 = vpop.f32.mrb[11].mxu1  ;;  %v7644_v33 = vpack.c.bf16 %v2525_v30, %v2524_v29 }
 0xdbb   : > { %v2315_v43 = vadd.f32 %v6842_v40, %v2307_v41  ;;  %7645 = vmatprep.subr.bf16.mxu0 %v7644_v33 }
 0xdbd   : > { %v2316_v44 = vadd.f32 %v2315_v43, %v9149_v8  ;;  %v7640_v8 = vpack.c.bf16 %v2435_v55, %v2434_v54 }
 0xdbf   : > { %v2319_v45 = vsel %vm1194_vm1, %v2316_v44, 0.0  ;;  %7641 = vmatprep.subr.bf16.mxu1 %v7640_v8 }
 0xdc0   : > { %2320 = vadd.xlane.f32.xlu1 %v2319_v45  ;;  %7643 = vmatpush3.bf16.msra.mxu1 %v7640_v8 }
 0xdc1   : > { %7652 = vmatprep.subr.bf16.mxu1 %v8591_v0 }
 0xdc3   : > { %7278 = vmatmul.mubr.msk.f32.vlgmr.msra.gmra.mrb[12].mxu1 %vm1194_vm1, %v1178_v57 }
 0xdc4   : > { %7295 = vmatprep.mubr.msk.f32.mxu1 %vm8592_vm0, %v8593_v1 }
 0xe4d   : > { %v2321_v46 = vpop.xlane.xlu1 %2320 }
 0xe4e   : > { %v2323_v47 = vmul.f32 0.03125, %v2321_v46 }
 0xe50   : > { %v2324_v48 = vsub.f32 %v2316_v44, %v2323_v47 }
 0xe52   : > { %v2325_v49 = vmul.f32 %v2324_v48, %v2324_v48 }
 0xe54   : > { %v2326_v50 = vsel %vm1194_vm1, %v2325_v49, 0.0 }
 0xe55   : > { %2327 = vadd.xlane.f32.xlu1 %v2326_v50 }
 0xe96   : > { %v7279_v16 = vpop.f32.mrb[12].mxu1 }
 0xe97   : > { %v2521_v17 = vadd.f32 %v7279_v16, %v6847_v15  ;;  %v2515_v18 = vpop.f32.mrb[13].mxu1 }
 0xe98   : > { %v2516_v13 = vadd.f32 %v6847_v15, %v2515_v18 }
 0xe9a   : > { %v7653_v20 = vpack.c.bf16 %v2521_v17, %v2516_v13  ;;  %v9290_v21 = vpack.i.bf16 %v2521_v17, %v2516_v13 }
 0xe9c   : > { %7965 = vrot.lane.b32.xlu0 %v9290_v21, %s9771_s19  ;;  %7655 = vmatpush3.bf16.xpose.msk.msra.mxu1 %vm9286_vm3, %v7653_v20 }
 0xe9d   : > { %7659 = vmatprep.subr.bf16.mxu1 %v8591_v0 }
 0xee2   : > { %v2328_v2 = vpop.xlane.xlu1 %2327 }
 0xee3   : > { %v2329_v3 = vmul.f32 0.03125, %v2328_v2  ;;  %v2616_v2 = vld [vmem:[#allocation16] sm:$0xff] }
 0xee5   : > { %v2330_v4 = vadd.f32 1e-05, %v2329_v3 }
 0xee7   : > { %8040 = vrsqrt.f32 %v2330_v4 }
 0xef1   : > { %v8041_v5 = vpop.eup %8040 }
 0xef2   : > { %v2332_v7 = vmul.f32 %v8041_v5, %v2324_v48  ;;  %v6850_v48 = vld [vmem:[#allocation14] ss:$0 sm:$0xff] }
 0xef4   : > { %v2339_v11 = vmul.f32 %v6843_v6, %v2332_v7 }
 0xef6   : > { %v9278_v12 = vadd.f32 %v6844_v10, %v2339_v11 }
 0xef8   : > { %v2347_v14 = vadd.f32 %v9278_v12, %v9153_v9 }
 0xefa   : > { %7267 = vmatmul.mubr.msk.f32.vlgmr.msra.gmra.mrb[16].mxu0 %vm1194_vm1, %v2347_v14  ;;  %v2617_v14 = vld [vmem:[#allocation16 + $0x8] sm:$0xff] }
 0xefb   : > { %7288 = vmatprep.mubr.msk.f32.mxu0 %vm1194_vm1, %v9306_v35  ;;  %7647 = vmatpush3.bf16.msra.mxu0 %v7644_v33 }
 0xefc   : > { %7649 = vmatprep.subr.bf16.mxu0 %v7648_v32 }
 0xeff   : > { %7651 = vmatpush3.bf16.msra.mxu0 %v7648_v32 }
 0xf00   : > { %7656 = vmatprep.subr.bf16.mxu0 %v8591_v0 }
 0xf02   : > { %7289 = vmatmul.mubr.msk.f32.vlgmr.msra.gmra.mrb[18].mxu0 %vm1194_vm1, %v1180_v36 }
 0xf03   : > { %7302 = vmatprep.mubr.msk.f32.mxu0 %vm8592_vm0, %v8593_v1 }
 0xf0e   : > { %v7966_v9 = vpop.permute.xlu0 %7965 }
 0xf0f   : > { %v7968_v22 = vunpack.i.h.bf16 %v7966_v9  ;;  %v7967_v23 = vunpack.i.l.bf16 %v7966_v9 }
 0xf11   : > { %v7660_v26 = vpack.c.bf16 %v7968_v22, %v7967_v23 }
 0xfcd   : > { %v2428_v25 = vpop.f32.mrb[16].mxu0 }
 0xfce   : > { %v2429_v27 = vadd.f32 %v6845_v24, %v2428_v25  ;;  %v7268_v28 = vpop.f32.mrb[17].mxu0 }
 0xfd0   : > { %2784 = vrot.lane.b32.xlu1 %v2429_v27, %s9771_s19  ;;  %7296 = vmatmul.mubr.msk.f32.vlgmr.msra.gmra.mrb[14].mxu1 %vm1359_vm2, %v2429_v27 }
 0xfd1   : > { %7662 = vmatpush3.bf16.xpose.msk.msra.mxu1 %vm9286_vm3, %v7660_v26  ;;  %7309 = vmatprep.mubr.msk.f32.mxu1 %vm8592_vm0, %v8593_v1 }
 0xfd2   : > { %7324 = vmatprep.subr.mxu1 %v8593_v1 }
 0xfd5   : > { %v7290_v47 = vpop.f32.mrb[18].mxu0 }
 0xfd6   : > { %v2613_v49 = vadd.f32 %v7290_v47, %v6850_v48  ;;  %v2607_v50 = vpop.f32.mrb[19].mxu0 }
 0xfd7   : > { %v2608_v51 = vadd.f32 %v6850_v48, %v2607_v50 }
 0xfd9   : > { %v9323_v52 = vpack.i.bf16 %v2613_v49, %v2608_v51  ;;  %v7657_v55 = vpack.c.bf16 %v2613_v49, %v2608_v51 }
 0xfdb   : > { %7658 = vmatpush3.bf16.msra.mxu0 %v7657_v55 }
 0xfdc   : > { %7663 = vmatprep.subr.bf16.mxu0 %v8591_v0 }
0x1042   : > { %v2785_v37 = vpop.permute.xlu1 %2784 }
0x1043   : > { %7310 = vmatmul.mubr.msk.f32.vlgmr.msra.gmra.mrb[16].mxu1 %vm1359_vm2, %v2785_v37 }
0x1044   : > { %7326 = vmatprep.mubr.msk.f32.mxu1 %vm8592_vm0, %v8593_v1  ;;  %7325 = vmatpush3.msra.mxu1 %v2616_v2 }
0x1045   : > { %7670 = vmatprep.subr.bf16.mxu1 %v8591_v0 }
0x10a3   : > { %v2695_v38 = vpop.f32.mrb[14].mxu1 }
0x10a4   : > { %v7297_v39 = vpop.f32.mrb[15].mxu1  ;;  %v2700_v40 = vsel %vm2699_vm4, %v2695_v38, -inf }
0x10a5   : > { %2701 = vmax.xlane.f32.xlu0 %v2700_v40 }
0x1116   : > { %v2862_v41 = vpop.f32.mrb[16].mxu1 }
0x1117   : > { %v7311_v42 = vpop.f32.mrb[17].mxu1  ;;  %v2866_v43 = vsel %vm2699_vm4, %v2862_v41, -inf }
0x1118   : > { %2867 = vmax.xlane.f32.xlu1 %v2866_v43 }
0x1129   : > { %7975 = vrot.lane.b32.xlu1 %v9290_v21, %s9768_s2 }
0x112d   : > { %3350 = vrot.lane.b32.xlu1 %v2429_v27, %s9766_s23 }
0x1132   : > { %v2702_v44 = vpop.xlane.xlu0 %2701 }
0x1133   : > { %v2703_v45 = vsub.f32 %v2695_v38, %v2702_v44 }
0x1135   : > { %v2704_v46 = vmul.f32 1.442695, %v2703_v45 }
0x1137   : > { %8042 = vpow2.f32 %v2704_v46 }
0x1141   : > { %v8043_v53 = vpop.eup %8042 }
0x1142   : > { %v2706_v54 = vsel %vm2699_vm4, %v8043_v53, 0.0 }
0x1143   : > { %2707 = vadd.xlane.f32.xlu0 %v2706_v54 }
0x11a5   : > { %v2868_v8 = vpop.xlane.xlu1 %2867 }
0x11a6   : > { %v2869_v57 = vsub.f32 %v2862_v41, %v2868_v8 }
0x11a8   : > { %v2870_v58 = vmul.f32 1.442695, %v2869_v57 }
0x11a9   : > { %v7976_v17 = vpop.permute.xlu1 %7975 }
0x11aa   : > { %8044 = vpow2.f32 %v2870_v58  ;;  %v7978_v13 = vunpack.i.h.bf16 %v7976_v17  ;;  %v7977_v20 = vunpack.i.l.bf16 %v7976_v17  ;;  %v2618_v58 = vld [vmem:[#allocation16 + $0x10] sm:$0xff] }
0x11b4   : > { %v8045_v59 = vpop.eup %8044 }
0x11b5   : > { %v2872_v60 = vsel %vm2699_vm4, %v8045_v59, 0.0 }
0x11b6   : > { %2873 = vadd.xlane.f32.xlu0 %v2872_v60 }
0x11cc   : > { %7970 = vrot.lane.b32.xlu0 %v9323_v52, %s9771_s19 }
0x11d0   : > { %v2708_v61 = vpop.xlane.xlu0 %2707  ;;  %3104 = vrot.lane.b32.xlu0 %v2429_v27, %s9768_s2  ;;  %v3351_v27 = vpop.permute.xlu1 %3350 }
0x11d1   : > { %8046 = vrcp.f32 %v2708_v61 }
0x11d4   : > { %7980 = vrot.lane.b32.xlu0 %v9290_v21, %s9766_s23  ;;  %v7667_v21 = vpack.c.bf16 %v7978_v13, %v7977_v20 }
0x11db   : > { %v8047_v62 = vpop.eup %8046 }
0x11dc   : > { %v2710_v63 = vmul.f32 %v8047_v62, %v8043_v53 }
0x11de   : > { %7303 = vmatmul.mubr.msk.f32.vlgmr.msra.gmra.mrb[20].mxu0 %vm2699_vm4, %v2710_v63 }
0x11df   : > { %7316 = vmatprep.mubr.msk.f32.mxu0 %vm8592_vm0, %v8593_v1 }
0x1243   : > { %v2874_v3 = vpop.xlane.xlu0 %2873 }
0x1244   : > { %8048 = vrcp.f32 %v2874_v3 }
0x1247   : > { %v7971_v4 = vpop.permute.xlu0 %7970 }
0x1248   : > { %v7973_v5 = vunpack.i.h.bf16 %v7971_v4  ;;  %v7972_v6 = vunpack.i.l.bf16 %v7971_v4 }
0x124a   : > { %v7664_v7 = vpack.c.bf16 %v7973_v5, %v7972_v6  ;;  %v2619_v5 = vld [vmem:[#allocation16 + $0x18] sm:$0xff] }
0x124b   : > { %v3105_v18 = vpop.permute.xlu0 %3104 }
0x124c   : > { %7665 = vmatpush3.bf16.msra.mxu0 %v7664_v7 }
0x124d   : > { %7319 = vmatprep.subr.mxu0 %v8593_v1 }
0x124e   : > { %v8049_v10 = vpop.eup %8048 }
0x124f   : > { %v2876_v11 = vmul.f32 %v8049_v10, %v8045_v59  ;;  %v7981_v22 = vpop.permute.xlu0 %7980 }
0x1250   : > { %v7983_v24 = vunpack.i.h.bf16 %v7981_v22  ;;  %v7982_v25 = vunpack.i.l.bf16 %v7981_v22 }
0x1251   : > { %7317 = vmatmul.mubr.msk.f32.vlgmr.msra.gmra.mrb[22].mxu0 %vm2699_vm4, %v2876_v11 }
0x1252   : > { %7320 = vmatpush3.msra.mxu0 %v2617_v14  ;;  %7321 = vmatprep.mubr.msk.f32.mxu0 %vm8592_vm0, %v8593_v1  ;;  %v7674_v26 = vpack.c.bf16 %v7983_v24, %v7982_v25 }
0x1253   : > { %7666 = vmatprep.subr.bf16.mxu0 %v8591_v0 }
0x12b1   : > { %v2780_v15 = vpop.f32.mrb[20].mxu0 }
0x12b2   : > { %v7304_v16 = vpop.f32.mrb[21].mxu0  ;;  %7327 = vmatmul.mubr.msk.f32.vlgmr.msra.gmra.mrb[18].mxu1 %vm1359_vm2, %v2780_v15 }
0x12b3   : > { %7340 = vmatprep.mubr.msk.f32.mxu1 %vm8592_vm0, %v8593_v1  ;;  %v6873_v16 = vld [vmem:[#allocation17] ss:$0 sm:$0xff] }
0x1324   : > { %v2954_v9 = vpop.f32.mrb[22].mxu0 }
0x1325   : > { %v7318_v23 = vpop.f32.mrb[23].mxu0  ;;  %7322 = vmatmul.mubr.msk.f32.vlgmr.msra.gmra.mrb[24].mxu0 %vm1359_vm2, %v2954_v9 }
0x1326   : > { %7669 = vmatpush3.bf16.xpose.msk.msra.mxu0 %vm9286_vm3, %v7667_v21  ;;  %7333 = vmatprep.mubr.msk.f32.mxu0 %vm8592_vm0, %v8593_v1 }
0x1327   : > { %7673 = vmatprep.subr.bf16.mxu0 %v8591_v0 }
0x132d   : > { %7334 = vmatmul.mubr.msk.f32.vlgmr.msra.gmra.mrb[26].mxu0 %vm1359_vm2, %v3105_v18 }
0x132e   : > { %7676 = vmatpush3.bf16.xpose.msk.msra.mxu0 %vm9286_vm3, %v7674_v26  ;;  %7352 = vmatprep.mubr.msk.f32.mxu0 %vm8592_vm0, %v8593_v1  ;;  %v3634_v26 = vld [vmem:[#allocation19] sm:$0xff] }
0x132f   : > { %7680 = vmatprep.subr.bf16.mxu0 %v8591_v0 }
0x1335   : > { %7353 = vmatmul.mubr.msk.f32.vlgmr.msra.gmra.mrb[28].mxu0 %vm1359_vm2, %v3351_v27  ;;  %v3635_v27 = vld [vmem:[#allocation19 + $0x8] sm:$0xff] }
0x1336   : > { %7375 = vmatprep.mubr.msk.f32.mxu0 %vm8592_vm0, %v8593_v1 }
0x1385   : > { %v3100_v28 = vpop.f32.mrb[18].mxu1 }
0x1386   : > { %v7328_v29 = vpop.f32.mrb[19].mxu1 }
0x1387   : > { %v3637_v29 = vld [vmem:[#allocation19 + $0x18] sm:$0xff] }
0x13f8   : > { %v3027_v30 = vpop.f32.mrb[24].mxu0 }
0x13f9   : > { %v3101_v31 = vadd.f32 %v3100_v28, %v3027_v30  ;;  %v7323_v33 = vpop.f32.mrb[25].mxu0  ;;  %v7681_v28 = vpack.c.bf16 %v3635_v27, %v3634_v26 }
0x13fb   : > { %7682 = vmatpush3.bf16.msra.mxu0 %v7681_v28  ;;  %v9426_v28 = vld [vmem:[%s1052_s20] sm:$0xff]  ;;  %s9876_s20 = smov 88  }
0x13fc   : > { %7683 = vmatprep.subr.bf16.mxu0 %v8591_v0 }
0x1400   : > { %v3182_v34 = vpop.f32.mrb[26].mxu0 }
0x1401   : > { %v7335_v32 = vpop.f32.mrb[27].mxu0  ;;  %v3186_v36 = vsel %vm2699_vm4, %v3182_v34, -inf }
0x1402   : > { %3187 = vmax.xlane.f32.xlu0 %v3186_v36 }
0x1408   : > { %v3428_v37 = vpop.f32.mrb[28].mxu0 }
0x1409   : > { %v7354_v38 = vpop.f32.mrb[29].mxu0  ;;  %v3432_v48 = vsel %vm2699_vm4, %v3428_v37, -inf }
0x1418   : > { %7985 = vrot.lane.b32.xlu0 %v9323_v52, %s9768_s2  ;;  %s9869_s2 = sld [smem:[#allocation51_spill]] }
0x148f   : > { %v3188_v39 = vpop.xlane.xlu0 %3187 }
0x1490   : > { %v3189_v40 = vsub.f32 %v3182_v34, %v3188_v39 }
0x1492   : > { %v3190_v41 = vmul.f32 1.442695, %v3189_v40 }
0x1493   : > { %v7986_v42 = vpop.permute.xlu0 %7985 }
0x1494   : > { %8050 = vpow2.f32 %v3190_v41  ;;  %v7988_v43 = vunpack.i.h.bf16 %v7986_v42  ;;  %v7987_v44 = vunpack.i.l.bf16 %v7986_v42 }
0x1496   : > { %v7671_v45 = vpack.c.bf16 %v7988_v43, %v7987_v44 }
0x1498   : > { %7672 = vmatpush3.bf16.msra.mxu1 %v7671_v45  ;;  %v6874_v45 = vld [vmem:[%s9869_s2] ss:$0 sm:$0xff] }
0x1499   : > { %7343 = vmatprep.subr.mxu1 %v8593_v1 }
0x149e   : > { %v8051_v46 = vpop.eup %8050 }
0x149f   : > { %v3192_v47 = vsel %vm2699_vm4, %v8051_v46, 0.0 }
0x14a0   : > { %3193 = vadd.xlane.f32.xlu1 %v3192_v47  ;;  %v6875_v47 = vld [vmem:[%s9870_s22] ss:$0 sm:$0xff] }
0x14a4   : > { %3433 = vmax.xlane.f32.xlu1 %v3432_v48 }
0x152d   : > { %v3194_v49 = vpop.xlane.xlu1 %3193 }
0x152e   : > { %8052 = vrcp.f32 %v3194_v49 }
0x1531   : > { %v3434_v50 = vpop.xlane.xlu1 %3433 }
0x1532   : > { %v3435_v51 = vsub.f32 %v3428_v37, %v3434_v50 }
0x1534   : > { %v3436_v53 = vmul.f32 1.442695, %v3435_v51 }
0x1536   : > { %8054 = vpow2.f32 %v3436_v53 }
0x1538   : > { %v8053_v54 = vpop.eup %8052 }
0x1539   : > { %v3196_v55 = vmul.f32 %v8053_v54, %v8051_v46  ;;  %v6876_v54 = vld [vmem:[#allocation20] ss:$0 sm:$0xff] }
0x153b   : > { %7341 = vmatmul.mubr.msk.f32.vlgmr.msra.gmra.mrb[20].mxu1 %vm2699_vm4, %v3196_v55 }
0x153c   : > { %7345 = vmatprep.mubr.msk.f32.mxu1 %vm8592_vm0, %v8593_v1  ;;  %7344 = vmatpush3.msra.mxu1 %v2618_v58 }
0x153d   : > { %7677 = vmatprep.subr.bf16.mxu1 %v8591_v0 }
0x1540   : > { %v8055_v8 = vpop.eup %8054 }
0x1541   : > { %v3438_v57 = vsel %vm2699_vm4, %v8055_v8, 0.0 }
0x1542   : > { %3439 = vadd.xlane.f32.xlu1 %v3438_v57 }
0x1553   : > { %7990 = vrot.lane.b32.xlu1 %v9323_v52, %s9766_s23  ;;  %s9868_s23 = smov %s9867_s18 }
0x1554   : > { %v3720_v33 = vld [vmem:[%s9868_s23 + $0x8] sm:$0xff]  ;;  %v3721_v34 = vld [vmem:[%s9868_s23 + $0x10] sm:$0xff]  ;;  %v3722_v36 = vld [vmem:[%s9868_s23 + $0x18] sm:$0xff] }
0x1555   : > { %v7690_v37 = vpack.c.bf16 %v3722_v36, %v3721_v34  ;;  %v3723_v38 = vld [vmem:[%s9868_s23 + $0x20] sm:$0xff]  ;;  %v3724_v39 = vld [vmem:[%s9868_s23 + $0x28] sm:$0xff]  ;;  %v3725_v50 = vld [vmem:[%s9868_s23 + $0x30] sm:$0xff] }
0x1556   : > { %v7693_v40 = vpack.c.bf16 %v3724_v39, %v3723_v38  ;;  %v3726_v51 = vld [vmem:[%s9868_s23 + $0x38] sm:$0xff]  ;;  %v6894_v39 = vld [vmem:[%s9856_s14 + $0x1] ss:$0 sm:$0xff] }
0x1557   : > { %v7696_v53 = vpack.c.bf16 %v3726_v51, %v3725_v50 }
0x15cf   : > { %v3440_v59 = vpop.xlane.xlu1 %3439 }
0x15d0   : > { %8056 = vrcp.f32 %v3440_v59 }
0x15d3   : > { %v7991_v60 = vpop.permute.xlu1 %7990 }
0x15d4   : > { %v7993_v61 = vunpack.i.h.bf16 %v7991_v60  ;;  %v7992_v62 = vunpack.i.l.bf16 %v7991_v60 }
0x15d6   : > { %v7678_v2 = vpack.c.bf16 %v7993_v61, %v7992_v62 }
0x15da   : > { %v8057_v63 = vpop.eup %8056 }
0x15db   : > { %v3442_v52 = vmul.f32 %v8057_v63, %v8055_v8 }
0x160e   : > { %v3272_v3 = vpop.f32.mrb[20].mxu1 }
0x160f   : > { %v7342_v4 = vpop.f32.mrb[21].mxu1  ;;  %7346 = vmatmul.mubr.msk.f32.vlgmr.msra.gmra.mrb[22].mxu1 %vm1359_vm2, %v3272_v3 }
0x1610   : > { %7679 = vmatpush3.bf16.msra.mxu1 %v7678_v2  ;;  %7359 = vmatprep.mubr.msk.f32.mxu1 %vm8592_vm0, %v8593_v1 }
0x1611   : > { %7362 = vmatprep.subr.mxu1 %v8593_v1 }
0x1613   : > { %7360 = vmatmul.mubr.msk.f32.vlgmr.msra.gmra.mrb[24].mxu1 %vm2699_vm4, %v3442_v52 }
0x1614   : > { %7364 = vmatprep.mubr.msk.f32.mxu1 %vm8592_vm0, %v8593_v1  ;;  %7363 = vmatpush3.msra.mxu1 %v2619_v5 }
0x1615   : > { %7686 = vmatprep.subr.bf16.mxu1 %v8591_v0 }
0x16e2   : > { %v3345_v6 = vpop.f32.mrb[22].mxu1 }
0x16e3   : > { %v3349_v7 = vadd.f32 %v3345_v6, %v3101_v31  ;;  %v7347_v10 = vpop.f32.mrb[23].mxu1  ;;  %v3719_v31 = vld [vmem:[%s9867_s18] sm:$0xff]  ;;  %s9871_s18 = sld [smem:[#allocation48_spill]] }
0x16e4   : > { %v7687_v32 = vpack.c.bf16 %v3720_v33, %v3719_v31  ;;  %v6883_v10 = vld [vmem:[%s8630_s21 + $0x28] sm:$0xff]  ;;  %v6887_v33 = vld [vmem:[%s9854_s10 + $0x1] ss:$0 sm:$0xff] }
0x16e6   : > { %v3518_v11 = vpop.f32.mrb[24].mxu1 }
0x16e7   : > { %v7361_v14 = vpop.f32.mrb[25].mxu1  ;;  %7365 = vmatmul.mubr.msk.f32.vlgmr.msra.gmra.mrb[26].mxu1 %vm1359_vm2, %v3518_v11 }
0x16e8   : > { %7394 = vmatprep.mubr.msk.f32.mxu1 %vm8592_vm0, %v8593_v1  ;;  %7688 = vmatpush3.bf16.msra.mxu1 %v7687_v32  ;;  %v6884_v14 = vld [vmem:[%s8630_s21 + $0x30] sm:$0xff] }
0x16e9   : > { %7689 = vmatprep.subr.bf16.mxu1 %v8591_v0  ;;  %s9872_s19 = smov %s9871_s18  ;;  %v6878_v59 = vld [vmem:[%s9871_s18] ss:$0 sm:$0xff]  ;;  %s9874_s18 = sld [smem:[#allocation54_spill]] }
0x16ec   : > { %7691 = vmatpush3.bf16.msra.mxu1 %v7690_v37 }
0x16ed   : > { %7692 = vmatprep.subr.bf16.mxu1 %v8591_v0 }
0x16ef   : > { %s9875_s7 = smov %s9874_s18 }
0x16f0   : > { %7694 = vmatpush3.bf16.msra.mxu1 %v7693_v40 }
0x16f1   : > { %7695 = vmatprep.subr.bf16.mxu1 %v8591_v0 }
0x16f4   : > { %7697 = vmatpush3.bf16.msra.mxu1 %v7696_v53 }
0x16f5   : > { %7419 = vmatprep.subr.mxu1 %v8593_v1 }
0x17ba   : > { %v3591_v15 = vpop.f32.mrb[26].mxu1 }
0x17bb   : > { %v3595_v17 = vadd.f32 %v3591_v15, %v3349_v7  ;;  %v7366_v18 = vpop.f32.mrb[27].mxu1  ;;  %v6882_v7 = vld [vmem:[%s8630_s21 + $0x20] sm:$0xff]  ;;  %v6885_v15 = vld [vmem:[%s8630_s21 + $0x38] sm:$0xff] }
0x17bc   : > { %v7699_v11 = vpack.c.bf16 %v6883_v10, %v6882_v7 }
0x17bd   : > { %v3603_v13 = vadd.f32 %v6873_v16, %v3595_v17  ;;  %v7702_v16 = vpack.c.bf16 %v6885_v15, %v6884_v14 }
0x17bf   : > { %v3604_v20 = vadd.f32 %v3603_v13, %v9278_v12  ;;  %v3636_v12 = vld [vmem:[#allocation19 + $0x10] sm:$0xff] }
0x17c0   : > { %v7684_v30 = vpack.c.bf16 %v3637_v29, %v3636_v12  ;;  %v6891_v29 = vld [vmem:[%s9855_s29 + $0x30] sm:$0xff] }
0x17c1   : > { %v3607_v21 = vsel %vm1194_vm1, %v3604_v20, 0.0 }
0x17c2   : > { %3608 = vadd.xlane.f32.xlu0 %v3607_v21  ;;  %7685 = vmatpush3.bf16.msra.mxu0 %v7684_v30  ;;  %v6880_v21 = vld [vmem:[%s9873_s11] ss:$0 sm:$0xff]  ;;  %v6892_v30 = vld [vmem:[%s9855_s29 + $0x38] sm:$0xff] }
0x17c3   : > { %7698 = vmatprep.subr.bf16.mxu0 %v8591_v0  ;;  %v7708_v31 = vpack.c.bf16 %v6892_v30, %v6891_v29 }
0x184f   : > { %v3609_v9 = vpop.xlane.xlu0 %3608 }
0x1850   : > { %v3610_v22 = vmul.f32 0.03125, %v3609_v9 }
0x1852   : > { %v3611_v23 = vsub.f32 %v3604_v20, %v3610_v22  ;;  %v6881_v22 = vld [vmem:[%s9874_s18] ss:$0 sm:$0xff]  ;;  %s9877_s18 = smov 96  }
0x1854   : > { %v3612_v24 = vmul.f32 %v3611_v23, %v3611_v23 }
0x1856   : > { %v3613_v25 = vsel %vm1194_vm1, %v3612_v24, 0.0  ;;  %v6889_v24 = vld [vmem:[%s9855_s29 + $0x20] sm:$0xff] }
0x1857   : > { %3614 = vadd.xlane.f32.xlu1 %v3613_v25  ;;  %v6890_v25 = vld [vmem:[%s9855_s29 + $0x28] sm:$0xff] }
0x1858   : > { %v7705_v27 = vpack.c.bf16 %v6890_v25, %v6889_v24 }
0x18e4   : > { %v3615_v41 = vpop.xlane.xlu1 %3614 }
0x18e5   : > { %v3616_v42 = vmul.f32 0.03125, %v3615_v41 }
0x18e7   : > { %v3617_v43 = vadd.f32 1e-05, %v3616_v42 }
0x18e9   : > { %8058 = vrsqrt.f32 %v3617_v43 }
0x18f3   : > { %v8059_v44 = vpop.eup %8058 }
0x18f4   : > { %v3619_v46 = vmul.f32 %v8059_v44, %v3611_v23 }
0x18f6   : > { %v3626_v48 = vmul.f32 %v6874_v45, %v3619_v46 }
0x18f8   : > { %v3633_v49 = vadd.f32 %v6875_v47, %v3626_v48 }
0x18fa   : > { %7376 = vmatmul.mubr.msk.f32.vlgmr.msra.gmra.mrb[30].mxu0 %vm1194_vm1, %v3633_v49 }
0x18fb   : > { %7405 = vmatprep.mubr.msk.f32.mxu0 %vm8592_vm0, %v8593_v1  ;;  %7700 = vmatpush3.bf16.msra.mxu0 %v7699_v11 }
0x18fc   : > { %7701 = vmatprep.subr.bf16.mxu0 %v8591_v0 }
0x18ff   : > { %7703 = vmatpush3.bf16.msra.mxu0 %v7702_v16 }
0x1900   : > { %7704 = vmatprep.subr.bf16.mxu0 %v8591_v0 }
0x19cd   : > { %v3714_v55 = vpop.f32.mrb[30].mxu0 }
0x19ce   : > { %v3715_v8 = vadd.f32 %v6876_v54, %v3714_v55  ;;  %v7377_v57 = vpop.f32.mrb[31].mxu0 }
0x19d0   : > { %v3718_v58 = vmax.f32 %v3715_v8, 0.0 }
0x19d2   : > { %7395 = vmatmul.mubr.msk.f32.vlgmr.msra.gmra.mrb[28].mxu1 %vm3734_vm5, %v3718_v58 }
0x19d3   : > { %7421 = vmatprep.mubr.msk.f32.mxu1 %vm8592_vm0, %v8593_v1 }
0x1aa5   : > { %v3804_v60 = vpop.f32.mrb[28].mxu1 }
0x1aa6   : > { %v3805_v61 = vadd.f32 %v6878_v59, %v3804_v60  ;;  %v7396_v62 = vpop.f32.mrb[29].mxu1 }
0x1aa8   : > { %v3808_v63 = vadd.f32 %v3805_v61, %v3633_v49  ;;  %v6897_v61 = vld [vmem:[%s9857_s9 + $0x28] sm:$0xff] }
0x1aaa   : > { %v3811_v2 = vsel %vm1194_vm1, %v3808_v63, 0.0 }
0x1aab   : > { %3812 = vadd.xlane.f32.xlu0 %v3811_v2 }
0x1b38   : > { %v3813_v3 = vpop.xlane.xlu0 %3812 }
0x1b39   : > { %v3814_v4 = vmul.f32 0.03125, %v3813_v3 }
0x1b3b   : > { %v3815_v52 = vsub.f32 %v3808_v63, %v3814_v4 }
0x1b3d   : > { %v3816_v5 = vmul.f32 %v3815_v52, %v3815_v52 }
0x1b3f   : > { %v3817_v6 = vsel %vm1194_vm1, %v3816_v5, 0.0 }
0x1b40   : > { %3818 = vadd.xlane.f32.xlu0 %v3817_v6  ;;  %v6896_v6 = vld [vmem:[%s9857_s9 + $0x20] sm:$0xff] }
0x1bcd   : > { %v3819_v17 = vpop.xlane.xlu0 %3818 }
0x1bce   : > { %v3820_v18 = vmul.f32 0.03125, %v3819_v17 }
0x1bd0   : > { %v3821_v13 = vadd.f32 1e-05, %v3820_v18 }
0x1bd2   : > { %8060 = vrsqrt.f32 %v3821_v13 }
0x1bdc   : > { %v8061_v20 = vpop.eup %8060 }
0x1bdd   : > { %v3823_v9 = vmul.f32 %v8061_v20, %v3815_v52 }
0x1bdf   : > { %v3830_v23 = vmul.f32 %v6880_v21, %v3823_v9 }
0x1be1   : > { %v9422_v26 = vadd.f32 %v6881_v22, %v3830_v23 }
0x1be3   : > { %v3838_v12 = vadd.f32 %v9426_v28, %v9422_v26 }
0x1be5   : > { %7406 = vmatmul.mubr.msk.f32.vlgmr.msra.gmra.mrb[32].mxu0 %vm1194_vm1, %v3838_v12 }
0x1be6   : > { %7706 = vmatpush3.bf16.msra.mxu0 %v7705_v27  ;;  %7416 = vmatprep.mubr.msk.f32.mxu0 %vm8592_vm0, %v8593_v1 }
0x1be7   : > { %7707 = vmatprep.subr.bf16.mxu0 %v8591_v0 }
0x1bea   : > { %7709 = vmatpush3.bf16.msra.mxu0 %v7708_v31 }
0x1beb   : > { %7429 = vmatprep.subr.mxu0 %v8593_v1 }
0x1bed   : > { %7417 = vmatmul.mubr.msk.f32.vlgmr.msra.gmra.mrb[34].mxu0 %vm1194_vm1, %v9422_v26 }
0x1bee   : > { %7431 = vmatprep.mubr.msk.f32.mxu0 %vm8592_vm0, %v8593_v1 }
0x1cb8   : > { %v3921_v34 = vpop.f32.mrb[32].mxu0 }
0x1cb9   : > { %v9442_v32 = vadd.f32 %v6887_v33, %v3921_v34  ;;  %v7407_v36 = vpop.f32.mrb[33].mxu0 }
0x1cbb   : > { %4179 = vrot.lane.b32.xlu1 %v9442_v32, %s9876_s20  ;;  %4017 = vrot.lane.b32.xlu0 %v9442_v32, %s9877_s18  ;;  %s9879_s20 = smov 80   ;;  %s9880_s18 = smov 112  }
0x1cbf   : > { %4177 = vrot.lane.b32.xlu0 %v9442_v32, %s9878_s5 }
0x1cc0   : > { %v4007_v37 = vpop.f32.mrb[34].mxu0 }
0x1cc1   : > { %v7418_v38 = vpop.f32.mrb[35].mxu0  ;;  %v9455_v42 = vadd.f32 %v6894_v39, %v4007_v37 }
0x1d2d   : > { %v4180_v40 = vpop.permute.xlu1 %4179  ;;  %v4018_v41 = vpop.permute.xlu0 %4017 }
0x1d2e   : > { %7420 = vmatpush3.xpose.msk.msra.mxu1 %vm1359_vm2, %v4018_v41  ;;  %7430 = vmatpush3.xpose.msk.msra.mxu0 %vm1359_vm2, %v4180_v40 }
0x1d2f   : > { %7424 = vmatprep.subr.mxu1 %v8593_v1  ;;  %7439 = vmatprep.subr.mxu0 %v8593_v1 }
0x1d31   : > { %7422 = vmatmul.mubr.msk.f32.vlgmr.msra.gmra.mrb[30].mxu1 %vm1359_vm2, %v9442_v32  ;;  %v4178_v43 = vpop.permute.xlu0 %4177 }
0x1d32   : > { %7425 = vmatpush3.msra.mxu1 %v9455_v42  ;;  %7432 = vmatmul.mubr.msk.f32.vlgmr.msra.gmra.mrb[36].mxu0 %vm1359_vm2, %v4178_v43 }
0x1d33   : > { %7426 = vmatprep.mubr.msk.f32.mxu1 %vm8592_vm0, %v8593_v1  ;;  %7434 = vmatprep.subr.mxu1 %v8593_v1 }
0x1d34   : > { %7441 = vmatprep.mubr.msk.f32.mxu0 %vm8592_vm0, %v8593_v1  ;;  %7440 = vmatpush3.msra.mxu0 %v6897_v61 }
0x1d35   : > { %7449 = vmatprep.subr.mxu0 %v8593_v1 }
0x1e04   : > { %v4089_v44 = vpop.f32.mrb[30].mxu1 }
0x1e05   : > { %v7423_v45 = vpop.f32.mrb[31].mxu1  ;;  %v4251_v46 = vpop.f32.mrb[36].mxu0  ;;  %v4093_v47 = vsel %vm1359_vm2, %v4089_v44, -inf }
0x1e06   : > { %4094 = vmax.xlane.f32.xlu1 %v4093_v47  ;;  %v7433_v48 = vpop.f32.mrb[37].mxu0  ;;  %v4255_v49 = vsel %vm1359_vm2, %v4251_v46, -inf }
0x1e07   : > { %4256 = vmax.xlane.f32.xlu0 %v4255_v49  ;;  %v6899_v49 = vld [vmem:[%s9857_s9 + $0x38] sm:$0xff] }
0x1e93   : > { %v4095_v50 = vpop.xlane.xlu1 %4094 }
0x1e94   : > { %v4096_v51 = vsub.f32 %v4089_v44, %v4095_v50  ;;  %v4257_v53 = vpop.xlane.xlu0 %4256 }
0x1e95   : > { %v4258_v54 = vsub.f32 %v4251_v46, %v4257_v53 }
0x1e96   : > { %v4097_v55 = vmul.f32 1.442695, %v4096_v51 }
0x1e97   : > { %v4259_v8 = vmul.f32 1.442695, %v4258_v54 }
0x1e98   : > { %8062 = vpow2.f32 %v4097_v55 }
0x1e99   : > { %8064 = vpow2.f32 %v4259_v8 }
0x1ea2   : > { %v8063_v57 = vpop.eup %8062 }
0x1ea3   : > { %v8065_v58 = vpop.eup %8064  ;;  %v4099_v59 = vsel %vm1359_vm2, %v8063_v57, 0.0 }
0x1ea4   : > { %4100 = vadd.xlane.f32.xlu0 %v4099_v59  ;;  %v4261_v60 = vsel %vm1359_vm2, %v8065_v58, 0.0 }
0x1ea5   : > { %4262 = vadd.xlane.f32.xlu1 %v4261_v60  ;;  %v6917_v60 = vld [vmem:[%s9859_s28 + $0x1] ss:$0 sm:$0xff] }
0x1eb6   : > { %4491 = vrot.lane.b32.xlu1 %v9442_v32, %s9879_s20  ;;  %s9881_s20 = smov 104  }
0x1eba   : > { %4267 = vrot.lane.b32.xlu0 %v9455_v42, %s9878_s5  ;;  %4489 = vrot.lane.b32.xlu1 %v9442_v32, %s9880_s18 }
0x1f31   : > { %v4101_v62 = vpop.xlane.xlu0 %4100 }
0x1f32   : > { %8066 = vrcp.f32 %v4101_v62  ;;  %v4263_v63 = vpop.xlane.xlu1 %4262 }
0x1f33   : > { %8068 = vrcp.f32 %v4263_v63 }
0x1f35   : > { %v4268_v52 = vpop.permute.xlu0 %4267 }
0x1f36   : > { %v4492_v11 = vpop.permute.xlu1 %4491 }
0x1f3a   : > { %v4490_v16 = vpop.permute.xlu1 %4489 }
0x1f3c   : > { %v8067_v2 = vpop.eup %8066 }
0x1f3d   : > { %v4103_v3 = vmul.f32 %v8067_v2, %v8063_v57  ;;  %v8069_v4 = vpop.eup %8068 }
0x1f3e   : > { %v4265_v5 = vmul.f32 %v8069_v4, %v8065_v58 }
0x1f3f   : > { %7427 = vmatmul.mubr.msk.f32.vlgmr.msra.gmra.mrb[32].mxu1 %vm1359_vm2, %v4103_v3 }
0x1f40   : > { %7435 = vmatpush3.msra.mxu1 %v4268_v52  ;;  %7436 = vmatprep.mubr.msk.f32.mxu1 %vm8592_vm0, %v8593_v1 }
0x1f41   : > { %7444 = vmatprep.subr.mxu1 %v8593_v1 }
0x1f43   : > { %7437 = vmatmul.mubr.msk.f32.vlgmr.msra.gmra.mrb[34].mxu1 %vm1359_vm2, %v4265_v5 }
0x1f44   : > { %7446 = vmatprep.mubr.msk.f32.mxu1 %vm8592_vm0, %v8593_v1  ;;  %7445 = vmatpush3.msra.mxu1 %v6896_v6 }
0x1f45   : > { %7454 = vmatprep.subr.mxu1 %v8593_v1 }
0x2012   : > { %v4173_v7 = vpop.f32.mrb[32].mxu1 }
0x2013   : > { %v7428_v10 = vpop.f32.mrb[33].mxu1  ;;  %7447 = vmatmul.mubr.msk.f32.vlgmr.msra.gmra.mrb[36].mxu1 %vm1359_vm2, %v4173_v7 }
0x2014   : > { %7456 = vmatprep.mubr.msk.f32.mxu1 %vm8592_vm0, %v8593_v1  ;;  %v5096_v10 = vld [vmem:[#allocation11 + $0x20] sm:$0xff] }
0x2016   : > { %v4339_v14 = vpop.f32.mrb[34].mxu1 }
0x2017   : > { %v7438_v15 = vpop.f32.mrb[35].mxu1  ;;  %7442 = vmatmul.mubr.msk.f32.vlgmr.msra.gmra.mrb[38].mxu0 %vm1359_vm2, %v4339_v14  ;;  %v5098_v14 = vld [vmem:[#allocation11 + $0x30] sm:$0xff] }
0x2018   : > { %7450 = vmatpush3.xpose.msk.msra.mxu0 %vm1359_vm2, %v4492_v11  ;;  %7451 = vmatprep.mubr.msk.f32.mxu0 %vm8592_vm0, %v8593_v1  ;;  %v5099_v15 = vld [vmem:[#allocation11 + $0x38] sm:$0xff] }
0x2019   : > { %7459 = vmatprep.subr.mxu0 %v8593_v1 }
0x201b   : > { %7452 = vmatmul.mubr.msk.f32.vlgmr.msra.gmra.mrb[40].mxu0 %vm1359_vm2, %v4490_v16  ;;  %v7720_v16 = vpack.c.bf16 %v5099_v15, %v5098_v14 }
0x201c   : > { %7461 = vmatprep.mubr.msk.f32.mxu0 %vm8592_vm0, %v8593_v1 }
0x20e6   : > { %v4485_v17 = vpop.f32.mrb[36].mxu1 }
0x20e7   : > { %v7448_v18 = vpop.f32.mrb[37].mxu1 }
0x20e8   : > { %v5011_v18 = vld [vmem:[#allocation10 + $0x28] sm:$0xff] }
0x20ea   : > { %v4412_v13 = vpop.f32.mrb[38].mxu0 }
0x20eb   : > { %v4486_v20 = vadd.f32 %v4485_v17, %v4412_v13  ;;  %v7443_v21 = vpop.f32.mrb[39].mxu0  ;;  %v5010_v17 = vld [vmem:[#allocation10 + $0x20] sm:$0xff] }
0x20ec   : > { %v7711_v13 = vpack.c.bf16 %v5011_v18, %v5010_v17  ;;  %v5013_v21 = vld [vmem:[#allocation10 + $0x38] sm:$0xff] }
0x20ee   : > { %v4563_v9 = vpop.f32.mrb[40].mxu0 }
0x20ef   : > { %v7453_v22 = vpop.f32.mrb[41].mxu0  ;;  %v4567_v23 = vsel %vm1359_vm2, %v4563_v9, -inf }
0x20f0   : > { %4568 = vmax.xlane.f32.xlu0 %v4567_v23 }
0x2106   : > { %4578 = vrot.lane.b32.xlu0 %v9455_v42, %s9880_s18 }
0x210a   : > { %4728 = vrot.lane.b32.xlu0 %v9442_v32, %s9881_s20 }
0x217d   : > { %v4569_v24 = vpop.xlane.xlu0 %4568 }
0x217e   : > { %v4570_v25 = vsub.f32 %v4563_v9, %v4569_v24 }
0x2180   : > { %v4571_v27 = vmul.f32 1.442695, %v4570_v25 }
0x2181   : > { %v4579_v12 = vpop.permute.xlu0 %4578 }
0x2182   : > { %8070 = vpow2.f32 %v4571_v27  ;;  %7455 = vmatpush3.msra.mxu1 %v4579_v12  ;;  %v6920_v27 = vld [vmem:[%s9860_s1 + $0x1] ss:$0 sm:$0xff] }
0x2183   : > { %7464 = vmatprep.subr.mxu1 %v8593_v1 }
0x2185   : > { %v4729_v37 = vpop.permute.xlu0 %4728 }
0x218c   : > { %v8071_v29 = vpop.eup %8070 }
0x218d   : > { %v4573_v30 = vsel %vm1359_vm2, %v8071_v29, 0.0 }
0x218e   : > { %4574 = vadd.xlane.f32.xlu1 %v4573_v30 }
0x219f   : > { %4730 = vrot.lane.b32.xlu1 %v9442_v32, %s9882_s6  ;;  %v6898_v32 = vld [vmem:[%s9857_s9 + $0x30] sm:$0xff]  ;;  %s9884_s6 = sld [smem:[#allocation56_spill]] }
0x21a0   : > { %7460 = vmatpush3.msra.mxu0 %v6898_v32 }
0x21a1   : > { %7469 = vmatprep.subr.mxu0 %v8593_v1 }
0x221b   : > { %v4575_v31 = vpop.xlane.xlu1 %4574 }
0x221c   : > { %8072 = vrcp.f32 %v4575_v31 }
0x221f   : > { %v4731_v36 = vpop.permute.xlu1 %4730 }
0x2226   : > { %v8073_v33 = vpop.eup %8072 }
0x2227   : > { %v4577_v34 = vmul.f32 %v8073_v33, %v8071_v29  ;;  %v6921_v29 = vld [vmem:[%s9861_s12 + $0x1] ss:$0 sm:$0xff] }
0x2229   : > { %7457 = vmatmul.mubr.msk.f32.vlgmr.msra.gmra.mrb[38].mxu1 %vm1359_vm2, %v4577_v34  ;;  %v6926_v34 = vld [vmem:[%s9862_s8 + $0x1] ss:$0 sm:$0xff] }
0x222a   : > { %7465 = vmatpush3.xpose.msk.msra.mxu1 %vm1359_vm2, %v4731_v36  ;;  %7466 = vmatprep.mubr.msk.f32.mxu1 %vm8592_vm0, %v8593_v1 }
0x222b   : > { %7474 = vmatprep.subr.mxu1 %v8593_v1 }
0x222d   : > { %7467 = vmatmul.mubr.msk.f32.vlgmr.msra.gmra.mrb[40].mxu1 %vm1359_vm2, %v4729_v37 }
0x222e   : > { %7476 = vmatprep.mubr.msk.f32.mxu1 %vm8592_vm0, %v8593_v1  ;;  %7475 = vmatpush3.msra.mxu1 %v6899_v49  ;;  %v6923_v49 = vld [vmem:[%s9864_s4 + $0x1] ss:$0 sm:$0xff]  ;;  %s6532_s4 = scalar_lea.sflag [#allocation4], %s9091_s15 }
0x22fc   : > { %v4650_v38 = vpop.f32.mrb[38].mxu1 }
0x22fd   : > { %v7458_v39 = vpop.f32.mrb[39].mxu1  ;;  %7462 = vmatmul.mubr.msk.f32.vlgmr.msra.gmra.mrb[42].mxu0 %vm1359_vm2, %v4650_v38 }
0x22fe   : > { %7471 = vmatprep.mubr.msk.f32.mxu0 %vm8592_vm0, %v8593_v1 }
0x2300   : > { %v4802_v40 = vpop.f32.mrb[40].mxu1 }
0x2301   : > { %v7468_v41 = vpop.f32.mrb[41].mxu1  ;;  %v4806_v43 = vsel %vm1359_vm2, %v4802_v40, -inf }
0x2302   : > { %4807 = vmax.xlane.f32.xlu1 %v4806_v43  ;;  %v5185_v41 = vld [vmem:[#allocation13 + $0x28] sm:$0xff] }
0x238f   : > { %v4808_v44 = vpop.xlane.xlu1 %4807 }
0x2390   : > { %v4809_v45 = vsub.f32 %v4802_v40, %v4808_v44  ;;  %v5187_v44 = vld [vmem:[#allocation13 + $0x38] sm:$0xff] }
0x2392   : > { %v4810_v46 = vmul.f32 1.442695, %v4809_v45 }
0x2394   : > { %8074 = vpow2.f32 %v4810_v46 }
0x239e   : > { %v8075_v47 = vpop.eup %8074 }
0x239f   : > { %v4812_v48 = vsel %vm1359_vm2, %v8075_v47, 0.0 }
0x23a0   : > { %4813 = vadd.xlane.f32.xlu0 %v4812_v48 }
0x23b6   : > { %4817 = vrot.lane.b32.xlu0 %v9455_v42, %s9881_s20 }
0x23d0   : > { %v4723_v50 = vpop.f32.mrb[42].mxu0 }
0x23d1   : > { %v4727_v51 = vadd.f32 %v4723_v50, %v4486_v20  ;;  %v7463_v53 = vpop.f32.mrb[43].mxu0  ;;  %v5012_v20 = vld [vmem:[#allocation10 + $0x30] sm:$0xff] }
0x23d2   : > { %v7714_v9 = vpack.c.bf16 %v5013_v21, %v5012_v20 }
0x242d   : > { %v4814_v54 = vpop.xlane.xlu0 %4813 }
0x242e   : > { %8076 = vrcp.f32 %v4814_v54 }
0x2431   : > { %v4818_v55 = vpop.permute.xlu0 %4817 }
0x2432   : > { %7470 = vmatpush3.msra.mxu0 %v4818_v55  ;;  %v8104_v55 = vld [vmem:[%s9110_s25 + $0x8] sm:$0xff]  ;;  %s9886_s25 = sld [smem:[#allocation62_spill]] }
0x2433   : > { %7710 = vmatprep.subr.bf16.mxu0 %v8591_v0 }
0x2438   : > { %v8077_v8 = vpop.eup %8076  ;;  %p9887_p12 = scmp.ne.s32.totalorder %s9886_s25, 0 }
0x2439   : > { %v4816_v57 = vmul.f32 %v8077_v8, %v8075_v47 }
0x243b   : > { %7472 = vmatmul.mubr.msk.f32.vlgmr.msra.gmra.mrb[44].mxu0 %vm1359_vm2, %v4816_v57 }
0x243c   : > { %7487 = vmatprep.mubr.msk.f32.mxu0 %vm8592_vm0, %v8593_v1  ;;  %7712 = vmatpush3.bf16.msra.mxu0 %v7711_v13 }
0x243d   : > { %7713 = vmatprep.subr.bf16.mxu0 %v8591_v0 }
0x2440   : > { %7715 = vmatpush3.bf16.msra.mxu0 %v7714_v9 }
0x250e   : > { %v4889_v42 = vpop.f32.mrb[44].mxu0 }
0x250f   : > { %v7473_v58 = vpop.f32.mrb[45].mxu0  ;;  %7477 = vmatmul.mubr.msk.f32.vlgmr.msra.gmra.mrb[42].mxu1 %vm1359_vm2, %v4889_v42 }
0x2510   : > { %7498 = vmatprep.mubr.msk.f32.mxu1 %vm1194_vm1, %v9266_v56  ;;  %v5097_v56 = vld [vmem:[#allocation11 + $0x28] sm:$0xff] }
0x2511   : > { %v7716_v11 = vpack.c.bf16 %v5097_v56, %v5096_v10 }
0x2513   : > { %7717 = vmatprep.subr.bf16.mxu1 %v7716_v11 }
0x2514   : > { %7719 = vmatpush3.bf16.msra.mxu1 %v7716_v11 }
0x2515   : > { %7721 = vmatprep.subr.bf16.mxu1 %v7720_v16 }
0x2518   : > { %7723 = vmatpush3.bf16.msra.mxu1 %v7720_v16 }
0x2519   : > { %7732 = vmatprep.subr.bf16.mxu1 %v8591_v0 }
0x25e2   : > { %v4962_v59 = vpop.f32.mrb[42].mxu1 }
0x25e3   : > { %v4966_v61 = vadd.f32 %v4962_v59, %v4727_v51  ;;  %v7478_v62 = vpop.f32.mrb[43].mxu1 }
0x25e5   : > { %v4975_v63 = vadd.f32 %v6917_v60, %v4966_v61 }
0x25e7   : > { %v4976_v2 = vadd.f32 %v4975_v63, %v9422_v26  ;;  %v8103_v26 = vld [vmem:[%s9104_s3 + $0x8] sm:$0xff]  ;;  %s9885_s3 = sld [smem:[#allocation57_spill]] }
0x25e8   : > { %7499 = vmatmul.mubr.msk.f32.vlgmr.msra.gmra.mrb[44].mxu1 %vm1194_vm1, %v8103_v26 }
0x25e9   : > { %v4981_v3 = vsel %vm1194_vm1, %v4976_v2, 0.0  ;;  %7516 = vmatprep.mubr.msk.f32.mxu1 %vm8592_vm0, %v8593_v1 }
0x25ea   : > { %4982 = vadd.xlane.f32.xlu1 %v4981_v3 }
0x2677   : > { %v4983_v4 = vpop.xlane.xlu1 %4982 }
0x2678   : > { %v4984_v52 = vmul.f32 0.03125, %v4983_v4 }
0x267a   : > { %v4985_v5 = vsub.f32 %v4976_v2, %v4984_v52  ;;  %v6929_v2 = vld [vmem:[#allocation14 + $0x1] ss:$0 sm:$0xff] }
0x267c   : > { %v4986_v6 = vmul.f32 %v4985_v5, %v4985_v5 }
0x267e   : > { %v4987_v7 = vsel %vm1194_vm1, %v4986_v6, 0.0 }
0x267f   : > { %4988 = vadd.xlane.f32.xlu1 %v4987_v7 }
0x26bb   : > { %v7500_v36 = vpop.f32.mrb[44].mxu1 }
0x26bc   : > { %v5180_v37 = vadd.f32 %v7500_v36, %v6926_v34  ;;  %v5174_v32 = vpop.f32.mrb[45].mxu1 }
0x26bd   : > { %v5175_v38 = vadd.f32 %v6926_v34, %v5174_v32 }
0x26bf   : > { %v7733_v39 = vpack.c.bf16 %v5180_v37, %v5175_v38  ;;  %v9552_v40 = vpack.i.bf16 %v5180_v37, %v5175_v38 }
0x26c1   : > { %7995 = vrot.lane.b32.xlu1 %v9552_v40, %s9878_s5  ;;  %7735 = vmatpush3.bf16.xpose.msk.msra.mxu1 %vm9286_vm3, %v7733_v39 }
0x26c2   : > { %7739 = vmatprep.subr.bf16.mxu1 %v8591_v0 }
0x270c   : > { %v4989_v22 = vpop.xlane.xlu1 %4988 }
0x270d   : > { %v4990_v23 = vmul.f32 0.03125, %v4989_v22 }
0x270f   : > { %v4991_v24 = vadd.f32 1e-05, %v4990_v23 }
0x2711   : > { %8078 = vrsqrt.f32 %v4991_v24  ;;  %v5272_v24 = vld [vmem:[#allocation16 + $0x20] sm:$0xff] }
0x271b   : > { %v8079_v25 = vpop.eup %8078 }
0x271c   : > { %v4993_v12 = vmul.f32 %v8079_v25, %v4985_v5 }
0x271e   : > { %v5000_v30 = vmul.f32 %v6920_v27, %v4993_v12 }
0x2720   : > { %v9544_v31 = vadd.f32 %v6921_v29, %v5000_v30  ;;  %v5273_v29 = vld [vmem:[#allocation16 + $0x28] sm:$0xff] }
0x2722   : > { %v5008_v33 = vadd.f32 %v9426_v28, %v9544_v31  ;;  %v5184_v28 = vld [vmem:[#allocation13 + $0x20] sm:$0xff] }
0x2723   : > { %v7724_v43 = vpack.c.bf16 %v5185_v41, %v5184_v28 }
0x2724   : > { %7488 = vmatmul.mubr.msk.f32.vlgmr.msra.gmra.mrb[46].mxu0 %vm1194_vm1, %v5008_v33 }
0x2725   : > { %7509 = vmatprep.mubr.msk.f32.mxu0 %vm1194_vm1, %v9306_v35  ;;  %v5186_v35 = vld [vmem:[#allocation13 + $0x30] sm:$0xff]  ;;  %7725 = vmatprep.subr.bf16.mxu0 %v7724_v43 }
0x2726   : > { %v7728_v45 = vpack.c.bf16 %v5187_v44, %v5186_v35  ;;  %7727 = vmatpush3.bf16.msra.mxu0 %v7724_v43 }
0x2728   : > { %7729 = vmatprep.subr.bf16.mxu0 %v7728_v45 }
0x272a   : > { %7731 = vmatpush3.bf16.msra.mxu0 %v7728_v45 }
0x272b   : > { %7736 = vmatprep.subr.bf16.mxu0 %v8591_v0 }
0x272d   : > { %7510 = vmatmul.mubr.msk.f32.vlgmr.msra.gmra.mrb[48].mxu0 %vm1194_vm1, %v8104_v55 }
0x272e   : > { %7523 = vmatprep.mubr.msk.f32.mxu0 %vm8592_vm0, %v8593_v1 }
0x2733   : > { %v7996_v46 = vpop.permute.xlu1 %7995 }
0x2734   : > { %v7998_v47 = vunpack.i.h.bf16 %v7996_v46  ;;  %v7997_v48 = vunpack.i.l.bf16 %v7996_v46 }
0x2736   : > { %v7740_v51 = vpack.c.bf16 %v7998_v47, %v7997_v48 }
0x27f7   : > { %v5091_v50 = vpop.f32.mrb[46].mxu0 }
0x27f8   : > { %v5092_v53 = vadd.f32 %v6923_v49, %v5091_v50  ;;  %v7489_v54 = vpop.f32.mrb[47].mxu0 }
0x27fa   : > { %5439 = vrot.lane.b32.xlu0 %v5092_v53, %s9878_s5  ;;  %7517 = vmatmul.mubr.msk.f32.vlgmr.msra.gmra.mrb[46].mxu1 %vm1359_vm2, %v5092_v53 }
0x27fb   : > { %7742 = vmatpush3.bf16.xpose.msk.msra.mxu1 %vm9286_vm3, %v7740_v51  ;;  %7530 = vmatprep.mubr.msk.f32.mxu1 %vm8592_vm0, %v8593_v1 }
0x27fc   : > { %7545 = vmatprep.subr.mxu1 %v8593_v1 }
0x2800   : > { %v7511_v57 = vpop.f32.mrb[48].mxu0 }
0x2801   : > { %v5262_v42 = vpop.f32.mrb[49].mxu0  ;;  %v5268_v3 = vadd.f32 %v7511_v57, %v6929_v2 }
0x2802   : > { %v5263_v4 = vadd.f32 %v6929_v2, %v5262_v42 }
0x2804   : > { %v9577_v52 = vpack.i.bf16 %v5268_v3, %v5263_v4  ;;  %v7737_v11 = vpack.c.bf16 %v5268_v3, %v5263_v4 }
0x2806   : > { %7738 = vmatpush3.bf16.msra.mxu0 %v7737_v11  ;;  %v5274_v11 = vld [vmem:[#allocation16 + $0x30] sm:$0xff] }
0x2807   : > { %7743 = vmatprep.subr.bf16.mxu0 %v8591_v0 }
0x286c   : > { %v5440_v8 = vpop.permute.xlu0 %5439 }
0x286d   : > { %7531 = vmatmul.mubr.msk.f32.vlgmr.msra.gmra.mrb[48].mxu1 %vm1359_vm2, %v5440_v8 }
0x286e   : > { %7547 = vmatprep.mubr.msk.f32.mxu1 %vm8592_vm0, %v8593_v1  ;;  %7546 = vmatpush3.msra.mxu1 %v5272_v24 }
0x286f   : > { %7750 = vmatprep.subr.bf16.mxu1 %v8591_v0 }
0x28cd   : > { %v5351_v58 = vpop.f32.mrb[46].mxu1 }
0x28ce   : > { %v7518_v59 = vpop.f32.mrb[47].mxu1  ;;  %v5355_v60 = vsel %vm2699_vm4, %v5351_v58, -inf }
0x28cf   : > { %5356 = vmax.xlane.f32.xlu0 %v5355_v60 }
0x2940   : > { %v5517_v61 = vpop.f32.mrb[48].mxu1 }
0x2941   : > { %v7532_v62 = vpop.f32.mrb[49].mxu1  ;;  %v5521_v63 = vsel %vm2699_vm4, %v5517_v61, -inf }
0x2942   : > { %5522 = vmax.xlane.f32.xlu1 %v5521_v63 }
0x2953   : > { %8000 = vrot.lane.b32.xlu1 %v9577_v52, %s9878_s5  ;;  %s9883_s5 = sld [smem:[#allocation55_spill]] }
0x2957   : > { %5759 = vrot.lane.b32.xlu1 %v5092_v53, %s9880_s18 }
0x295b   : > { %8010 = vrot.lane.b32.xlu1 %v9552_v40, %s9881_s20 }
0x295c   : > { %v5357_v5 = vpop.xlane.xlu0 %5356 }
0x295d   : > { %v5358_v6 = vsub.f32 %v5351_v58, %v5357_v5 }
0x295f   : > { %v5359_v7 = vmul.f32 1.442695, %v5358_v6 }
0x2961   : > { %8080 = vpow2.f32 %v5359_v7 }
0x296b   : > { %v8081_v10 = vpop.eup %8080 }
0x296c   : > { %v5361_v56 = vsel %vm2699_vm4, %v8081_v10, 0.0 }
0x296d   : > { %5362 = vadd.xlane.f32.xlu0 %v5361_v56 }
0x29cf   : > { %v5523_v14 = vpop.xlane.xlu1 %5522 }
0x29d0   : > { %v5524_v15 = vsub.f32 %v5517_v61, %v5523_v14 }
0x29d2   : > { %v5525_v16 = vmul.f32 1.442695, %v5524_v15 }
0x29d3   : > { %v8001_v13 = vpop.permute.xlu1 %8000 }
0x29d4   : > { %8082 = vpow2.f32 %v5525_v16  ;;  %v8003_v20 = vunpack.i.h.bf16 %v8001_v13  ;;  %v8002_v21 = vunpack.i.l.bf16 %v8001_v13 }
0x29d6   : > { %v7744_v22 = vpack.c.bf16 %v8003_v20, %v8002_v21  ;;  %v5275_v21 = vld [vmem:[#allocation16 + $0x38] sm:$0xff] }
0x29d7   : > { %v5760_v36 = vpop.permute.xlu1 %5759 }
0x29de   : > { %v8083_v26 = vpop.eup %8082 }
0x29df   : > { %v5527_v17 = vsel %vm2699_vm4, %v8083_v26, 0.0 }
0x29e0   : > { %5528 = vadd.xlane.f32.xlu0 %v5527_v17 }
0x29f6   : > { %8005 = vrot.lane.b32.xlu0 %v9552_v40, %s9880_s18  ;;  %v8011_v40 = vpop.permute.xlu1 %8010 }
0x29f7   : > { %v8013_v41 = vunpack.i.h.bf16 %v8011_v40  ;;  %v8012_v35 = vunpack.i.l.bf16 %v8011_v40  ;;  %v6293_v40 = vld [vmem:[#allocation19 + $0x20] sm:$0xff] }
0x29f9   : > { %v7754_v43 = vpack.c.bf16 %v8013_v41, %v8012_v35  ;;  %v6296_v35 = vld [vmem:[#allocation19 + $0x38] sm:$0xff] }
0x29fa   : > { %v5363_v18 = vpop.xlane.xlu0 %5362  ;;  %6005 = vrot.lane.b32.xlu0 %v5092_v53, %s9881_s20 }
0x29fb   : > { %8084 = vrcp.f32 %v5363_v18 }
0x2a05   : > { %v8085_v9 = vpop.eup %8084 }
0x2a06   : > { %v5365_v23 = vmul.f32 %v8085_v9, %v8081_v10 }
0x2a08   : > { %7524 = vmatmul.mubr.msk.f32.vlgmr.msra.gmra.mrb[50].mxu0 %vm2699_vm4, %v5365_v23 }
0x2a09   : > { %7745 = vmatpush3.bf16.msra.mxu0 %v7744_v22  ;;  %7537 = vmatprep.mubr.msk.f32.mxu0 %vm8592_vm0, %v8593_v1 }
0x2a0a   : > { %7540 = vmatprep.subr.mxu0 %v8593_v1 }
0x2a6d   : > { %v5529_v25 = vpop.xlane.xlu0 %5528 }
0x2a6e   : > { %8086 = vrcp.f32 %v5529_v25 }
0x2a71   : > { %v8006_v34 = vpop.permute.xlu0 %8005 }
0x2a72   : > { %v8008_v37 = vunpack.i.h.bf16 %v8006_v34  ;;  %v8007_v32 = vunpack.i.l.bf16 %v8006_v34 }
0x2a74   : > { %v7747_v38 = vpack.c.bf16 %v8008_v37, %v8007_v32 }
0x2a75   : > { %v6006_v44 = vpop.permute.xlu0 %6005 }
0x2a78   : > { %v8087_v27 = vpop.eup %8086 }
0x2a79   : > { %v5531_v12 = vmul.f32 %v8087_v27, %v8083_v26 }
0x2a7b   : > { %7538 = vmatmul.mubr.msk.f32.vlgmr.msra.gmra.mrb[52].mxu0 %vm2699_vm4, %v5531_v12  ;;  %v6952_v12 = vld [vmem:[#allocation17 + $0x1] ss:$0 sm:$0xff] }
0x2a7c   : > { %7541 = vmatpush3.msra.mxu0 %v5273_v29  ;;  %7542 = vmatprep.mubr.msk.f32.mxu0 %vm8592_vm0, %v8593_v1 }
0x2a7d   : > { %7746 = vmatprep.subr.bf16.mxu0 %v8591_v0 }
0x2adb   : > { %v5435_v30 = vpop.f32.mrb[50].mxu0 }
0x2adc   : > { %v7525_v33 = vpop.f32.mrb[51].mxu0  ;;  %7548 = vmatmul.mubr.msk.f32.vlgmr.msra.gmra.mrb[50].mxu1 %vm1359_vm2, %v5435_v30 }
0x2add   : > { %7561 = vmatprep.mubr.msk.f32.mxu1 %vm8592_vm0, %v8593_v1 }
0x2b4e   : > { %v5609_v39 = vpop.f32.mrb[52].mxu0 }
0x2b4f   : > { %v7539_v28 = vpop.f32.mrb[53].mxu0  ;;  %7543 = vmatmul.mubr.msk.f32.vlgmr.msra.gmra.mrb[54].mxu0 %vm1359_vm2, %v5609_v39 }
0x2b50   : > { %7749 = vmatpush3.bf16.xpose.msk.msra.mxu0 %vm9286_vm3, %v7747_v38  ;;  %7554 = vmatprep.mubr.msk.f32.mxu0 %vm8592_vm0, %v8593_v1  ;;  %v6294_v28 = vld [vmem:[#allocation19 + $0x28] sm:$0xff] }
0x2b51   : > { %7753 = vmatprep.subr.bf16.mxu0 %v8591_v0  ;;  %v7761_v41 = vpack.c.bf16 %v6294_v28, %v6293_v40  ;;  %v6975_v40 = vld [vmem:[%s9884_s6] ss:$0 sm:$0xff] }
0x2b57   : > { %7555 = vmatmul.mubr.msk.f32.vlgmr.msra.gmra.mrb[56].mxu0 %vm1359_vm2, %v5760_v36 }
0x2b58   : > { %7756 = vmatpush3.bf16.xpose.msk.msra.mxu0 %vm9286_vm3, %v7754_v43  ;;  %7573 = vmatprep.mubr.msk.f32.mxu0 %vm8592_vm0, %v8593_v1 }
0x2b59   : > { %7760 = vmatprep.subr.bf16.mxu0 %v8591_v0 }
0x2b5f   : > { %7574 = vmatmul.mubr.msk.f32.vlgmr.msra.gmra.mrb[58].mxu0 %vm1359_vm2, %v6006_v44  ;;  %v6959_v44 = vld [vmem:[%s9868_s23 + $0x40] sm:$0xff] }
0x2b60   : > { %7596 = vmatprep.mubr.msk.f32.mxu0 %vm8592_vm0, %v8593_v1  ;;  %7762 = vmatpush3.bf16.msra.mxu0 %v7761_v41 }
0x2b61   : > { %7763 = vmatprep.subr.bf16.mxu0 %v8591_v0 }
0x2baf   : > { %v5755_v45 = vpop.f32.mrb[50].mxu1 }
0x2bb0   : > { %v7549_v46 = vpop.f32.mrb[51].mxu1 }
0x2bb1   : > { %v6961_v46 = vld [vmem:[%s9868_s23 + $0x50] sm:$0xff] }
0x2c22   : > { %v5682_v47 = vpop.f32.mrb[54].mxu0 }
0x2c23   : > { %v5756_v48 = vadd.f32 %v5755_v45, %v5682_v47  ;;  %v7544_v49 = vpop.f32.mrb[55].mxu0  ;;  %v6960_v45 = vld [vmem:[%s9868_s23 + $0x48] sm:$0xff] }
0x2c24   : > { %v7767_v47 = vpack.c.bf16 %v6960_v45, %v6959_v44 }
0x2c2a   : > { %v5837_v50 = vpop.f32.mrb[56].mxu0 }
0x2c2b   : > { %v7556_v51 = vpop.f32.mrb[57].mxu0  ;;  %v5841_v19 = vsel %vm2699_vm4, %v5837_v50, -inf }
0x2c2c   : > { %5842 = vmax.xlane.f32.xlu1 %v5841_v19  ;;  %v6964_v51 = vld [vmem:[%s9868_s23 + $0x68] sm:$0xff] }
0x2c32   : > { %v6083_v53 = vpop.f32.mrb[58].mxu0 }
0x2c33   : > { %v7575_v54 = vpop.f32.mrb[59].mxu0  ;;  %v6087_v55 = vsel %vm2699_vm4, %v6083_v53, -inf }
0x2c34   : > { %6088 = vmax.xlane.f32.xlu1 %v6087_v55 }
0x2cb9   : > { %v5843_v8 = vpop.xlane.xlu1 %5842 }
0x2cba   : > { %v5844_v57 = vsub.f32 %v5837_v50, %v5843_v8  ;;  %v6963_v50 = vld [vmem:[%s9868_s23 + $0x60] sm:$0xff] }
0x2cbb   : > { %v7773_v19 = vpack.c.bf16 %v6964_v51, %v6963_v50 }
0x2cbc   : > { %v5845_v42 = vmul.f32 1.442695, %v5844_v57  ;;  %v6955_v57 = vld [vmem:[%s9869_s2 + $0x1] ss:$0 sm:$0xff] }
0x2cbe   : > { %8088 = vpow2.f32 %v5845_v42 }
0x2cc1   : > { %v6089_v58 = vpop.xlane.xlu1 %6088 }
0x2cc2   : > { %v6090_v59 = vsub.f32 %v6083_v53, %v6089_v58  ;;  %v6956_v58 = vld [vmem:[%s9870_s22 + $0x1] ss:$0 sm:$0xff] }
0x2cc4   : > { %v6091_v60 = vmul.f32 1.442695, %v6090_v59 }
0x2cc6   : > { %8090 = vpow2.f32 %v6091_v60 }
0x2cc8   : > { %v8089_v61 = vpop.eup %8088 }
0x2cc9   : > { %v5847_v62 = vsel %vm2699_vm4, %v8089_v61, 0.0 }
0x2cca   : > { %5848 = vadd.xlane.f32.xlu0 %v5847_v62  ;;  %v6966_v62 = vld [vmem:[%s9868_s23 + $0x78] sm:$0xff] }
0x2cd0   : > { %v8091_v63 = vpop.eup %8090 }
0x2cd1   : > { %v6093_v2 = vsel %vm2699_vm4, %v8091_v63, 0.0 }
0x2cd2   : > { %6094 = vadd.xlane.f32.xlu1 %v6093_v2  ;;  %v6957_v2 = vld [vmem:[#allocation20 + $0x1] ss:$0 sm:$0xff] }
0x2ce0   : > { %8015 = vrot.lane.b32.xlu0 %v9577_v52, %s9880_s18  ;;  %s6977_s18 = sshll.u32 %s8783_s26, 7  ;;  %s8601_s26 = smov [#allocation22]  }
0x2ce1   : > { %s9672_s2 = scalar_lea.hbm %s9885_s3, %s6977_s18 }
0x2ce3   : > { %8020 = vrot.lane.b32.xlu1 %v9577_v52, %s9881_s20  ;;  %s1175_s20 = scalar_lea.vmem [#allocation22], %s9094_s30  ;;  %s8453_s30 = sshll.u32 %s8601_s26, 4  ;;  %s8454_s30 = int_to_ptr.vmem [resolvable:$false] %s8453_s30 }
0x2ce4   : > { %s6545_s1 = sshll.u32 %s1175_s20, 4  ;;  %s9674_s1 = int_to_ptr.vmem [resolvable:$true] %s6545_s1 }
0x2ce5   : > { %p8456_p2 = scmp.lt.s32.totalorder %s9674_s1, %s8454_s30 }
0x2d57   : > { %v5849_v3 = vpop.xlane.xlu0 %5848 }
0x2d58   : > { %8092 = vrcp.f32 %v5849_v3 }
0x2d5b   : > { %v8016_v4 = vpop.permute.xlu0 %8015 }
0x2d5c   : > { %v8018_v5 = vunpack.i.h.bf16 %v8016_v4  ;;  %v8017_v6 = vunpack.i.l.bf16 %v8016_v4 }
0x2d5e   : > { %v7751_v7 = vpack.c.bf16 %v8018_v5, %v8017_v6  ;;  %v6968_v6 = vld [vmem:[%s9872_s19 + $0x1] ss:$0 sm:$0xff] }
0x2d5f   : > { %v6095_v52 = vpop.xlane.xlu1 %6094 }
0x2d60   : > { %7752 = vmatpush3.bf16.msra.mxu1 %v7751_v7  ;;  %8094 = vrcp.f32 %v6095_v52 }
0x2d61   : > { %7564 = vmatprep.subr.mxu1 %v8593_v1 }
0x2d62   : > { %v8093_v10 = vpop.eup %8092 }
0x2d63   : > { %v5851_v56 = vmul.f32 %v8093_v10, %v8089_v61  ;;  %v8021_v14 = vpop.permute.xlu1 %8020  ;;  %v6965_v61 = vld [vmem:[%s9868_s23 + $0x70] sm:$0xff] }
0x2d64   : > { %v8023_v15 = vunpack.i.h.bf16 %v8021_v14  ;;  %v8022_v16 = vunpack.i.l.bf16 %v8021_v14 }
0x2d65   : > { %7562 = vmatmul.mubr.msk.f32.vlgmr.msra.gmra.mrb[52].mxu1 %vm2699_vm4, %v5851_v56 }
0x2d66   : > { %7565 = vmatpush3.msra.mxu1 %v5274_v11  ;;  %7566 = vmatprep.mubr.msk.f32.mxu1 %vm8592_vm0, %v8593_v1  ;;  %v7758_v17 = vpack.c.bf16 %v8023_v15, %v8022_v16 }
0x2d67   : > { %7757 = vmatprep.subr.bf16.mxu1 %v8591_v0 }
0x2d6a   : > { %v8095_v26 = vpop.eup %8094 }
0x2d6b   : > { %v6097_v20 = vmul.f32 %v8095_v26, %v8091_v63  ;;  %v7776_v63 = vpack.c.bf16 %v6966_v62, %v6965_v61 }
0x2e38   : > { %v5927_v18 = vpop.f32.mrb[52].mxu1 }
0x2e39   : > { %v7563_v13 = vpop.f32.mrb[53].mxu1  ;;  %7567 = vmatmul.mubr.msk.f32.vlgmr.msra.gmra.mrb[54].mxu1 %vm1359_vm2, %v5927_v18 }
0x2e3a   : > { %7759 = vmatpush3.bf16.msra.mxu1 %v7758_v17  ;;  %7580 = vmatprep.mubr.msk.f32.mxu1 %vm8592_vm0, %v8593_v1 }
0x2e3b   : > { %7583 = vmatprep.subr.mxu1 %v8593_v1 }
0x2e3d   : > { %7581 = vmatmul.mubr.msk.f32.vlgmr.msra.gmra.mrb[56].mxu1 %vm2699_vm4, %v6097_v20 }
0x2e3e   : > { %7585 = vmatprep.mubr.msk.f32.mxu1 %vm8592_vm0, %v8593_v1  ;;  %7584 = vmatpush3.msra.mxu1 %v5275_v21 }
0x2e3f   : > { %7766 = vmatprep.subr.bf16.mxu1 %v8591_v0 }
0x2f0c   : > { %v6000_v9 = vpop.f32.mrb[54].mxu1 }
0x2f0d   : > { %v6004_v22 = vadd.f32 %v6000_v9, %v5756_v48  ;;  %v7568_v23 = vpop.f32.mrb[55].mxu1  ;;  %v6962_v48 = vld [vmem:[%s9868_s23 + $0x58] sm:$0xff]  ;;  %v6972_v9 = vld [vmem:[%s9873_s11 + $0x1] ss:$0 sm:$0xff] }
0x2f0e   : > { %v7770_v49 = vpack.c.bf16 %v6962_v48, %v6961_v46  ;;  %v6973_v23 = vld [vmem:[%s9875_s7 + $0x1] ss:$0 sm:$0xff]  ;;  %s8449_s7 = scalar_lea.vmem %s9674_s1, 128 }
0x2f0f   : > { %p8450_p10 = scmp.ne.s32.totalorder %s9674_s1, %s8449_s7 }
0x2f10   : > { %v6173_v24 = vpop.f32.mrb[56].mxu1 }
0x2f11   : > { %v7582_v25 = vpop.f32.mrb[57].mxu1  ;;  %7586 = vmatmul.mubr.msk.f32.vlgmr.msra.gmra.mrb[58].mxu1 %vm1359_vm2, %v6173_v24  ;;  %p8451_p3 = pnand %p8450_p10, %p9887_p12 }
0x2f12   : > { %7615 = vmatprep.mubr.msk.f32.mxu1 %vm8592_vm0, %v8593_v1  ;;  %7768 = vmatpush3.bf16.msra.mxu1 %v7767_v47 }
0x2f13   : > { %7769 = vmatprep.subr.bf16.mxu1 %v8591_v0  ;;  %p8452_p6 = pneg %p8451_p3 }
0x2f16   : > { %7771 = vmatpush3.bf16.msra.mxu1 %v7770_v49 }
0x2f17   : > { %7772 = vmatprep.subr.bf16.mxu1 %v8591_v0 }
0x2f1a   : > { %7774 = vmatpush3.bf16.msra.mxu1 %v7773_v19 }
0x2f1b   : > { %7775 = vmatprep.subr.bf16.mxu1 %v8591_v0 }
0x2f1e   : > { %7777 = vmatpush3.bf16.msra.mxu1 %v7776_v63 }
0x2fe4   : > { %v6246_v27 = vpop.f32.mrb[58].mxu1 }
0x2fe5   : > { %v6250_v29 = vadd.f32 %v6246_v27, %v6004_v22  ;;  %v7587_v30 = vpop.f32.mrb[59].mxu1 }
0x2fe7   : > { %v6259_v33 = vadd.f32 %v6952_v12, %v6250_v29 }
0x2fe9   : > { %v6260_v34 = vadd.f32 %v6259_v33, %v9544_v31  ;;  %v6295_v31 = vld [vmem:[#allocation19 + $0x30] sm:$0xff] }
0x2fea   : > { %v7764_v43 = vpack.c.bf16 %v6296_v35, %v6295_v31 }
0x2feb   : > { %v6265_v36 = vsel %vm1194_vm1, %v6260_v34, 0.0 }
0x2fec   : > { %6266 = vadd.xlane.f32.xlu0 %v6265_v36  ;;  %7765 = vmatpush3.bf16.msra.mxu0 %v7764_v43 }
0x3079   : > { %v6267_v37 = vpop.xlane.xlu0 %6266 }
0x307a   : > { %v6268_v32 = vmul.f32 0.03125, %v6267_v37 }
0x307c   : > { %v6269_v38 = vsub.f32 %v6260_v34, %v6268_v32 }
0x307e   : > { %v6270_v39 = vmul.f32 %v6269_v38, %v6269_v38 }
0x3080   : > { %v6271_v1 = vsel %vm1194_vm1, %v6270_v39, 0.0  ;;  %v6974_v39 = vld [vmem:[%s9883_s5] ss:$0 sm:$0xff]  ;;  %s8455_s5 = scalar_lea.vmem %s8454_s30, 256 }
0x3081   : > { %6272 = vadd.xlane.f32.xlu1 %v6271_v1  ;;  %p8457_p8 = scmp.lt.s32.totalorder %s8455_s5, %s8449_s7 }
0x3083   : > { %p8458_p7 = por %p8457_p8, %p8456_p2 }
0x3085   : > { %p8459_p1 = pnand %p8458_p7, %p8452_p6 }
0x310e   : > { %v6273_v53 = vpop.xlane.xlu1 %6272 }
0x310f   : > { %v6274_v54 = vmul.f32 0.03125, %v6273_v53 }
0x3111   : > { %v6275_v55 = vadd.f32 1e-05, %v6274_v54 }
0x3113   : > { %8096 = vrsqrt.f32 %v6275_v55 }
0x311d   : > { %v8097_v8 = vpop.eup %8096 }
0x311e   : > { %v6277_v42 = vmul.f32 %v8097_v8, %v6269_v38 }
0x3120   : > { %v6284_v59 = vmul.f32 %v6955_v57, %v6277_v42 }
0x3122   : > { %v6291_v60 = vadd.f32 %v6956_v58, %v6284_v59 }
0x3124   : > { %7597 = vmatmul.mubr.msk.f32.vlgmr.msra.gmra.mrb[60].mxu0 %vm1194_vm1, %v6291_v60 }
0x31f7   : > { %v6374_v3 = vpop.f32.mrb[60].mxu0 }
0x31f8   : > { %v6375_v0 = vadd.f32 %v6957_v2, %v6374_v3  ;;  %v7598_v4 = vpop.f32.mrb[61].mxu0 }
0x31fa   : > { %v6378_v5 = vmax.f32 %v6375_v0, 0.0 }
0x31fc   : > { %7616 = vmatmul.mubr.msk.f32.vlgmr.msra.gmra.mrb[60].mxu1 %vm3734_vm5, %v6378_v5 }
0x32cf   : > { %v6465_v7 = vpop.f32.mrb[60].mxu1 }
0x32d0   : > { %v6466_v10 = vadd.f32 %v6968_v6, %v6465_v7  ;;  %v7617_v56 = vpop.f32.mrb[61].mxu1 }
0x32d2   : > { %v6469_v11 = vadd.f32 %v6466_v10, %v6291_v60 }
0x32d4   : > { %v6474_v52 = vsel %vm1194_vm1, %v6469_v11, 0.0 }
0x32d5   : > { %6475 = vadd.xlane.f32.xlu0 %v6474_v52 }
0x3362   : > { %v6476_v14 = vpop.xlane.xlu0 %6475 }
0x3363   : > { %v6477_v15 = vmul.f32 0.03125, %v6476_v14 }
0x3365   : > { %v6478_v16 = vsub.f32 %v6469_v11, %v6477_v15 }
0x3367   : > { %v6479_v26 = vmul.f32 %v6478_v16, %v6478_v16 }
0x3369   : > { %v6480_v17 = vsel %vm1194_vm1, %v6479_v26, 0.0 }
0x336a   : > { %6481 = vadd.xlane.f32.xlu0 %v6480_v17 }
0x33f7   : > { %v6482_v18 = vpop.xlane.xlu0 %6481 }
0x33f8   : > { %v6483_v13 = vmul.f32 0.03125, %v6482_v18 }
0x33fa   : > { %v6484_v20 = vadd.f32 1e-05, %v6483_v13 }
0x33fc   : > { %8098 = vrsqrt.f32 %v6484_v20 }
0x3406   : > { %v8099_v21 = vpop.eup %8098 }
0x3407   : > { %v6486_v22 = vmul.f32 %v8099_v21, %v6478_v16 }
0x3409   : > { %v6493_v24 = vmul.f32 %v6972_v9, %v6486_v22 }
0x340b   : > { %v6500_v25 = vadd.f32 %v6973_v23, %v6493_v24 }
0x340d   : > { %v6503_v27 = vsel %vm1194_vm1, %v6500_v25, 0.0 }
0x340e   : > { %6504 = vadd.xlane.f32.xlu0 %v6503_v27 }
0x349b   : > { %v6505_v12 = vpop.xlane.xlu0 %6504 }
0x349c   : > { %v6506_v29 = vmul.f32 0.03125, %v6505_v12 }
0x349e   : > { %v6507_v30 = vsub.f32 %v6500_v25, %v6506_v29 }
0x34a0   : > { %v6508_v33 = vmul.f32 %v6507_v30, %v6507_v30 }
0x34a2   : > { %v6509_v34 = vsel %vm1194_vm1, %v6508_v33, 0.0 }
0x34a3   : > { %6510 = vadd.xlane.f32.xlu1 %v6509_v34 }
0x3530   : > { %v6511_v36 = vpop.xlane.xlu1 %6510 }
0x3531   : > { %v6512_v37 = vmul.f32 0.03125, %v6511_v36 }
0x3533   : > { %v6513_v32 = vadd.f32 1e-05, %v6512_v37 }
0x3535   : > { %8100 = vrsqrt.f32 %v6513_v32 }
0x353f   : > { %v8101_v38 = vpop.eup %8100 }
0x3540   : > { %v6515_v1 = vmul.f32 %v8101_v38, %v6507_v30 }
0x3542   : > { %v6522_v28 = vmul.f32 %v6974_v39, %v6515_v1 }
0x3544   : > { %v6529_v41 = vadd.f32 %v6975_v40, %v6522_v28 }
0x3546   : > { %6530 = vst.msk [vmem:[%s1175_s20] sm:$0xff] %vm1194_vm1, %v6529_v41 }
0x3547   : > { %8462 = shalt.err (!%p8459_p1)
}
0x3548   : > { %s8463_s15 = scalar_lea.hbm %s9672_s2, 128  ;;  %s8467_s6 = scalar_lea.hbm %s9885_s3, 256 }
0x3549   : > { %p8464_p11 = scmp.ne.s32.totalorder %s9672_s2, %s8463_s15  ;;  %p8468_p0 = scmp.lt.u32.totalorder %s9672_s2, %s9885_s3 }
0x354a   : > { %p8469_p9 = scmp.lt.u32.totalorder %s8467_s6, %s8463_s15  ;;  %p8471_p10 = scmp.lt.u32.totalorder %s8463_s15, %s9672_s2 }
0x354b   : > { %p8465_p5 = pnand %p8464_p11, %p9887_p12 }
0x354c   : > { %p8470_p4 = por %p8469_p9, %p8468_p0 }
0x354d   : > { %p8466_p13 = pneg %p8465_p5 }
0x354e   : > { %p8472_p3 = por %p8471_p10, %p8470_p4 }
0x3550   : > { %p8473_p6 = pnand %p8472_p3, %p8466_p13 }
0x3552   : > { %8476 = shalt.err (!%p8473_p6)
}
0x3553   : > { %7818 = dma.vmem_to_hbm [thread:$0]  (%p9887_p12), %s9674_s1, 128, %s9672_s2, %s6532_s4  }
0x3554 PF: > { %s9888_s7 = sld [smem:[#allocation58_spill]]  ;;  %s9889_s18 = sld [smem:[#allocation63_spill]] }
0x3555   : > { %p9891_p8 = scmp.ge.s32.totalorder %s8543_s0, 2 }
0x355a   : > { %s6557_s20 = sand.u32 1, %s9888_s7   ;;  %p9890_p2 = scmp.ne.s32.totalorder %s9889_s18, 0 }
0x355b   : > { %s6558_s26 = scalar_lea.sflag [#allocation4], %s6557_s20 }
0x355c   : > { %p7859_p7 = pnand %p9891_p8, %p9890_p2 }
0x355e   : > { %8526 = dma.done.wait (!%p7859_p7), %s6558_s26, 128  }
0x355f   : > { %8528 = vsyncadd (!%p7859_p7), %s6558_s26, 4294967168  ;;  %s9892_s0 = sld [smem:[#allocation60_spill]]  ;;  %s9893_s30 = sld [smem:[#allocation59_spill]] }
0x3560   : > { %s9894_s18 = sld [smem:[#allocation61_spill]]  ;;  %s9895_s15 = smov %s8535_s16 }
0x3565   : > { %p84_p1 = scmp.ge.s32.totalorder %s9892_s0, 4   ;;  %s9896_s16 = smov %s9893_s30 }
0x3567   :  { %86 = sbr.rel (!%p84_p1) target bundleno = 76 (0x4c), region = 308 }
0x356e   :  { %6563 = vsyncpa [#allocation3], 1 }
0x356f   :  { %6565 = vsyncpa [#allocation3 + $0x1], 1 }
0x3570   :  { %6566 = vsyncpa [#allocation6], 1 }
0x3571   :  { %6568 = vsyncpa [#allocation6 + $0x1], 1 }
0x3572   :  { %6569 = vsyncpa [#allocation9], 1 }
0x3573   :  { %6571 = vsyncpa [#allocation9 + $0x1], 1 }
0x3574   :  { %6572 = vsyncpa [#allocation12], 1 }
0x3575   :  { %6573 = vsyncpa [#allocation15], 1 }
0x3576   :  { %6574 = vsyncpa [#allocation18], 1 }
0x3577   :  { %6575 = vsyncpa [#allocation21], 1 }
0x3578   :  { %6576 = vsyncpa [#allocation4], 1 }
0x3579   :  { %6578 = vsyncpa [#allocation4 + $0x1], 1 }

</bundles_post_ra>
